<compile_context>
chip_gen: v7x
topology: tpu7x:2x2x1
jax: 0.10.0
libtpu: 0.0.40
codegen_flags: <defaults>
</compile_context>

<pallas_src>
import functools

import numpy as np
import jax
import jax.numpy as jnp
from jax.experimental import pallas as pl
from jax.experimental.pallas import tpu as pltpu


# Matmul-operand dtype (f32 accumulate everywhere). Set jnp.float32 for
# bit-exact f32 convolution math.
MM_DTYPE = jnp.bfloat16


# ---------------------------------------------------------------------------
# One-time (init-time) weight expansion — all padding / stride / phase
# structure is folded into dense matmul operands so the kernel only does
# row-shifts + dots.
# ---------------------------------------------------------------------------
def _expand_conv3x3(w, b, Wdim, mm_dtype=MM_DTYPE):
    """3x3 pad-1 conv (HWIO) -> ((3*Wdim*Cin, Wdim*Cout), (1, Wdim*Cout)).

    out_row = [x_rowshift(-1) | x | x_rowshift(+1)] @ W  (zero padding is
    encoded by the absent column blocks / zero-filled row shifts).
    """
    w = np.asarray(w, np.float32)
    b = np.asarray(b, np.float32)
    KH, KW, Cin, Cout = w.shape
    m = np.zeros((KH, Wdim, Cin, Wdim, Cout), np.float32)
    for dx in range(KW):
        for j in range(Wdim):
            jp = j + dx - 1                     # input column block
            if 0 <= jp < Wdim:
                m[:, jp, :, j, :] = w[:, dx, :, :]
    wk = m.reshape(KH * Wdim * Cin, Wdim * Cout)
    bt = np.tile(b, Wdim).reshape(1, Wdim * Cout)
    return jnp.asarray(wk, mm_dtype), jnp.asarray(bt, jnp.float32)


def _expand_conv3x3_s2(w, b, Win, mm_dtype=MM_DTYPE):
    """3x3 stride-2 pad-1 conv: weight for taps built from Estack @ x."""
    w = np.asarray(w, np.float32)
    b = np.asarray(b, np.float32)
    KH, KW, Cin, Cout = w.shape
    Wout = Win // 2
    m = np.zeros((KH, Win, Cin, Wout, Cout), np.float32)
    for dx in range(KW):
        for j in range(Wout):
            jp = 2 * j + dx - 1
            if 0 <= jp < Win:
                m[:, jp, :, j, :] = w[:, dx, :, :]
    wk = m.reshape(KH * Win * Cin, Wout * Cout)
    bt = np.tile(b, Wout).reshape(1, Wout * Cout)
    return jnp.asarray(wk, mm_dtype), jnp.asarray(bt, jnp.float32)


def _expand_upconv(w_t, b, Win, mm_dtype=MM_DTYPE):
    """ConvTranspose2d(Cin, Cout, 6, stride=2, padding=2), phase-decomposed.

    taps = [m2_rowshift(-1) | m2 | m2_rowshift(+1)]   (Hh, 3*Win*Cin)
    taps @ wk -> (Hh, 2*Wout*Cout):  first Wout*Cout lanes are the even output
    rows, last Wout*Cout the odd ones, with columns already scattered to the
    interleaved (2j+rx) positions.
    """
    w_t = np.asarray(w_t, np.float32)           # (Cin, Cout, 6, 6) PyTorch layout
    b = np.asarray(b, np.float32)
    Cin, Cout = w_t.shape[0], w_t.shape[1]
    Wout = 2 * Win
    m = np.zeros((3, Win, Cin, 2, Wout, Cout), np.float32)
    for ry in range(2):
        for rx in range(2):
            wsub = w_t[:, :, ry::2, rx::2][:, :, ::-1, ::-1]   # (Cin,Cout,3,3)
            wsub = np.transpose(wsub, (2, 3, 0, 1))            # (a, b, ci, co)
            for a in range(3):
                for bb in range(3):
                    for jp in range(Win):
                        j = jp - bb + 1
                        if 0 <= j < Win:
                            m[a, jp, :, ry, 2 * j + rx, :] = wsub[a, bb]
    wk = m.reshape(3 * Win * Cin, 2 * Wout * Cout)
    bt = np.tile(b, Wout).reshape(1, Wout * Cout)
    return jnp.asarray(wk, mm_dtype), jnp.asarray(bt, jnp.float32)


def _expand_conv1x1(w, b, Wdim, mm_dtype=MM_DTYPE):
    """1x1 conv as a block-diagonal (Wdim*Cin, Wdim*Cout) matmul operand."""
    w = np.asarray(w, np.float32)               # (1, 1, Cin, Cout)
    b = np.asarray(b, np.float32)
    Cin, Cout = w.shape[2], w.shape[3]
    m = np.zeros((Wdim, Cin, Wdim, Cout), np.float32)
    for j in range(Wdim):
        m[j, :, j, :] = w[0, 0]
    wk = m.reshape(Wdim * Cin, Wdim * Cout)
    bt = np.tile(b, Wdim).reshape(1, Wdim * Cout)
    return jnp.asarray(wk, mm_dtype), jnp.asarray(bt, jnp.float32)


def _make_row_select(H):
    """Estack (3*Hh, H): row dy*Hh+i selects input row 2i+dy-1 (zero if OOB)."""
    Hh = H // 2
    e = np.zeros((3 * Hh, H), np.float32)
    for dy in range(3):
        for i in range(Hh):
            r = 2 * i + dy - 1
            if 0 <= r < H:
                e[dy * Hh + i, r] = 1.0
    return jnp.asarray(e)


def _make_row_interleave(H):
    """P (H, H): P @ [even_rows; odd_rows] interleaves rows 0,1,2,..."""
    Hh = H // 2
    p = np.zeros((H, H), np.float32)
    for i in range(Hh):
        p[2 * i, i] = 1.0
        p[2 * i + 1, Hh + i] = 1.0
    return jnp.asarray(p)


def prepare_operands(params, *, H, W, C):
    """Expand all conv weights ONCE into the kernel's matmul operands."""
    del C
    Wh = W // 2

    full_convs = []

    def add_rb(rb):
        full_convs.append(rb["c1"])
        full_convs.append(rb["c2"])

    add_rb(params["RA_RB1"])                    # wf 0,1
    for rb in params["RA_TB"]:                  # wf 2..5
        add_rb(rb)
    add_rb(params["MB_RB1"])                    # wf 6,7
    add_rb(params["MB_RB3"])                    # wf 8,9
    for rb in params["RA_tail"]:                # wf 10..13
        add_rb(rb)
    full_convs.append(params["tail_conv"])      # wf 14

    wf, bf = [], []
    for (w, b) in full_convs:
        wk, bt = _expand_conv3x3(w, b, W)
        wf.append(wk)
        bf.append(bt)
    wf = jnp.stack(wf)                          # (15, 3*W*C, W*C)  bf16
    bf = jnp.concatenate(bf, axis=0)            # (15, W*C)         f32

    wh, bh = [], []
    for rb in params["MB_RB2"]:                 # wh 0..3
        for (w, b) in (rb["c1"], rb["c2"]):
            wk, bt = _expand_conv3x3(w, b, Wh)
            wh.append(wk)
            bh.append(bt)
    wh = jnp.stack(wh)                          # (4, 3*Wh*C, Wh*C) bf16
    bh = jnp.concatenate(bh, axis=0)            # (4, Wh*C)         f32

    es = _make_row_select(H)                              # (3*Hh, H)
    wd, bd = _expand_conv3x3_s2(*params["MB_Down"], Win=W)
    wu, bu = _expand_upconv(*params["MB_Up"], Win=Wh)
    pmat = _make_row_interleave(H)                        # (H, H)
    w1, b1 = _expand_conv1x1(*params["MB_1x1"], Wdim=W)

    return (wf, bf, wh, bh, es, wd, bd, wu, bu, pmat, w1, b1)


# ---------------------------------------------------------------------------
# The single fused _ResGroup kernel (one image per grid step)
# ---------------------------------------------------------------------------
def _res_group_kernel(x_ref, wf_ref, bf_ref, wh_ref, bh_ref,
                      es_ref, wd_ref, bd_ref, wu_ref, bu_ref, p_ref,
                      w1_ref, b1_ref, o_ref, *, H, W, C):
    WC = W * C
    Hh = H // 2
    WhC = (W // 2) * C
    mm = wf_ref.dtype

    def shift_taps(x, rows, cols):
        # [x_rowshift(-1) | x | x_rowshift(+1)] with zero rows at the borders.
        z = jnp.zeros((1, cols), x.dtype)
        up = jnp.concatenate([z, x[:rows - 1, :]], axis=0)   # row i -> x[i-1]
        dn = jnp.concatenate([x[1:, :], z], axis=0)          # row i -> x[i+1]
        return jnp.concatenate([up, x, dn], axis=1)          # (rows, 3*cols)

    def conv_full(x, k):                                     # 3x3 pad-1, full res
        taps = shift_taps(x, H, WC).astype(mm)
        return (jnp.dot(taps, wf_ref[k], preferred_element_type=jnp.float32)
                + bf_ref[k:k + 1, :])

    def conv_half(x, k):                                     # 3x3 pad-1, half res
        taps = shift_taps(x, Hh, WhC).astype(mm)
        return (jnp.dot(taps, wh_ref[k], preferred_element_type=jnp.float32)
                + bh_ref[k:k + 1, :])

    def resblock_full(x, k):
        h = jnp.maximum(conv_full(x, k), 0.0)
        return x + conv_full(h, k + 1)

    def resblock_half(x, k):
        h = jnp.maximum(conv_half(x, k), 0.0)
        return x + conv_half(h, k + 1)

    x = x_ref[0]                                             # (H, W*C) f32

    # --- ResAttModuleDownUpPlus ---
    ra = resblock_full(x, 0)                                 # RA_RB1
    tx = resblock_full(resblock_full(ra, 2), 4)              # trunk (RA_TB)

    m1 = resblock_full(ra, 6)                                # MB_RB1

    # mask branch: 3x3 stride-2 pad-1 downsample.
    # Vertical stride via one row-selection matmul, horizontal stride folded
    # into the expanded weight.
    sel = jnp.dot(es_ref[...], m1, preferred_element_type=jnp.float32)  # (3*Hh, WC)
    taps_d = jnp.concatenate(
        [sel[0:Hh, :], sel[Hh:2 * Hh, :], sel[2 * Hh:3 * Hh, :]],
        axis=1).astype(mm)                                   # (Hh, 3*WC)
    md = (jnp.dot(taps_d, wd_ref[...], preferred_element_type=jnp.float32)
          + bd_ref[...])                                     # (Hh, Wh*C)

    m2 = resblock_half(resblock_half(md, 0), 2)              # MB_RB2

    # ConvTranspose2d(k=6, s=2, p=2): one phase-decomposed matmul producing
    # (even-rows | odd-rows) with columns already interleaved, then a tiny
    # permutation matmul for the row interleave.  m1 residual fused.
    taps_u = shift_taps(m2, Hh, WhC).astype(mm)              # (Hh, 3*Wh*C)
    up2 = jnp.dot(taps_u, wu_ref[...],
                  preferred_element_type=jnp.float32)        # (Hh, 2*W*C)
    stacked = jnp.concatenate([up2[:, :WC], up2[:, WC:]], axis=0)   # (H, W*C)
    mu = (jnp.dot(p_ref[...], stacked, preferred_element_type=jnp.float32)
          + bu_ref[...] + m1)

    m3 = resblock_full(mu, 8)                                # MB_RB3

    # 1x1 conv + exact sigmoid + attention merge: hx = tx*sigmoid(..) + ra.
    # (Kept as one tiny MXU dot: the MXU slot is idle here and a VPU path
    #  would need lane-strided channel selects in this packed layout.)
    s = (jnp.dot(m3.astype(mm), w1_ref[...],
                 preferred_element_type=jnp.float32) + b1_ref[...])
    mx = 1.0 / (1.0 + jnp.exp(-s))
    hx = tx * mx + ra

    hx = resblock_full(resblock_full(hx, 10), 12)            # RA_tail
    out = conv_full(hx, 14)                                  # trailing group conv

    o_ref[0] = out.astype(o_ref.dtype)


# ---------------------------------------------------------------------------
# Wrapper: one pallas_call for the whole _ResGroup
# ---------------------------------------------------------------------------
def res_group_forward(x_nhwc, ops):
    N, H, W, C = x_nhwc.shape
    WC = W * C
    x2 = x_nhwc.reshape(N, H, WC)                # free reshape (same layout)

    in_specs = [pl.BlockSpec((1, H, WC), lambda n: (n, 0, 0))]
    for op in ops:
        if op.ndim == 3:
            in_specs.append(pl.BlockSpec(op.shape, lambda n: (0, 0, 0)))
        else:
            in_specs.append(pl.BlockSpec(op.shape, lambda n: (0, 0)))

    kernel = functools.partial(_res_group_kernel, H=H, W=W, C=C)
    out = pl.pallas_call(
        kernel,
        out_shape=jax.ShapeDtypeStruct((N, H, WC), x_nhwc.dtype),
        grid=(N,),
        in_specs=in_specs,
        out_specs=pl.BlockSpec((1, H, WC), lambda n: (n, 0, 0)),
        compiler_params=pltpu.CompilerParams(
            dimension_semantics=("parallel",)),
    )(x2, *ops)
    return out.reshape(N, H, W, C)


# ---------------------------------------------------------------------------
# Parameters (deterministic synthetic init, PyTorch-equivalent structure)
# ---------------------------------------------------------------------------
def _init_conv(key, kh, kw, cin, cout, scale=0.1):
    kw_, kb_ = jax.random.split(key)
    w = scale * jax.random.normal(kw_, (kh, kw, cin, cout), jnp.float32)
    b = scale * jax.random.normal(kb_, (cout,), jnp.float32)
    return w, b


def init_params(key, n_feats, kernel_size):
    keys = iter(jax.random.split(key, 64))
    C, ks = n_feats, kernel_size

    def conv_p(kh, kw):
        return _init_conv(next(keys), kh, kw, C, C)

    def resblock_p():
        return {"c1": conv_p(ks, ks), "c2": conv_p(ks, ks)}

    kt_w, kt_b = jax.random.split(next(keys))
    return {
        "RA_RB1": resblock_p(),
        "RA_TB": [resblock_p(), resblock_p()],
        "MB_RB1": resblock_p(),
        "MB_Down": conv_p(3, 3),                       # stride-2 3x3, pad 1
        "MB_RB2": [resblock_p(), resblock_p()],
        "MB_Up": (0.1 * jax.random.normal(kt_w, (C, C, 6, 6), jnp.float32),
                  0.1 * jax.random.normal(kt_b, (C,), jnp.float32)),
        "MB_RB3": resblock_p(),
        "MB_1x1": conv_p(1, 1),
        "RA_tail": [resblock_p(), resblock_p()],
        "tail_conv": conv_p(ks, ks),
    }


# ---------------------------------------------------------------------------
if __name__ == "__main__":
    key = jax.random.PRNGKey(0)
    kx, kp = jax.random.split(key)

    N, C, H, W = 2, 4, 16, 16          # n_feats = 4, kernel_size = 3
    x_nchw = jax.random.normal(kx, (N, C, H, W), jnp.float32)
    x_nhwc = jnp.transpose(x_nchw, (0, 2, 3, 1))    # NCHW -> NHWC

    params = init_params(kp, n_feats=C, kernel_size=3)
    ops = prepare_operands(params, H=H, W=W, C=C)   # one-time weight expansion

    fwd = jax.jit(res_group_forward)
    out_nhwc = fwd(x_nhwc, ops)
    out_nchw = jnp.transpose(out_nhwc, (0, 3, 1, 2))  # back to PyTorch NCHW

    jax.block_until_ready(out_nchw)
    assert out_nchw.shape == (N, C, H, W)
    assert bool(jnp.all(jnp.isfinite(out_nchw)))
    print("KERNEL_OK")
</pallas_src>

<mosaic_0001>
module attributes {stable_mosaic.version = 11 : i64} {
  func.func @_res_group_kernel(%arg0: i32, %arg1: memref<1x16x64xf32, #tpu.memory_space<vmem>>, %arg2: memref<15x192x64xbf16, #tpu.memory_space<vmem>>, %arg3: memref<15x64xf32, #tpu.memory_space<vmem>>, %arg4: memref<4x96x32xbf16, #tpu.memory_space<vmem>>, %arg5: memref<4x32xf32, #tpu.memory_space<vmem>>, %arg6: memref<24x16xf32, #tpu.memory_space<vmem>>, %arg7: memref<192x32xbf16, #tpu.memory_space<vmem>>, %arg8: memref<1x32xf32, #tpu.memory_space<vmem>>, %arg9: memref<96x128xbf16, #tpu.memory_space<vmem>>, %arg10: memref<1x64xf32, #tpu.memory_space<vmem>>, %arg11: memref<16x16xf32, #tpu.memory_space<vmem>>, %arg12: memref<64x64xbf16, #tpu.memory_space<vmem>>, %arg13: memref<1x64xf32, #tpu.memory_space<vmem>>, %arg14: memref<1x16x64xf32, #tpu.memory_space<vmem>>) attributes {dimension_semantics = [#tpu.dimension_semantics<parallel>], iteration_bounds = array<i64: 2>, scalar_prefetch = 0 : i64, scratch_operands = 0 : i64, tpu.core_type = #tpu.core_type<tc>, window_params = [{transform_indices = @transform_0, window_bounds = array<i64: 1, 16, 64>}, {pipeline_mode = #tpu.pipeline_mode<synchronous>, transform_indices = @transform_1, window_bounds = array<i64: 15, 192, 64>}, {pipeline_mode = #tpu.pipeline_mode<synchronous>, transform_indices = @transform_2, window_bounds = array<i64: 15, 64>}, {pipeline_mode = #tpu.pipeline_mode<synchronous>, transform_indices = @transform_3, window_bounds = array<i64: 4, 96, 32>}, {pipeline_mode = #tpu.pipeline_mode<synchronous>, transform_indices = @transform_4, window_bounds = array<i64: 4, 32>}, {pipeline_mode = #tpu.pipeline_mode<synchronous>, transform_indices = @transform_5, window_bounds = array<i64: 24, 16>}, {pipeline_mode = #tpu.pipeline_mode<synchronous>, transform_indices = @transform_6, window_bounds = array<i64: 192, 32>}, {pipeline_mode = #tpu.pipeline_mode<synchronous>, transform_indices = @transform_7, window_bounds = array<i64: 1, 32>}, {pipeline_mode = #tpu.pipeline_mode<synchronous>, transform_indices = @transform_8, window_bounds = array<i64: 96, 128>}, {pipeline_mode = #tpu.pipeline_mode<synchronous>, transform_indices = @transform_9, window_bounds = array<i64: 1, 64>}, {pipeline_mode = #tpu.pipeline_mode<synchronous>, transform_indices = @transform_10, window_bounds = array<i64: 16, 16>}, {pipeline_mode = #tpu.pipeline_mode<synchronous>, transform_indices = @transform_11, window_bounds = array<i64: 64, 64>}, {pipeline_mode = #tpu.pipeline_mode<synchronous>, transform_indices = @transform_12, window_bounds = array<i64: 1, 64>}, {transform_indices = @transform_13, window_bounds = array<i64: 1, 16, 64>}]} {
    %c0 = arith.constant 0 : index
    %c0_0 = arith.constant 0 : index
    %c0_1 = arith.constant 0 : index
    %0 = vector.load %arg1[%c0, %c0_0, %c0_1] : memref<1x16x64xf32, #tpu.memory_space<vmem>>, vector<1x16x64xf32>
    %1 = vector.shape_cast %0 : vector<1x16x64xf32> to vector<16x64xf32>
    %cst = arith.constant 0.000000e+00 : f32
    %2 = vector.broadcast %cst : f32 to vector<1x64xf32>
    %3 = vector.extract_strided_slice %1 {offsets = [0, 0], sizes = [15, 64], strides = [1, 1]} : vector<16x64xf32> to vector<15x64xf32>
    %4 = tpu.concatenate %2, %3 in 0 : vector<1x64xf32>, vector<15x64xf32> -> vector<16x64xf32>
    %5 = vector.extract_strided_slice %1 {offsets = [1, 0], sizes = [15, 64], strides = [1, 1]} : vector<16x64xf32> to vector<15x64xf32>
    %6 = tpu.concatenate %5, %2 in 0 : vector<15x64xf32>, vector<1x64xf32> -> vector<16x64xf32>
    %7 = tpu.concatenate %4, %1, %6 in 1 : vector<16x64xf32>, vector<16x64xf32>, vector<16x64xf32> -> vector<16x192xf32>
    %8 = arith.truncf %7 : vector<16x192xf32> to vector<16x192xbf16>
    %c0_2 = arith.constant 0 : index
    %c0_3 = arith.constant 0 : index
    %c0_4 = arith.constant 0 : index
    %9 = vector.load %arg2[%c0_2, %c0_3, %c0_4] : memref<15x192x64xbf16, #tpu.memory_space<vmem>>, vector<1x192x64xbf16>
    %10 = vector.shape_cast %9 : vector<1x192x64xbf16> to vector<192x64xbf16>
    %cst_5 = arith.constant dense<0.000000e+00> : vector<16x64xf32>
    %11 = tpu.matmul %8, %10, %cst_5 {dimension_numbers = #tpu.dot_dimension_numbers<[1], [0], [0], [1], [0, 0, 1, 1], [], []>} : vector<16x192xbf16>, vector<192x64xbf16>, vector<16x64xf32> -> vector<16x64xf32>
    %c0_6 = arith.constant 0 : index
    %c0_7 = arith.constant 0 : index
    %12 = vector.load %arg3[%c0_6, %c0_7] : memref<15x64xf32, #tpu.memory_space<vmem>>, vector<1x64xf32>
    %13 = vector.broadcast %12 : vector<1x64xf32> to vector<16x64xf32>
    %14 = arith.addf %11, %13 : vector<16x64xf32>
    %cst_8 = arith.constant 0.000000e+00 : f32
    %15 = vector.broadcast %cst_8 : f32 to vector<16x64xf32>
    %16 = arith.maximumf %14, %15 : vector<16x64xf32>
    %cst_9 = arith.constant 0.000000e+00 : f32
    %17 = vector.broadcast %cst_9 : f32 to vector<1x64xf32>
    %18 = vector.extract_strided_slice %16 {offsets = [0, 0], sizes = [15, 64], strides = [1, 1]} : vector<16x64xf32> to vector<15x64xf32>
    %19 = tpu.concatenate %17, %18 in 0 : vector<1x64xf32>, vector<15x64xf32> -> vector<16x64xf32>
    %20 = vector.extract_strided_slice %16 {offsets = [1, 0], sizes = [15, 64], strides = [1, 1]} : vector<16x64xf32> to vector<15x64xf32>
    %21 = tpu.concatenate %20, %17 in 0 : vector<15x64xf32>, vector<1x64xf32> -> vector<16x64xf32>
    %22 = tpu.concatenate %19, %16, %21 in 1 : vector<16x64xf32>, vector<16x64xf32>, vector<16x64xf32> -> vector<16x192xf32>
    %23 = arith.truncf %22 : vector<16x192xf32> to vector<16x192xbf16>
    %c1 = arith.constant 1 : index
    %c0_10 = arith.constant 0 : index
    %c0_11 = arith.constant 0 : index
    %24 = vector.load %arg2[%c1, %c0_10, %c0_11] : memref<15x192x64xbf16, #tpu.memory_space<vmem>>, vector<1x192x64xbf16>
    %25 = vector.shape_cast %24 : vector<1x192x64xbf16> to vector<192x64xbf16>
    %cst_12 = arith.constant dense<0.000000e+00> : vector<16x64xf32>
    %26 = tpu.matmul %23, %25, %cst_12 {dimension_numbers = #tpu.dot_dimension_numbers<[1], [0], [0], [1], [0, 0, 1, 1], [], []>} : vector<16x192xbf16>, vector<192x64xbf16>, vector<16x64xf32> -> vector<16x64xf32>
    %c1_13 = arith.constant 1 : index
    %c0_14 = arith.constant 0 : index
    %27 = vector.load %arg3[%c1_13, %c0_14] : memref<15x64xf32, #tpu.memory_space<vmem>>, vector<1x64xf32>
    %28 = vector.broadcast %27 : vector<1x64xf32> to vector<16x64xf32>
    %29 = arith.addf %26, %28 : vector<16x64xf32>
    %30 = arith.addf %1, %29 : vector<16x64xf32>
    %cst_15 = arith.constant 0.000000e+00 : f32
    %31 = vector.broadcast %cst_15 : f32 to vector<1x64xf32>
    %32 = vector.extract_strided_slice %30 {offsets = [0, 0], sizes = [15, 64], strides = [1, 1]} : vector<16x64xf32> to vector<15x64xf32>
    %33 = tpu.concatenate %31, %32 in 0 : vector<1x64xf32>, vector<15x64xf32> -> vector<16x64xf32>
    %34 = vector.extract_strided_slice %30 {offsets = [1, 0], sizes = [15, 64], strides = [1, 1]} : vector<16x64xf32> to vector<15x64xf32>
    %35 = tpu.concatenate %34, %31 in 0 : vector<15x64xf32>, vector<1x64xf32> -> vector<16x64xf32>
    %36 = tpu.concatenate %33, %30, %35 in 1 : vector<16x64xf32>, vector<16x64xf32>, vector<16x64xf32> -> vector<16x192xf32>
    %37 = arith.truncf %36 : vector<16x192xf32> to vector<16x192xbf16>
    %c2 = arith.constant 2 : index
    %c0_16 = arith.constant 0 : index
    %c0_17 = arith.constant 0 : index
    %38 = vector.load %arg2[%c2, %c0_16, %c0_17] : memref<15x192x64xbf16, #tpu.memory_space<vmem>>, vector<1x192x64xbf16>
    %39 = vector.shape_cast %38 : vector<1x192x64xbf16> to vector<192x64xbf16>
    %cst_18 = arith.constant dense<0.000000e+00> : vector<16x64xf32>
    %40 = tpu.matmul %37, %39, %cst_18 {dimension_numbers = #tpu.dot_dimension_numbers<[1], [0], [0], [1], [0, 0, 1, 1], [], []>} : vector<16x192xbf16>, vector<192x64xbf16>, vector<16x64xf32> -> vector<16x64xf32>
    %c2_19 = arith.constant 2 : index
    %c0_20 = arith.constant 0 : index
    %41 = vector.load %arg3[%c2_19, %c0_20] : memref<15x64xf32, #tpu.memory_space<vmem>>, vector<1x64xf32>
    %42 = vector.broadcast %41 : vector<1x64xf32> to vector<16x64xf32>
    %43 = arith.addf %40, %42 : vector<16x64xf32>
    %cst_21 = arith.constant 0.000000e+00 : f32
    %44 = vector.broadcast %cst_21 : f32 to vector<16x64xf32>
    %45 = arith.maximumf %43, %44 : vector<16x64xf32>
    %cst_22 = arith.constant 0.000000e+00 : f32
    %46 = vector.broadcast %cst_22 : f32 to vector<1x64xf32>
    %47 = vector.extract_strided_slice %45 {offsets = [0, 0], sizes = [15, 64], strides = [1, 1]} : vector<16x64xf32> to vector<15x64xf32>
    %48 = tpu.concatenate %46, %47 in 0 : vector<1x64xf32>, vector<15x64xf32> -> vector<16x64xf32>
    %49 = vector.extract_strided_slice %45 {offsets = [1, 0], sizes = [15, 64], strides = [1, 1]} : vector<16x64xf32> to vector<15x64xf32>
    %50 = tpu.concatenate %49, %46 in 0 : vector<15x64xf32>, vector<1x64xf32> -> vector<16x64xf32>
    %51 = tpu.concatenate %48, %45, %50 in 1 : vector<16x64xf32>, vector<16x64xf32>, vector<16x64xf32> -> vector<16x192xf32>
    %52 = arith.truncf %51 : vector<16x192xf32> to vector<16x192xbf16>
    %c3 = arith.constant 3 : index
    %c0_23 = arith.constant 0 : index
    %c0_24 = arith.constant 0 : index
    %53 = vector.load %arg2[%c3, %c0_23, %c0_24] : memref<15x192x64xbf16, #tpu.memory_space<vmem>>, vector<1x192x64xbf16>
    %54 = vector.shape_cast %53 : vector<1x192x64xbf16> to vector<192x64xbf16>
    %cst_25 = arith.constant dense<0.000000e+00> : vector<16x64xf32>
    %55 = tpu.matmul %52, %54, %cst_25 {dimension_numbers = #tpu.dot_dimension_numbers<[1], [0], [0], [1], [0, 0, 1, 1], [], []>} : vector<16x192xbf16>, vector<192x64xbf16>, vector<16x64xf32> -> vector<16x64xf32>
    %c3_26 = arith.constant 3 : index
    %c0_27 = arith.constant 0 : index
    %56 = vector.load %arg3[%c3_26, %c0_27] : memref<15x64xf32, #tpu.memory_space<vmem>>, vector<1x64xf32>
    %57 = vector.broadcast %56 : vector<1x64xf32> to vector<16x64xf32>
    %58 = arith.addf %55, %57 : vector<16x64xf32>
    %59 = arith.addf %30, %58 : vector<16x64xf32>
    %cst_28 = arith.constant 0.000000e+00 : f32
    %60 = vector.broadcast %cst_28 : f32 to vector<1x64xf32>
    %61 = vector.extract_strided_slice %59 {offsets = [0, 0], sizes = [15, 64], strides = [1, 1]} : vector<16x64xf32> to vector<15x64xf32>
    %62 = tpu.concatenate %60, %61 in 0 : vector<1x64xf32>, vector<15x64xf32> -> vector<16x64xf32>
    %63 = vector.extract_strided_slice %59 {offsets = [1, 0], sizes = [15, 64], strides = [1, 1]} : vector<16x64xf32> to vector<15x64xf32>
    %64 = tpu.concatenate %63, %60 in 0 : vector<15x64xf32>, vector<1x64xf32> -> vector<16x64xf32>
    %65 = tpu.concatenate %62, %59, %64 in 1 : vector<16x64xf32>, vector<16x64xf32>, vector<16x64xf32> -> vector<16x192xf32>
    %66 = arith.truncf %65 : vector<16x192xf32> to vector<16x192xbf16>
    %c4 = arith.constant 4 : index
    %c0_29 = arith.constant 0 : index
    %c0_30 = arith.constant 0 : index
    %67 = vector.load %arg2[%c4, %c0_29, %c0_30] : memref<15x192x64xbf16, #tpu.memory_space<vmem>>, vector<1x192x64xbf16>
    %68 = vector.shape_cast %67 : vector<1x192x64xbf16> to vector<192x64xbf16>
    %cst_31 = arith.constant dense<0.000000e+00> : vector<16x64xf32>
    %69 = tpu.matmul %66, %68, %cst_31 {dimension_numbers = #tpu.dot_dimension_numbers<[1], [0], [0], [1], [0, 0, 1, 1], [], []>} : vector<16x192xbf16>, vector<192x64xbf16>, vector<16x64xf32> -> vector<16x64xf32>
    %c4_32 = arith.constant 4 : index
    %c0_33 = arith.constant 0 : index
    %70 = vector.load %arg3[%c4_32, %c0_33] : memref<15x64xf32, #tpu.memory_space<vmem>>, vector<1x64xf32>
    %71 = vector.broadcast %70 : vector<1x64xf32> to vector<16x64xf32>
    %72 = arith.addf %69, %71 : vector<16x64xf32>
    %cst_34 = arith.constant 0.000000e+00 : f32
    %73 = vector.broadcast %cst_34 : f32 to vector<16x64xf32>
    %74 = arith.maximumf %72, %73 : vector<16x64xf32>
    %cst_35 = arith.constant 0.000000e+00 : f32
    %75 = vector.broadcast %cst_35 : f32 to vector<1x64xf32>
    %76 = vector.extract_strided_slice %74 {offsets = [0, 0], sizes = [15, 64], strides = [1, 1]} : vector<16x64xf32> to vector<15x64xf32>
    %77 = tpu.concatenate %75, %76 in 0 : vector<1x64xf32>, vector<15x64xf32> -> vector<16x64xf32>
    %78 = vector.extract_strided_slice %74 {offsets = [1, 0], sizes = [15, 64], strides = [1, 1]} : vector<16x64xf32> to vector<15x64xf32>
    %79 = tpu.concatenate %78, %75 in 0 : vector<15x64xf32>, vector<1x64xf32> -> vector<16x64xf32>
    %80 = tpu.concatenate %77, %74, %79 in 1 : vector<16x64xf32>, vector<16x64xf32>, vector<16x64xf32> -> vector<16x192xf32>
    %81 = arith.truncf %80 : vector<16x192xf32> to vector<16x192xbf16>
    %c5 = arith.constant 5 : index
    %c0_36 = arith.constant 0 : index
    %c0_37 = arith.constant 0 : index
    %82 = vector.load %arg2[%c5, %c0_36, %c0_37] : memref<15x192x64xbf16, #tpu.memory_space<vmem>>, vector<1x192x64xbf16>
    %83 = vector.shape_cast %82 : vector<1x192x64xbf16> to vector<192x64xbf16>
    %cst_38 = arith.constant dense<0.000000e+00> : vector<16x64xf32>
    %84 = tpu.matmul %81, %83, %cst_38 {dimension_numbers = #tpu.dot_dimension_numbers<[1], [0], [0], [1], [0, 0, 1, 1], [], []>} : vector<16x192xbf16>, vector<192x64xbf16>, vector<16x64xf32> -> vector<16x64xf32>
    %c5_39 = arith.constant 5 : index
    %c0_40 = arith.constant 0 : index
    %85 = vector.load %arg3[%c5_39, %c0_40] : memref<15x64xf32, #tpu.memory_space<vmem>>, vector<1x64xf32>
    %86 = vector.broadcast %85 : vector<1x64xf32> to vector<16x64xf32>
    %87 = arith.addf %84, %86 : vector<16x64xf32>
    %88 = arith.addf %59, %87 : vector<16x64xf32>
    %cst_41 = arith.constant 0.000000e+00 : f32
    %89 = vector.broadcast %cst_41 : f32 to vector<1x64xf32>
    %90 = vector.extract_strided_slice %30 {offsets = [0, 0], sizes = [15, 64], strides = [1, 1]} : vector<16x64xf32> to vector<15x64xf32>
    %91 = tpu.concatenate %89, %90 in 0 : vector<1x64xf32>, vector<15x64xf32> -> vector<16x64xf32>
    %92 = vector.extract_strided_slice %30 {offsets = [1, 0], sizes = [15, 64], strides = [1, 1]} : vector<16x64xf32> to vector<15x64xf32>
    %93 = tpu.concatenate %92, %89 in 0 : vector<15x64xf32>, vector<1x64xf32> -> vector<16x64xf32>
    %94 = tpu.concatenate %91, %30, %93 in 1 : vector<16x64xf32>, vector<16x64xf32>, vector<16x64xf32> -> vector<16x192xf32>
    %95 = arith.truncf %94 : vector<16x192xf32> to vector<16x192xbf16>
    %c6 = arith.constant 6 : index
    %c0_42 = arith.constant 0 : index
    %c0_43 = arith.constant 0 : index
    %96 = vector.load %arg2[%c6, %c0_42, %c0_43] : memref<15x192x64xbf16, #tpu.memory_space<vmem>>, vector<1x192x64xbf16>
    %97 = vector.shape_cast %96 : vector<1x192x64xbf16> to vector<192x64xbf16>
    %cst_44 = arith.constant dense<0.000000e+00> : vector<16x64xf32>
    %98 = tpu.matmul %95, %97, %cst_44 {dimension_numbers = #tpu.dot_dimension_numbers<[1], [0], [0], [1], [0, 0, 1, 1], [], []>} : vector<16x192xbf16>, vector<192x64xbf16>, vector<16x64xf32> -> vector<16x64xf32>
    %c6_45 = arith.constant 6 : index
    %c0_46 = arith.constant 0 : index
    %99 = vector.load %arg3[%c6_45, %c0_46] : memref<15x64xf32, #tpu.memory_space<vmem>>, vector<1x64xf32>
    %100 = vector.broadcast %99 : vector<1x64xf32> to vector<16x64xf32>
    %101 = arith.addf %98, %100 : vector<16x64xf32>
    %cst_47 = arith.constant 0.000000e+00 : f32
    %102 = vector.broadcast %cst_47 : f32 to vector<16x64xf32>
    %103 = arith.maximumf %101, %102 : vector<16x64xf32>
    %cst_48 = arith.constant 0.000000e+00 : f32
    %104 = vector.broadcast %cst_48 : f32 to vector<1x64xf32>
    %105 = vector.extract_strided_slice %103 {offsets = [0, 0], sizes = [15, 64], strides = [1, 1]} : vector<16x64xf32> to vector<15x64xf32>
    %106 = tpu.concatenate %104, %105 in 0 : vector<1x64xf32>, vector<15x64xf32> -> vector<16x64xf32>
    %107 = vector.extract_strided_slice %103 {offsets = [1, 0], sizes = [15, 64], strides = [1, 1]} : vector<16x64xf32> to vector<15x64xf32>
    %108 = tpu.concatenate %107, %104 in 0 : vector<15x64xf32>, vector<1x64xf32> -> vector<16x64xf32>
    %109 = tpu.concatenate %106, %103, %108 in 1 : vector<16x64xf32>, vector<16x64xf32>, vector<16x64xf32> -> vector<16x192xf32>
    %110 = arith.truncf %109 : vector<16x192xf32> to vector<16x192xbf16>
    %c7 = arith.constant 7 : index
    %c0_49 = arith.constant 0 : index
    %c0_50 = arith.constant 0 : index
    %111 = vector.load %arg2[%c7, %c0_49, %c0_50] : memref<15x192x64xbf16, #tpu.memory_space<vmem>>, vector<1x192x64xbf16>
    %112 = vector.shape_cast %111 : vector<1x192x64xbf16> to vector<192x64xbf16>
    %cst_51 = arith.constant dense<0.000000e+00> : vector<16x64xf32>
    %113 = tpu.matmul %110, %112, %cst_51 {dimension_numbers = #tpu.dot_dimension_numbers<[1], [0], [0], [1], [0, 0, 1, 1], [], []>} : vector<16x192xbf16>, vector<192x64xbf16>, vector<16x64xf32> -> vector<16x64xf32>
    %c7_52 = arith.constant 7 : index
    %c0_53 = arith.constant 0 : index
    %114 = vector.load %arg3[%c7_52, %c0_53] : memref<15x64xf32, #tpu.memory_space<vmem>>, vector<1x64xf32>
    %115 = vector.broadcast %114 : vector<1x64xf32> to vector<16x64xf32>
    %116 = arith.addf %113, %115 : vector<16x64xf32>
    %117 = arith.addf %30, %116 : vector<16x64xf32>
    %c0_54 = arith.constant 0 : index
    %c0_55 = arith.constant 0 : index
    %118 = vector.load %arg6[%c0_54, %c0_55] : memref<24x16xf32, #tpu.memory_space<vmem>>, vector<24x16xf32>
    %cst_56 = arith.constant dense<0.000000e+00> : vector<24x64xf32>
    %119 = tpu.matmul %118, %117, %cst_56 {dimension_numbers = #tpu.dot_dimension_numbers<[1], [0], [0], [1], [0, 0, 1, 1], [], []>} : vector<24x16xf32>, vector<16x64xf32>, vector<24x64xf32> -> vector<24x64xf32>
    %120 = vector.extract_strided_slice %119 {offsets = [0, 0], sizes = [8, 64], strides = [1, 1]} : vector<24x64xf32> to vector<8x64xf32>
    %121 = vector.extract_strided_slice %119 {offsets = [8, 0], sizes = [8, 64], strides = [1, 1]} : vector<24x64xf32> to vector<8x64xf32>
    %122 = vector.extract_strided_slice %119 {offsets = [16, 0], sizes = [8, 64], strides = [1, 1]} : vector<24x64xf32> to vector<8x64xf32>
    %123 = tpu.concatenate %120, %121, %122 in 1 : vector<8x64xf32>, vector<8x64xf32>, vector<8x64xf32> -> vector<8x192xf32>
    %124 = arith.truncf %123 : vector<8x192xf32> to vector<8x192xbf16>
    %c0_57 = arith.constant 0 : index
    %c0_58 = arith.constant 0 : index
    %125 = vector.load %arg7[%c0_57, %c0_58] : memref<192x32xbf16, #tpu.memory_space<vmem>>, vector<192x32xbf16>
    %cst_59 = arith.constant dense<0.000000e+00> : vector<8x32xf32>
    %126 = tpu.matmul %124, %125, %cst_59 {dimension_numbers = #tpu.dot_dimension_numbers<[1], [0], [0], [1], [0, 0, 1, 1], [], []>} : vector<8x192xbf16>, vector<192x32xbf16>, vector<8x32xf32> -> vector<8x32xf32>
    %c0_60 = arith.constant 0 : index
    %c0_61 = arith.constant 0 : index
    %127 = vector.load %arg8[%c0_60, %c0_61] : memref<1x32xf32, #tpu.memory_space<vmem>>, vector<1x32xf32>
    %128 = vector.broadcast %127 : vector<1x32xf32> to vector<8x32xf32>
    %129 = arith.addf %126, %128 : vector<8x32xf32>
    %cst_62 = arith.constant 0.000000e+00 : f32
    %130 = vector.broadcast %cst_62 : f32 to vector<1x32xf32>
    %131 = vector.extract_strided_slice %129 {offsets = [0, 0], sizes = [7, 32], strides = [1, 1]} : vector<8x32xf32> to vector<7x32xf32>
    %132 = tpu.concatenate %130, %131 in 0 : vector<1x32xf32>, vector<7x32xf32> -> vector<8x32xf32>
    %133 = vector.extract_strided_slice %129 {offsets = [1, 0], sizes = [7, 32], strides = [1, 1]} : vector<8x32xf32> to vector<7x32xf32>
    %134 = tpu.concatenate %133, %130 in 0 : vector<7x32xf32>, vector<1x32xf32> -> vector<8x32xf32>
    %135 = tpu.concatenate %132, %129, %134 in 1 : vector<8x32xf32>, vector<8x32xf32>, vector<8x32xf32> -> vector<8x96xf32>
    %136 = arith.truncf %135 : vector<8x96xf32> to vector<8x96xbf16>
    %c0_63 = arith.constant 0 : index
    %c0_64 = arith.constant 0 : index
    %c0_65 = arith.constant 0 : index
    %137 = vector.load %arg4[%c0_63, %c0_64, %c0_65] : memref<4x96x32xbf16, #tpu.memory_space<vmem>>, vector<1x96x32xbf16>
    %138 = vector.shape_cast %137 : vector<1x96x32xbf16> to vector<96x32xbf16>
    %cst_66 = arith.constant dense<0.000000e+00> : vector<8x32xf32>
    %139 = tpu.matmul %136, %138, %cst_66 {dimension_numbers = #tpu.dot_dimension_numbers<[1], [0], [0], [1], [0, 0, 1, 1], [], []>} : vector<8x96xbf16>, vector<96x32xbf16>, vector<8x32xf32> -> vector<8x32xf32>
    %c0_67 = arith.constant 0 : index
    %c0_68 = arith.constant 0 : index
    %140 = vector.load %arg5[%c0_67, %c0_68] : memref<4x32xf32, #tpu.memory_space<vmem>>, vector<1x32xf32>
    %141 = vector.broadcast %140 : vector<1x32xf32> to vector<8x32xf32>
    %142 = arith.addf %139, %141 : vector<8x32xf32>
    %cst_69 = arith.constant 0.000000e+00 : f32
    %143 = vector.broadcast %cst_69 : f32 to vector<8x32xf32>
    %144 = arith.maximumf %142, %143 : vector<8x32xf32>
    %cst_70 = arith.constant 0.000000e+00 : f32
    %145 = vector.broadcast %cst_70 : f32 to vector<1x32xf32>
    %146 = vector.extract_strided_slice %144 {offsets = [0, 0], sizes = [7, 32], strides = [1, 1]} : vector<8x32xf32> to vector<7x32xf32>
    %147 = tpu.concatenate %145, %146 in 0 : vector<1x32xf32>, vector<7x32xf32> -> vector<8x32xf32>
    %148 = vector.extract_strided_slice %144 {offsets = [1, 0], sizes = [7, 32], strides = [1, 1]} : vector<8x32xf32> to vector<7x32xf32>
    %149 = tpu.concatenate %148, %145 in 0 : vector<7x32xf32>, vector<1x32xf32> -> vector<8x32xf32>
    %150 = tpu.concatenate %147, %144, %149 in 1 : vector<8x32xf32>, vector<8x32xf32>, vector<8x32xf32> -> vector<8x96xf32>
    %151 = arith.truncf %150 : vector<8x96xf32> to vector<8x96xbf16>
    %c1_71 = arith.constant 1 : index
    %c0_72 = arith.constant 0 : index
    %c0_73 = arith.constant 0 : index
    %152 = vector.load %arg4[%c1_71, %c0_72, %c0_73] : memref<4x96x32xbf16, #tpu.memory_space<vmem>>, vector<1x96x32xbf16>
    %153 = vector.shape_cast %152 : vector<1x96x32xbf16> to vector<96x32xbf16>
    %cst_74 = arith.constant dense<0.000000e+00> : vector<8x32xf32>
    %154 = tpu.matmul %151, %153, %cst_74 {dimension_numbers = #tpu.dot_dimension_numbers<[1], [0], [0], [1], [0, 0, 1, 1], [], []>} : vector<8x96xbf16>, vector<96x32xbf16>, vector<8x32xf32> -> vector<8x32xf32>
    %c1_75 = arith.constant 1 : index
    %c0_76 = arith.constant 0 : index
    %155 = vector.load %arg5[%c1_75, %c0_76] : memref<4x32xf32, #tpu.memory_space<vmem>>, vector<1x32xf32>
    %156 = vector.broadcast %155 : vector<1x32xf32> to vector<8x32xf32>
    %157 = arith.addf %154, %156 : vector<8x32xf32>
    %158 = arith.addf %129, %157 : vector<8x32xf32>
    %cst_77 = arith.constant 0.000000e+00 : f32
    %159 = vector.broadcast %cst_77 : f32 to vector<1x32xf32>
    %160 = vector.extract_strided_slice %158 {offsets = [0, 0], sizes = [7, 32], strides = [1, 1]} : vector<8x32xf32> to vector<7x32xf32>
    %161 = tpu.concatenate %159, %160 in 0 : vector<1x32xf32>, vector<7x32xf32> -> vector<8x32xf32>
    %162 = vector.extract_strided_slice %158 {offsets = [1, 0], sizes = [7, 32], strides = [1, 1]} : vector<8x32xf32> to vector<7x32xf32>
    %163 = tpu.concatenate %162, %159 in 0 : vector<7x32xf32>, vector<1x32xf32> -> vector<8x32xf32>
    %164 = tpu.concatenate %161, %158, %163 in 1 : vector<8x32xf32>, vector<8x32xf32>, vector<8x32xf32> -> vector<8x96xf32>
    %165 = arith.truncf %164 : vector<8x96xf32> to vector<8x96xbf16>
    %c2_78 = arith.constant 2 : index
    %c0_79 = arith.constant 0 : index
    %c0_80 = arith.constant 0 : index
    %166 = vector.load %arg4[%c2_78, %c0_79, %c0_80] : memref<4x96x32xbf16, #tpu.memory_space<vmem>>, vector<1x96x32xbf16>
    %167 = vector.shape_cast %166 : vector<1x96x32xbf16> to vector<96x32xbf16>
    %cst_81 = arith.constant dense<0.000000e+00> : vector<8x32xf32>
    %168 = tpu.matmul %165, %167, %cst_81 {dimension_numbers = #tpu.dot_dimension_numbers<[1], [0], [0], [1], [0, 0, 1, 1], [], []>} : vector<8x96xbf16>, vector<96x32xbf16>, vector<8x32xf32> -> vector<8x32xf32>
    %c2_82 = arith.constant 2 : index
    %c0_83 = arith.constant 0 : index
    %169 = vector.load %arg5[%c2_82, %c0_83] : memref<4x32xf32, #tpu.memory_space<vmem>>, vector<1x32xf32>
    %170 = vector.broadcast %169 : vector<1x32xf32> to vector<8x32xf32>
    %171 = arith.addf %168, %170 : vector<8x32xf32>
    %cst_84 = arith.constant 0.000000e+00 : f32
    %172 = vector.broadcast %cst_84 : f32 to vector<8x32xf32>
    %173 = arith.maximumf %171, %172 : vector<8x32xf32>
    %cst_85 = arith.constant 0.000000e+00 : f32
    %174 = vector.broadcast %cst_85 : f32 to vector<1x32xf32>
    %175 = vector.extract_strided_slice %173 {offsets = [0, 0], sizes = [7, 32], strides = [1, 1]} : vector<8x32xf32> to vector<7x32xf32>
    %176 = tpu.concatenate %174, %175 in 0 : vector<1x32xf32>, vector<7x32xf32> -> vector<8x32xf32>
    %177 = vector.extract_strided_slice %173 {offsets = [1, 0], sizes = [7, 32], strides = [1, 1]} : vector<8x32xf32> to vector<7x32xf32>
    %178 = tpu.concatenate %177, %174 in 0 : vector<7x32xf32>, vector<1x32xf32> -> vector<8x32xf32>
    %179 = tpu.concatenate %176, %173, %178 in 1 : vector<8x32xf32>, vector<8x32xf32>, vector<8x32xf32> -> vector<8x96xf32>
    %180 = arith.truncf %179 : vector<8x96xf32> to vector<8x96xbf16>
    %c3_86 = arith.constant 3 : index
    %c0_87 = arith.constant 0 : index
    %c0_88 = arith.constant 0 : index
    %181 = vector.load %arg4[%c3_86, %c0_87, %c0_88] : memref<4x96x32xbf16, #tpu.memory_space<vmem>>, vector<1x96x32xbf16>
    %182 = vector.shape_cast %181 : vector<1x96x32xbf16> to vector<96x32xbf16>
    %cst_89 = arith.constant dense<0.000000e+00> : vector<8x32xf32>
    %183 = tpu.matmul %180, %182, %cst_89 {dimension_numbers = #tpu.dot_dimension_numbers<[1], [0], [0], [1], [0, 0, 1, 1], [], []>} : vector<8x96xbf16>, vector<96x32xbf16>, vector<8x32xf32> -> vector<8x32xf32>
    %c3_90 = arith.constant 3 : index
    %c0_91 = arith.constant 0 : index
    %184 = vector.load %arg5[%c3_90, %c0_91] : memref<4x32xf32, #tpu.memory_space<vmem>>, vector<1x32xf32>
    %185 = vector.broadcast %184 : vector<1x32xf32> to vector<8x32xf32>
    %186 = arith.addf %183, %185 : vector<8x32xf32>
    %187 = arith.addf %158, %186 : vector<8x32xf32>
    %cst_92 = arith.constant 0.000000e+00 : f32
    %188 = vector.broadcast %cst_92 : f32 to vector<1x32xf32>
    %189 = vector.extract_strided_slice %187 {offsets = [0, 0], sizes = [7, 32], strides = [1, 1]} : vector<8x32xf32> to vector<7x32xf32>
    %190 = tpu.concatenate %188, %189 in 0 : vector<1x32xf32>, vector<7x32xf32> -> vector<8x32xf32>
    %191 = vector.extract_strided_slice %187 {offsets = [1, 0], sizes = [7, 32], strides = [1, 1]} : vector<8x32xf32> to vector<7x32xf32>
    %192 = tpu.concatenate %191, %188 in 0 : vector<7x32xf32>, vector<1x32xf32> -> vector<8x32xf32>
    %193 = tpu.concatenate %190, %187, %192 in 1 : vector<8x32xf32>, vector<8x32xf32>, vector<8x32xf32> -> vector<8x96xf32>
    %194 = arith.truncf %193 : vector<8x96xf32> to vector<8x96xbf16>
    %c0_93 = arith.constant 0 : index
    %c0_94 = arith.constant 0 : index
    %195 = vector.load %arg9[%c0_93, %c0_94] : memref<96x128xbf16, #tpu.memory_space<vmem>>, vector<96x128xbf16>
    %cst_95 = arith.constant dense<0.000000e+00> : vector<8x128xf32>
    %196 = tpu.matmul %194, %195, %cst_95 {dimension_numbers = #tpu.dot_dimension_numbers<[1], [0], [0], [1], [0, 0, 1, 1], [], []>} : vector<8x96xbf16>, vector<96x128xbf16>, vector<8x128xf32> -> vector<8x128xf32>
    %197 = vector.extract_strided_slice %196 {offsets = [0, 0], sizes = [8, 64], strides = [1, 1]} : vector<8x128xf32> to vector<8x64xf32>
    %198 = vector.extract_strided_slice %196 {offsets = [0, 64], sizes = [8, 64], strides = [1, 1]} : vector<8x128xf32> to vector<8x64xf32>
    %199 = tpu.concatenate %197, %198 in 0 : vector<8x64xf32>, vector<8x64xf32> -> vector<16x64xf32>
    %c0_96 = arith.constant 0 : index
    %c0_97 = arith.constant 0 : index
    %200 = vector.load %arg11[%c0_96, %c0_97] : memref<16x16xf32, #tpu.memory_space<vmem>>, vector<16x16xf32>
    %cst_98 = arith.constant dense<0.000000e+00> : vector<16x64xf32>
    %201 = tpu.matmul %200, %199, %cst_98 {dimension_numbers = #tpu.dot_dimension_numbers<[1], [0], [0], [1], [0, 0, 1, 1], [], []>} : vector<16x16xf32>, vector<16x64xf32>, vector<16x64xf32> -> vector<16x64xf32>
    %c0_99 = arith.constant 0 : index
    %c0_100 = arith.constant 0 : index
    %202 = vector.load %arg10[%c0_99, %c0_100] : memref<1x64xf32, #tpu.memory_space<vmem>>, vector<1x64xf32>
    %203 = vector.broadcast %202 : vector<1x64xf32> to vector<16x64xf32>
    %204 = arith.addf %201, %203 : vector<16x64xf32>
    %205 = arith.addf %204, %117 : vector<16x64xf32>
    %cst_101 = arith.constant 0.000000e+00 : f32
    %206 = vector.broadcast %cst_101 : f32 to vector<1x64xf32>
    %207 = vector.extract_strided_slice %205 {offsets = [0, 0], sizes = [15, 64], strides = [1, 1]} : vector<16x64xf32> to vector<15x64xf32>
    %208 = tpu.concatenate %206, %207 in 0 : vector<1x64xf32>, vector<15x64xf32> -> vector<16x64xf32>
    %209 = vector.extract_strided_slice %205 {offsets = [1, 0], sizes = [15, 64], strides = [1, 1]} : vector<16x64xf32> to vector<15x64xf32>
    %210 = tpu.concatenate %209, %206 in 0 : vector<15x64xf32>, vector<1x64xf32> -> vector<16x64xf32>
    %211 = tpu.concatenate %208, %205, %210 in 1 : vector<16x64xf32>, vector<16x64xf32>, vector<16x64xf32> -> vector<16x192xf32>
    %212 = arith.truncf %211 : vector<16x192xf32> to vector<16x192xbf16>
    %c8 = arith.constant 8 : index
    %c0_102 = arith.constant 0 : index
    %c0_103 = arith.constant 0 : index
    %213 = vector.load %arg2[%c8, %c0_102, %c0_103] : memref<15x192x64xbf16, #tpu.memory_space<vmem>>, vector<1x192x64xbf16>
    %214 = vector.shape_cast %213 : vector<1x192x64xbf16> to vector<192x64xbf16>
    %cst_104 = arith.constant dense<0.000000e+00> : vector<16x64xf32>
    %215 = tpu.matmul %212, %214, %cst_104 {dimension_numbers = #tpu.dot_dimension_numbers<[1], [0], [0], [1], [0, 0, 1, 1], [], []>} : vector<16x192xbf16>, vector<192x64xbf16>, vector<16x64xf32> -> vector<16x64xf32>
    %c8_105 = arith.constant 8 : index
    %c0_106 = arith.constant 0 : index
    %216 = vector.load %arg3[%c8_105, %c0_106] : memref<15x64xf32, #tpu.memory_space<vmem>>, vector<1x64xf32>
    %217 = vector.broadcast %216 : vector<1x64xf32> to vector<16x64xf32>
    %218 = arith.addf %215, %217 : vector<16x64xf32>
    %cst_107 = arith.constant 0.000000e+00 : f32
    %219 = vector.broadcast %cst_107 : f32 to vector<16x64xf32>
    %220 = arith.maximumf %218, %219 : vector<16x64xf32>
    %cst_108 = arith.constant 0.000000e+00 : f32
    %221 = vector.broadcast %cst_108 : f32 to vector<1x64xf32>
    %222 = vector.extract_strided_slice %220 {offsets = [0, 0], sizes = [15, 64], strides = [1, 1]} : vector<16x64xf32> to vector<15x64xf32>
    %223 = tpu.concatenate %221, %222 in 0 : vector<1x64xf32>, vector<15x64xf32> -> vector<16x64xf32>
    %224 = vector.extract_strided_slice %220 {offsets = [1, 0], sizes = [15, 64], strides = [1, 1]} : vector<16x64xf32> to vector<15x64xf32>
    %225 = tpu.concatenate %224, %221 in 0 : vector<15x64xf32>, vector<1x64xf32> -> vector<16x64xf32>
    %226 = tpu.concatenate %223, %220, %225 in 1 : vector<16x64xf32>, vector<16x64xf32>, vector<16x64xf32> -> vector<16x192xf32>
    %227 = arith.truncf %226 : vector<16x192xf32> to vector<16x192xbf16>
    %c9 = arith.constant 9 : index
    %c0_109 = arith.constant 0 : index
    %c0_110 = arith.constant 0 : index
    %228 = vector.load %arg2[%c9, %c0_109, %c0_110] : memref<15x192x64xbf16, #tpu.memory_space<vmem>>, vector<1x192x64xbf16>
    %229 = vector.shape_cast %228 : vector<1x192x64xbf16> to vector<192x64xbf16>
    %cst_111 = arith.constant dense<0.000000e+00> : vector<16x64xf32>
    %230 = tpu.matmul %227, %229, %cst_111 {dimension_numbers = #tpu.dot_dimension_numbers<[1], [0], [0], [1], [0, 0, 1, 1], [], []>} : vector<16x192xbf16>, vector<192x64xbf16>, vector<16x64xf32> -> vector<16x64xf32>
    %c9_112 = arith.constant 9 : index
    %c0_113 = arith.constant 0 : index
    %231 = vector.load %arg3[%c9_112, %c0_113] : memref<15x64xf32, #tpu.memory_space<vmem>>, vector<1x64xf32>
    %232 = vector.broadcast %231 : vector<1x64xf32> to vector<16x64xf32>
    %233 = arith.addf %230, %232 : vector<16x64xf32>
    %234 = arith.addf %205, %233 : vector<16x64xf32>
    %235 = arith.truncf %234 : vector<16x64xf32> to vector<16x64xbf16>
    %c0_114 = arith.constant 0 : index
    %c0_115 = arith.constant 0 : index
    %236 = vector.load %arg12[%c0_114, %c0_115] : memref<64x64xbf16, #tpu.memory_space<vmem>>, vector<64x64xbf16>
    %cst_116 = arith.constant dense<0.000000e+00> : vector<16x64xf32>
    %237 = tpu.matmul %235, %236, %cst_116 {dimension_numbers = #tpu.dot_dimension_numbers<[1], [0], [0], [1], [0, 0, 1, 1], [], []>} : vector<16x64xbf16>, vector<64x64xbf16>, vector<16x64xf32> -> vector<16x64xf32>
    %c0_117 = arith.constant 0 : index
    %c0_118 = arith.constant 0 : index
    %238 = vector.load %arg13[%c0_117, %c0_118] : memref<1x64xf32, #tpu.memory_space<vmem>>, vector<1x64xf32>
    %239 = vector.broadcast %238 : vector<1x64xf32> to vector<16x64xf32>
    %240 = arith.addf %237, %239 : vector<16x64xf32>
    %cst_119 = arith.constant 0.000000e+00 : f32
    %241 = vector.broadcast %cst_119 : f32 to vector<16x64xf32>
    %242 = arith.subf %241, %240 : vector<16x64xf32>
    %243 = math.exp %242 : vector<16x64xf32>
    %cst_120 = arith.constant 1.000000e+00 : f32
    %244 = vector.broadcast %cst_120 : f32 to vector<16x64xf32>
    %245 = arith.addf %244, %243 : vector<16x64xf32>
    %cst_121 = arith.constant 1.000000e+00 : f32
    %246 = vector.broadcast %cst_121 : f32 to vector<16x64xf32>
    %247 = arith.divf %246, %245 : vector<16x64xf32>
    %248 = arith.mulf %88, %247 : vector<16x64xf32>
    %249 = arith.addf %248, %30 : vector<16x64xf32>
    %cst_122 = arith.constant 0.000000e+00 : f32
    %250 = vector.broadcast %cst_122 : f32 to vector<1x64xf32>
    %251 = vector.extract_strided_slice %249 {offsets = [0, 0], sizes = [15, 64], strides = [1, 1]} : vector<16x64xf32> to vector<15x64xf32>
    %252 = tpu.concatenate %250, %251 in 0 : vector<1x64xf32>, vector<15x64xf32> -> vector<16x64xf32>
    %253 = vector.extract_strided_slice %249 {offsets = [1, 0], sizes = [15, 64], strides = [1, 1]} : vector<16x64xf32> to vector<15x64xf32>
    %254 = tpu.concatenate %253, %250 in 0 : vector<15x64xf32>, vector<1x64xf32> -> vector<16x64xf32>
    %255 = tpu.concatenate %252, %249, %254 in 1 : vector<16x64xf32>, vector<16x64xf32>, vector<16x64xf32> -> vector<16x192xf32>
    %256 = arith.truncf %255 : vector<16x192xf32> to vector<16x192xbf16>
    %c10 = arith.constant 10 : index
    %c0_123 = arith.constant 0 : index
    %c0_124 = arith.constant 0 : index
    %257 = vector.load %arg2[%c10, %c0_123, %c0_124] : memref<15x192x64xbf16, #tpu.memory_space<vmem>>, vector<1x192x64xbf16>
    %258 = vector.shape_cast %257 : vector<1x192x64xbf16> to vector<192x64xbf16>
    %cst_125 = arith.constant dense<0.000000e+00> : vector<16x64xf32>
    %259 = tpu.matmul %256, %258, %cst_125 {dimension_numbers = #tpu.dot_dimension_numbers<[1], [0], [0], [1], [0, 0, 1, 1], [], []>} : vector<16x192xbf16>, vector<192x64xbf16>, vector<16x64xf32> -> vector<16x64xf32>
    %c10_126 = arith.constant 10 : index
    %c0_127 = arith.constant 0 : index
    %260 = vector.load %arg3[%c10_126, %c0_127] : memref<15x64xf32, #tpu.memory_space<vmem>>, vector<1x64xf32>
    %261 = vector.broadcast %260 : vector<1x64xf32> to vector<16x64xf32>
    %262 = arith.addf %259, %261 : vector<16x64xf32>
    %cst_128 = arith.constant 0.000000e+00 : f32
    %263 = vector.broadcast %cst_128 : f32 to vector<16x64xf32>
    %264 = arith.maximumf %262, %263 : vector<16x64xf32>
    %cst_129 = arith.constant 0.000000e+00 : f32
    %265 = vector.broadcast %cst_129 : f32 to vector<1x64xf32>
    %266 = vector.extract_strided_slice %264 {offsets = [0, 0], sizes = [15, 64], strides = [1, 1]} : vector<16x64xf32> to vector<15x64xf32>
    %267 = tpu.concatenate %265, %266 in 0 : vector<1x64xf32>, vector<15x64xf32> -> vector<16x64xf32>
    %268 = vector.extract_strided_slice %264 {offsets = [1, 0], sizes = [15, 64], strides = [1, 1]} : vector<16x64xf32> to vector<15x64xf32>
    %269 = tpu.concatenate %268, %265 in 0 : vector<15x64xf32>, vector<1x64xf32> -> vector<16x64xf32>
    %270 = tpu.concatenate %267, %264, %269 in 1 : vector<16x64xf32>, vector<16x64xf32>, vector<16x64xf32> -> vector<16x192xf32>
    %271 = arith.truncf %270 : vector<16x192xf32> to vector<16x192xbf16>
    %c11 = arith.constant 11 : index
    %c0_130 = arith.constant 0 : index
    %c0_131 = arith.constant 0 : index
    %272 = vector.load %arg2[%c11, %c0_130, %c0_131] : memref<15x192x64xbf16, #tpu.memory_space<vmem>>, vector<1x192x64xbf16>
    %273 = vector.shape_cast %272 : vector<1x192x64xbf16> to vector<192x64xbf16>
    %cst_132 = arith.constant dense<0.000000e+00> : vector<16x64xf32>
    %274 = tpu.matmul %271, %273, %cst_132 {dimension_numbers = #tpu.dot_dimension_numbers<[1], [0], [0], [1], [0, 0, 1, 1], [], []>} : vector<16x192xbf16>, vector<192x64xbf16>, vector<16x64xf32> -> vector<16x64xf32>
    %c11_133 = arith.constant 11 : index
    %c0_134 = arith.constant 0 : index
    %275 = vector.load %arg3[%c11_133, %c0_134] : memref<15x64xf32, #tpu.memory_space<vmem>>, vector<1x64xf32>
    %276 = vector.broadcast %275 : vector<1x64xf32> to vector<16x64xf32>
    %277 = arith.addf %274, %276 : vector<16x64xf32>
    %278 = arith.addf %249, %277 : vector<16x64xf32>
    %cst_135 = arith.constant 0.000000e+00 : f32
    %279 = vector.broadcast %cst_135 : f32 to vector<1x64xf32>
    %280 = vector.extract_strided_slice %278 {offsets = [0, 0], sizes = [15, 64], strides = [1, 1]} : vector<16x64xf32> to vector<15x64xf32>
    %281 = tpu.concatenate %279, %280 in 0 : vector<1x64xf32>, vector<15x64xf32> -> vector<16x64xf32>
    %282 = vector.extract_strided_slice %278 {offsets = [1, 0], sizes = [15, 64], strides = [1, 1]} : vector<16x64xf32> to vector<15x64xf32>
    %283 = tpu.concatenate %282, %279 in 0 : vector<15x64xf32>, vector<1x64xf32> -> vector<16x64xf32>
    %284 = tpu.concatenate %281, %278, %283 in 1 : vector<16x64xf32>, vector<16x64xf32>, vector<16x64xf32> -> vector<16x192xf32>
    %285 = arith.truncf %284 : vector<16x192xf32> to vector<16x192xbf16>
    %c12 = arith.constant 12 : index
    %c0_136 = arith.constant 0 : index
    %c0_137 = arith.constant 0 : index
    %286 = vector.load %arg2[%c12, %c0_136, %c0_137] : memref<15x192x64xbf16, #tpu.memory_space<vmem>>, vector<1x192x64xbf16>
    %287 = vector.shape_cast %286 : vector<1x192x64xbf16> to vector<192x64xbf16>
    %cst_138 = arith.constant dense<0.000000e+00> : vector<16x64xf32>
    %288 = tpu.matmul %285, %287, %cst_138 {dimension_numbers = #tpu.dot_dimension_numbers<[1], [0], [0], [1], [0, 0, 1, 1], [], []>} : vector<16x192xbf16>, vector<192x64xbf16>, vector<16x64xf32> -> vector<16x64xf32>
    %c12_139 = arith.constant 12 : index
    %c0_140 = arith.constant 0 : index
    %289 = vector.load %arg3[%c12_139, %c0_140] : memref<15x64xf32, #tpu.memory_space<vmem>>, vector<1x64xf32>
    %290 = vector.broadcast %289 : vector<1x64xf32> to vector<16x64xf32>
    %291 = arith.addf %288, %290 : vector<16x64xf32>
    %cst_141 = arith.constant 0.000000e+00 : f32
    %292 = vector.broadcast %cst_141 : f32 to vector<16x64xf32>
    %293 = arith.maximumf %291, %292 : vector<16x64xf32>
    %cst_142 = arith.constant 0.000000e+00 : f32
    %294 = vector.broadcast %cst_142 : f32 to vector<1x64xf32>
    %295 = vector.extract_strided_slice %293 {offsets = [0, 0], sizes = [15, 64], strides = [1, 1]} : vector<16x64xf32> to vector<15x64xf32>
    %296 = tpu.concatenate %294, %295 in 0 : vector<1x64xf32>, vector<15x64xf32> -> vector<16x64xf32>
    %297 = vector.extract_strided_slice %293 {offsets = [1, 0], sizes = [15, 64], strides = [1, 1]} : vector<16x64xf32> to vector<15x64xf32>
    %298 = tpu.concatenate %297, %294 in 0 : vector<15x64xf32>, vector<1x64xf32> -> vector<16x64xf32>
    %299 = tpu.concatenate %296, %293, %298 in 1 : vector<16x64xf32>, vector<16x64xf32>, vector<16x64xf32> -> vector<16x192xf32>
    %300 = arith.truncf %299 : vector<16x192xf32> to vector<16x192xbf16>
    %c13 = arith.constant 13 : index
    %c0_143 = arith.constant 0 : index
    %c0_144 = arith.constant 0 : index
    %301 = vector.load %arg2[%c13, %c0_143, %c0_144] : memref<15x192x64xbf16, #tpu.memory_space<vmem>>, vector<1x192x64xbf16>
    %302 = vector.shape_cast %301 : vector<1x192x64xbf16> to vector<192x64xbf16>
    %cst_145 = arith.constant dense<0.000000e+00> : vector<16x64xf32>
    %303 = tpu.matmul %300, %302, %cst_145 {dimension_numbers = #tpu.dot_dimension_numbers<[1], [0], [0], [1], [0, 0, 1, 1], [], []>} : vector<16x192xbf16>, vector<192x64xbf16>, vector<16x64xf32> -> vector<16x64xf32>
    %c13_146 = arith.constant 13 : index
    %c0_147 = arith.constant 0 : index
    %304 = vector.load %arg3[%c13_146, %c0_147] : memref<15x64xf32, #tpu.memory_space<vmem>>, vector<1x64xf32>
    %305 = vector.broadcast %304 : vector<1x64xf32> to vector<16x64xf32>
    %306 = arith.addf %303, %305 : vector<16x64xf32>
    %307 = arith.addf %278, %306 : vector<16x64xf32>
    %cst_148 = arith.constant 0.000000e+00 : f32
    %308 = vector.broadcast %cst_148 : f32 to vector<1x64xf32>
    %309 = vector.extract_strided_slice %307 {offsets = [0, 0], sizes = [15, 64], strides = [1, 1]} : vector<16x64xf32> to vector<15x64xf32>
    %310 = tpu.concatenate %308, %309 in 0 : vector<1x64xf32>, vector<15x64xf32> -> vector<16x64xf32>
    %311 = vector.extract_strided_slice %307 {offsets = [1, 0], sizes = [15, 64], strides = [1, 1]} : vector<16x64xf32> to vector<15x64xf32>
    %312 = tpu.concatenate %311, %308 in 0 : vector<15x64xf32>, vector<1x64xf32> -> vector<16x64xf32>
    %313 = tpu.concatenate %310, %307, %312 in 1 : vector<16x64xf32>, vector<16x64xf32>, vector<16x64xf32> -> vector<16x192xf32>
    %314 = arith.truncf %313 : vector<16x192xf32> to vector<16x192xbf16>
    %c14 = arith.constant 14 : index
    %c0_149 = arith.constant 0 : index
    %c0_150 = arith.constant 0 : index
    %315 = vector.load %arg2[%c14, %c0_149, %c0_150] : memref<15x192x64xbf16, #tpu.memory_space<vmem>>, vector<1x192x64xbf16>
    %316 = vector.shape_cast %315 : vector<1x192x64xbf16> to vector<192x64xbf16>
    %cst_151 = arith.constant dense<0.000000e+00> : vector<16x64xf32>
    %317 = tpu.matmul %314, %316, %cst_151 {dimension_numbers = #tpu.dot_dimension_numbers<[1], [0], [0], [1], [0, 0, 1, 1], [], []>} : vector<16x192xbf16>, vector<192x64xbf16>, vector<16x64xf32> -> vector<16x64xf32>
    %c14_152 = arith.constant 14 : index
    %c0_153 = arith.constant 0 : index
    %318 = vector.load %arg3[%c14_152, %c0_153] : memref<15x64xf32, #tpu.memory_space<vmem>>, vector<1x64xf32>
    %319 = vector.broadcast %318 : vector<1x64xf32> to vector<16x64xf32>
    %320 = arith.addf %317, %319 : vector<16x64xf32>
    %c0_154 = arith.constant 0 : index
    %c0_155 = arith.constant 0 : index
    %c0_156 = arith.constant 0 : index
    %321 = vector.load %arg14[%c0_154, %c0_155, %c0_156] : memref<1x16x64xf32, #tpu.memory_space<vmem>>, vector<1x16x64xf32>
    %322 = vector.shape_cast %321 : vector<1x16x64xf32> to vector<16x64xf32>
    %323 = vector.shape_cast %320 : vector<16x64xf32> to vector<1x16x64xf32>
    tpu.vector_store %arg14[%c0_154, %c0_155, %c0_156], %323 {strides = array<i32>} : memref<1x16x64xf32, #tpu.memory_space<vmem>>, vector<1x16x64xf32>,
    return
  }
  func.func @transform_0(%arg0: i32) -> (i32, i32, i32) {
    %c0_i32 = arith.constant 0 : i32
    %c0_i32_0 = arith.constant 0 : i32
    %c0_i32_1 = arith.constant 0 : i32
    return %arg0, %c0_i32, %c0_i32_0 : i32, i32, i32
  }
  func.func @transform_1(%arg0: i32) -> (i32, i32, i32) {
    %c0_i32 = arith.constant 0 : i32
    %c0_i32_0 = arith.constant 0 : i32
    %c0_i32_1 = arith.constant 0 : i32
    %c0_i32_2 = arith.constant 0 : i32
    return %c0_i32, %c0_i32_0, %c0_i32_1 : i32, i32, i32
  }
  func.func @transform_2(%arg0: i32) -> (i32, i32) {
    %c0_i32 = arith.constant 0 : i32
    %c0_i32_0 = arith.constant 0 : i32
    %c0_i32_1 = arith.constant 0 : i32
    return %c0_i32, %c0_i32_0 : i32, i32
  }
  func.func @transform_3(%arg0: i32) -> (i32, i32, i32) {
    %c0_i32 = arith.constant 0 : i32
    %c0_i32_0 = arith.constant 0 : i32
    %c0_i32_1 = arith.constant 0 : i32
    %c0_i32_2 = arith.constant 0 : i32
    return %c0_i32, %c0_i32_0, %c0_i32_1 : i32, i32, i32
  }
  func.func @transform_4(%arg0: i32) -> (i32, i32) {
    %c0_i32 = arith.constant 0 : i32
    %c0_i32_0 = arith.constant 0 : i32
    %c0_i32_1 = arith.constant 0 : i32
    return %c0_i32, %c0_i32_0 : i32, i32
  }
  func.func @transform_5(%arg0: i32) -> (i32, i32) {
    %c0_i32 = arith.constant 0 : i32
    %c0_i32_0 = arith.constant 0 : i32
    %c0_i32_1 = arith.constant 0 : i32
    return %c0_i32, %c0_i32_0 : i32, i32
  }
  func.func @transform_6(%arg0: i32) -> (i32, i32) {
    %c0_i32 = arith.constant 0 : i32
    %c0_i32_0 = arith.constant 0 : i32
    %c0_i32_1 = arith.constant 0 : i32
    return %c0_i32, %c0_i32_0 : i32, i32
  }
  func.func @transform_7(%arg0: i32) -> (i32, i32) {
    %c0_i32 = arith.constant 0 : i32
    %c0_i32_0 = arith.constant 0 : i32
    %c0_i32_1 = arith.constant 0 : i32
    return %c0_i32, %c0_i32_0 : i32, i32
  }
  func.func @transform_8(%arg0: i32) -> (i32, i32) {
    %c0_i32 = arith.constant 0 : i32
    %c0_i32_0 = arith.constant 0 : i32
    %c0_i32_1 = arith.constant 0 : i32
    return %c0_i32, %c0_i32_0 : i32, i32
  }
  func.func @transform_9(%arg0: i32) -> (i32, i32) {
    %c0_i32 = arith.constant 0 : i32
    %c0_i32_0 = arith.constant 0 : i32
    %c0_i32_1 = arith.constant 0 : i32
    return %c0_i32, %c0_i32_0 : i32, i32
  }
  func.func @transform_10(%arg0: i32) -> (i32, i32) {
    %c0_i32 = arith.constant 0 : i32
    %c0_i32_0 = arith.constant 0 : i32
    %c0_i32_1 = arith.constant 0 : i32
    return %c0_i32, %c0_i32_0 : i32, i32
  }
  func.func @transform_11(%arg0: i32) -> (i32, i32) {
    %c0_i32 = arith.constant 0 : i32
    %c0_i32_0 = arith.constant 0 : i32
    %c0_i32_1 = arith.constant 0 : i32
    return %c0_i32, %c0_i32_0 : i32, i32
  }
  func.func @transform_12(%arg0: i32) -> (i32, i32) {
    %c0_i32 = arith.constant 0 : i32
    %c0_i32_0 = arith.constant 0 : i32
    %c0_i32_1 = arith.constant 0 : i32
    return %c0_i32, %c0_i32_0 : i32, i32
  }
  func.func @transform_13(%arg0: i32) -> (i32, i32, i32) {
    %c0_i32 = arith.constant 0 : i32
    %c0_i32_0 = arith.constant 0 : i32
    %c0_i32_1 = arith.constant 0 : i32
    return %arg0, %c0_i32, %c0_i32_0 : i32, i32, i32
  }
}

</mosaic_0001>

<bundles_post_ra>
// kernel: res_group_forward.1
= control target key start
LH: loop header
LB: loop body
LE: loop exit
PB: predicated region body
PF: predicated region fallthrough
CT: control target
= control target key end

     0   :  { %s5297_s25 = smov 0   ;;  %s6588_s0 = inlined_call_operand.vmem [shape: f32[2,16,64], index: 0, kind: input, shape index: {}]   ;;  %s6589_s1 = inlined_call_operand.vmem [shape: bf16[15,192,64], index: 1, kind: input, shape index: {}]   ;;  %s6590_s2 = inlined_call_operand.vmem [shape: f32[15,64], index: 2, kind: input, shape index: {}]   ;;  %s6591_s3 = inlined_call_operand.vmem [shape: bf16[4,96,32], index: 3, kind: input, shape index: {}]   ;;  %s6592_s4 = inlined_call_operand.vmem [shape: f32[4,32], index: 4, kind: input, shape index: {}]   ;;  %s6593_s5 = inlined_call_operand.vmem [shape: f32[24,16], index: 5, kind: input, shape index: {}]   ;;  %s6594_s6 = inlined_call_operand.vmem [shape: bf16[192,32], index: 6, kind: input, shape index: {}]   ;;  %s6595_s7 = inlined_call_operand.vmem [shape: f32[1,32], index: 7, kind: input, shape index: {}]   ;;  %s6596_s8 = inlined_call_operand.vmem [shape: bf16[96,128], index: 8, kind: input, shape index: {}]   ;;  %s6597_s9 = inlined_call_operand.vmem [shape: f32[1,64], index: 9, kind: input, shape index: {}]   ;;  %s6598_s10 = inlined_call_operand.vmem [shape: f32[16,16], index: 10, kind: input, shape index: {}]   ;;  %s6599_s11 = inlined_call_operand.vmem [shape: bf16[64,64], index: 11, kind: input, shape index: {}]   ;;  %s6600_s12 = inlined_call_operand.vmem [shape: f32[1,64], index: 12, kind: input, shape index: {}]   ;;  %s6601_s13 = inlined_call_operand.vmem [shape: f32[2,16,64], index: 13, kind: output, shape index: {}]  }
   0x1 LB: > { %s4065_s26 = sadd.s32 4294967295, %s5219_s25   ;;  %p4069_p0 = scmp.ge.s32.totalorder %s5219_s25, 1  ;;  %s5219_s25 = sphi %s5297_s25, %s23_s25  }
   0x2   : > { %p387_p1 = scmp.lt.s32.totalorder %s5219_s25, 3 }
   0x4   : > { %p388_p2 = pnand %p4069_p0, %p387_p1 }
   0x5   : > { %p431_p3 = scmp.lt.s32.totalorder (!%p388_p2), %s4065_s26, 1  ;;  %v4977_v0 = vld [vmem:[%s6589_s1] sm:$0xff] (!%p388_p2)   ;;  %v5221_v1 = vmov (!%p388_p2), 0   ;;  %v4978_v2 = vld [vmem:[%s6589_s1 + $0x8] sm:$0xff] (!%p388_p2)   ;;  %v4979_v5 = vld [vmem:[%s6589_s1 + $0x10] sm:$0xff] (!%p388_p2)   ;;  %vm453_vm0 = vcmask (!%p388_p2), 1046528  }
   0x6   : > { %391 = sbr.rel (%p388_p2) target bundleno = 7306 (0x1c8a), region = 72  ;;  %575 = vmatprep.subr.bf16.mxu0 (!%p388_p2), %v5221_v1  ;;  %747 = vmatprep.subr.bf16.mxu1 (!%p388_p2), %v5221_v1  ;;  %s5222_s20 = smov (!%p388_p2), 64   ;;  %v4980_v8 = vld [vmem:[%s6589_s1 + $0x18] sm:$0xff] (!%p388_p2)   ;;  %vm446_vm1 = vcmask (!%p388_p2), 1040384   ;;  %v4981_v13 = vld [vmem:[%s6589_s1 + $0x20] sm:$0xff] (!%p388_p2)   ;;  %vm466_vm2 = vcmask (!%p388_p2), 523264  }
   0x7   : > { %576 = vmatpush1.bf16.msra.mxu0 (!%p388_p2), %v4977_v0  ;;  %v4982_v17 = vld [vmem:[%s6589_s1 + $0x28] sm:$0xff] (!%p388_p2)   ;;  %v4983_v18 = vld [vmem:[%s6589_s1 + $0x30] sm:$0xff] (!%p388_p2)   ;;  %v4984_v19 = vld [vmem:[%s6589_s1 + $0x38] sm:$0xff] (!%p388_p2)   ;;  %vm5224_vm3 = vmmov (!%p388_p2), 0   ;;  %vm1798_vm4 = vcmask (!%p388_p2), 130048   ;;  %s5226_s23 = smov (!%p388_p2), 32  }
   0x8   : > { %577 = vmatprep.subr.bf16.mxu0 (!%p388_p2), %v5221_v1  ;;  %v4985_v20 = vld [vmem:[%s6589_s1 + $0x40] sm:$0xff] (!%p388_p2)   ;;  %v4986_v21 = vld [vmem:[%s6589_s1 + $0x48] sm:$0xff] (!%p388_p2)   ;;  %v4987_v22 = vld [vmem:[%s6589_s1 + $0x50] sm:$0xff] (!%p388_p2)   ;;  %vm2055_vm5 = vcmask (!%p388_p2), 261120   ;;  %vm2112_vm6 = vcmask (!%p388_p2), 785408  }
   0x9   : > { %v4988_v23 = vld [vmem:[%s6589_s1 + $0x58] sm:$0xff] (!%p388_p2)   ;;  %v4989_v31 = vld [vmem:[%s6589_s1 + $0x60] sm:$0xff] (!%p388_p2)   ;;  %v4990_v32 = vld [vmem:[%s6589_s1 + $0x68] sm:$0xff] (!%p388_p2)  }
   0xa   : > { %748 = vmatpush1.bf16.msra.mxu1 (!%p388_p2), %v4989_v31  ;;  %v4991_v33 = vld [vmem:[%s6589_s1 + $0x70] sm:$0xff] (!%p388_p2)   ;;  %v4992_v34 = vld [vmem:[%s6589_s1 + $0x78] sm:$0xff] (!%p388_p2)   ;;  %v4993_v35 = vld [vmem:[%s6589_s1 + $0x80] sm:$0xff] (!%p388_p2)  }
   0xb   : > { %578 = vmatpush1.bf16.msra.mxu0 (!%p388_p2), %v4978_v2  ;;  %749 = vmatprep.subr.bf16.mxu1 (!%p388_p2), %v5221_v1  ;;  %v4994_v36 = vld [vmem:[%s6589_s1 + $0x88] sm:$0xff] (!%p388_p2)   ;;  %v4995_v37 = vld [vmem:[%s6589_s1 + $0x90] sm:$0xff] (!%p388_p2)   ;;  %v4996_v38 = vld [vmem:[%s6589_s1 + $0x98] sm:$0xff] (!%p388_p2)  }
   0xc   : > { %579 = vmatprep.subr.bf16.mxu0 (!%p388_p2), %v5221_v1  ;;  %v4997_v39 = vld [vmem:[%s6589_s1 + $0xa0] sm:$0xff] (!%p388_p2)   ;;  %v4998_v40 = vld [vmem:[%s6589_s1 + $0xa8] sm:$0xff] (!%p388_p2)   ;;  %v4999_v41 = vld [vmem:[%s6589_s1 + $0xb0] sm:$0xff] (!%p388_p2)  }
   0xd   : > { %s6603_s26 = smov (!%p431_p3, %s4065_s26), 1  ;;  %v5000_v42 = vld [vmem:[%s6589_s1 + $0xb8] sm:$0xff]   ;;  %v4074_v43 = vld [vmem:[%s6590_s2] ss:$0 sm:$0xff] }
   0xe   : > { %s4723_s14 = sshll.u32 %s6603_s26, 4  ;;  %750 = vmatpush1.bf16.msra.mxu1 %v4990_v32 }
   0xf   : > { %s5322_s17 = scalar_lea.vmem %s6588_s0, %s4723_s14  ;;  %580 = vmatpush1.bf16.msra.mxu0 %v4979_v5  ;;  %751 = vmatprep.subr.bf16.mxu1 %v5221_v1  ;;  %v5001_v5 = vld [vmem:[%s6589_s1 + $0xc0] sm:$0xff]   ;;  %s440_s27 = scalar_lea.vmem %s6601_s13, %s4723_s14 }
  0x10   : > { %v442_v3 = vld [vmem:[%s5322_s17] sm:$0xff]  ;;  %v443_v4 = vld [vmem:[%s5322_s17 + $0x8] sm:$0xff]  ;;  %581 = vmatprep.subr.bf16.mxu0 %v5221_v1 }
  0x11   : > { %v4907_v6 = vpack.i.bf16 %v443_v4, %v442_v3  ;;  %v454_v7 = vrot.slane %v442_v3, 1  ;;  %v455_v9 = vrot.slane %v443_v4, 1  ;;  %v447_v10 = vrot.slane %v442_v3, 7 }
  0x12   : > { %v448_v15 = vrot.slane %v443_v4, 7  ;;  %752 = vmatpush1.bf16.msra.mxu1 %v4991_v33 }
  0x13   : > { %4908 = vrot.lane.b32.xlu0 %v4907_v6, %s5222_s20  ;;  %v456_v11 = vsel %vm453_vm0, %v454_v7, %v455_v9  ;;  %v459_v12 = vsel %vm453_vm0, %v455_v9, 0.0  ;;  %v452_v16 = vsel %vm446_vm1, 0.0, %v447_v10  ;;  %582 = vmatpush1.bf16.msra.mxu0 %v4980_v8  ;;  %v5002_v6 = vld [vmem:[%s6589_s1 + $0xc8] sm:$0xff]   ;;  %v5003_v7 = vld [vmem:[%s6589_s1 + $0xd0] sm:$0xff]   ;;  %v5004_v8 = vld [vmem:[%s6589_s1 + $0xd8] sm:$0xff]  }
  0x14   : > { %v470_v14 = vpack.c.bf16 %v459_v12, %v456_v11  ;;  %583 = vmatprep.subr.bf16.mxu0 %v5221_v1  ;;  %v449_v25 = vsel %vm446_vm1, %v447_v10, %v448_v15  ;;  %753 = vmatprep.subr.bf16.mxu1 %v5221_v1  ;;  %v5005_v9 = vld [vmem:[%s6589_s1 + $0xe0] sm:$0xff]   ;;  %v5006_v10 = vld [vmem:[%s6589_s1 + $0xe8] sm:$0xff]   ;;  %v5007_v11 = vld [vmem:[%s6589_s1 + $0xf0] sm:$0xff]  }
  0x15   : > { %v5008_v12 = vld [vmem:[%s6589_s1 + $0xf8] sm:$0xff]   ;;  %v5011_v15 = vld [vmem:[%s6589_s1 + $0x110] sm:$0xff]  }
  0x16   : > { %4087 = vmatprep.mubr.msk.bf16.mxu0 %vm466_vm2, %v470_v14  ;;  %754 = vmatpush1.bf16.msra.mxu1 %v4992_v34  ;;  %v5010_v14 = vld [vmem:[%s6589_s1 + $0x108] sm:$0xff]  }
  0x17   : > { %584 = vmatpush1.bf16.msra.mxu0 %v4981_v13  ;;  %755 = vmatprep.subr.bf16.mxu1 %v5221_v1  ;;  %v5009_v13 = vld [vmem:[%s6589_s1 + $0x100] sm:$0xff]  }
  0x18   : > { %585 = vmatprep.subr.bf16.mxu0 %v5221_v1 }
  0x1a   : > { %756 = vmatpush1.bf16.msra.mxu1 %v4993_v35 }
  0x1b   : > { %586 = vmatpush1.bf16.msra.mxu0 %v4982_v17  ;;  %757 = vmatprep.subr.bf16.mxu1 %v5221_v1  ;;  %v4112_v17 = vld [vmem:[%s6590_s2 + $0x1] ss:$0 sm:$0xff] }
  0x1c   : > { %587 = vmatprep.subr.bf16.mxu0 %v5221_v1 }
  0x1e   : > { %758 = vmatpush1.bf16.msra.mxu1 %v4994_v36 }
  0x1f   : > { %588 = vmatpush1.bf16.msra.mxu0 %v4983_v18  ;;  %759 = vmatprep.subr.bf16.mxu1 %v5221_v1 }
  0x20   : > { %589 = vmatprep.subr.bf16.mxu0 %v5221_v1 }
  0x22   : > { %760 = vmatpush1.bf16.msra.mxu1 %v4995_v37 }
  0x23   : > { %590 = vmatpush1.bf16.msra.mxu0 %v4984_v19  ;;  %761 = vmatprep.subr.bf16.mxu1 %v5221_v1 }
  0x24   : > { %591 = vmatprep.subr.bf16.mxu0 %v5221_v1 }
  0x26   : > { %762 = vmatpush1.bf16.msra.mxu1 %v4996_v38 }
  0x27   : > { %592 = vmatpush1.bf16.msra.mxu0 %v4985_v20  ;;  %763 = vmatprep.subr.bf16.mxu1 %v5221_v1 }
  0x28   : > { %593 = vmatprep.subr.bf16.mxu0 %v5221_v1 }
  0x2a   : > { %764 = vmatpush1.bf16.msra.mxu1 %v4997_v39 }
  0x2b   : > { %594 = vmatpush1.bf16.msra.mxu0 %v4986_v21  ;;  %765 = vmatprep.subr.bf16.mxu1 %v5221_v1 }
  0x2c   : > { %595 = vmatprep.subr.bf16.mxu0 %v5221_v1 }
  0x2e   : > { %766 = vmatpush1.bf16.msra.mxu1 %v4998_v40 }
  0x2f   : > { %596 = vmatpush1.bf16.msra.mxu0 %v4987_v22  ;;  %767 = vmatprep.subr.bf16.mxu1 %v5221_v1  ;;  %v5211_v22 = vld [vmem:[%s5322_s17] sm:$0xff] }
  0x30   : > { %597 = vmatprep.subr.bf16.mxu0 %v5221_v1 }
  0x32   : > { %768 = vmatpush1.bf16.msra.mxu1 %v4999_v41 }
  0x33   : > { %598 = vmatpush1.bf16.msra.mxu0 %v4988_v23  ;;  %769 = vmatprep.subr.bf16.mxu1 %v5221_v1 }
  0x34   : > { %919 = vmatprep.subr.bf16.mxu0 %v5221_v1 }
  0x36   : > { %770 = vmatpush1.bf16.msra.mxu1 %v5000_v42 }
  0x37   : > { %1091 = vmatprep.subr.bf16.mxu1 %v5221_v1 }
  0x85   : > { %v4909_v24 = vpop.permute.xlu0 %4908 }
  0x86   : > { %v4911_v26 = vunpack.i.h.bf16 %v4909_v24  ;;  %v4910_v27 = vunpack.i.l.bf16 %v4909_v24 }
  0x88   : > { %v467_v28 = vsel %vm466_vm2, %v452_v16, %v4910_v27  ;;  %v468_v29 = vsel %vm466_vm2, %v449_v25, %v4911_v26  ;;  %v5012_v16 = vld [vmem:[%s6589_s1 + $0x118] sm:$0xff]   ;;  %v5212_v26 = vld [vmem:[%s5322_s17 + $0x8] sm:$0xff] }
  0x89   : > { %v469_v30 = vpack.c.bf16 %v468_v29, %v467_v28 }
  0x8b   : > { %608 = vmatmul.mubr.bf16.vlgmr.msra.gmra.mrb[0].mxu0 %v469_v30 }
  0x8c   : > { %920 = vmatpush1.bf16.msra.mxu0 %v5001_v5 }
  0x8d   : > { %921 = vmatprep.subr.bf16.mxu0 %v5221_v1 }
  0x90   : > { %922 = vmatpush1.bf16.msra.mxu0 %v5002_v6 }
  0x91   : > { %923 = vmatprep.subr.bf16.mxu0 %v5221_v1 }
  0x94   : > { %924 = vmatpush1.bf16.msra.mxu0 %v5003_v7 }
  0x95   : > { %925 = vmatprep.subr.bf16.mxu0 %v5221_v1 }
  0x98   : > { %926 = vmatpush1.bf16.msra.mxu0 %v5004_v8 }
  0x99   : > { %927 = vmatprep.subr.bf16.mxu0 %v5221_v1 }
  0x9c   : > { %928 = vmatpush1.bf16.msra.mxu0 %v5005_v9 }
  0x9d   : > { %929 = vmatprep.subr.bf16.mxu0 %v5221_v1 }
  0xa0   : > { %930 = vmatpush1.bf16.msra.mxu0 %v5006_v10 }
  0xa1   : > { %931 = vmatprep.subr.bf16.mxu0 %v5221_v1 }
  0xa4   : > { %932 = vmatpush1.bf16.msra.mxu0 %v5007_v11 }
  0xa5   : > { %933 = vmatprep.subr.bf16.mxu0 %v5221_v1 }
  0xa8   : > { %934 = vmatpush1.bf16.msra.mxu0 %v5008_v12 }
  0xa9   : > { %935 = vmatprep.subr.bf16.mxu0 %v5221_v1 }
  0xac   : > { %936 = vmatpush1.bf16.msra.mxu0 %v5009_v13 }
  0xad   : > { %937 = vmatprep.subr.bf16.mxu0 %v5221_v1 }
  0xb0   : > { %938 = vmatpush1.bf16.msra.mxu0 %v5010_v14 }
  0xb1   : > { %939 = vmatprep.subr.bf16.mxu0 %v5221_v1 }
  0xb4   : > { %940 = vmatpush1.bf16.msra.mxu0 %v5011_v15 }
  0xb5   : > { %941 = vmatprep.subr.bf16.mxu0 %v5221_v1 }
  0xb8   : > { %942 = vmatpush1.bf16.msra.mxu0 %v5012_v16 }
  0xb9   : > { %1263 = vmatprep.subr.bf16.mxu0 %v5221_v1 }
 0x15e   : > { %v609_v44 = vpop.f32.mrb[0].mxu0 }
 0x15f   : > { %v610_v45 = vadd.f32 %v4074_v43, %v609_v44  ;;  %v611_v46 = vpop.f32.mrb[1].mxu0  ;;  %v5013_v44 = vld [vmem:[%s6589_s1 + $0x120] sm:$0xff]  }
 0x160   : > { %v612_v47 = vpop.f32.mrb[2].mxu0  ;;  %v5015_v46 = vld [vmem:[%s6589_s1 + $0x130] sm:$0xff]  }
 0x161   : > { %v616_v48 = vmax.f32 %v610_v45, 0.0  ;;  %v613_v49 = vadd.f32 %v4074_v43, %v612_v47  ;;  %v614_v50 = vpop.f32.mrb[3].mxu0  ;;  %v5014_v45 = vld [vmem:[%s6589_s1 + $0x128] sm:$0xff]   ;;  %v5016_v47 = vld [vmem:[%s6589_s1 + $0x138] sm:$0xff]  }
 0x162   : > { %v5019_v50 = vld [vmem:[%s6589_s1 + $0x150] sm:$0xff]  }
 0x163   : > { %v617_v51 = vmax.f32 %v613_v49, 0.0  ;;  %v620_v52 = vrot.slane %v616_v48, 7  ;;  %v626_v53 = vrot.slane %v616_v48, 1  ;;  %v5018_v49 = vld [vmem:[%s6589_s1 + $0x148] sm:$0xff]  }
 0x165   : > { %v621_v54 = vrot.slane %v617_v51, 7  ;;  %v4912_v55 = vpack.i.bf16 %v617_v51, %v616_v48  ;;  %v627_v56 = vrot.slane %v617_v51, 1  ;;  %v625_v0 = vsel %vm446_vm1, 0.0, %v620_v52  ;;  %v5017_v48 = vld [vmem:[%s6589_s1 + $0x140] sm:$0xff]   ;;  %v5020_v51 = vld [vmem:[%s6589_s1 + $0x158] sm:$0xff]  }
 0x167   : > { %4913 = vrot.lane.b32.xlu0 %v4912_v55, %s5222_s20  ;;  %v628_v57 = vsel %vm453_vm0, %v626_v53, %v627_v56  ;;  %v631_v58 = vsel %vm453_vm0, %v627_v56, 0.0  ;;  %v622_v59 = vsel %vm446_vm1, %v620_v52, %v621_v54  ;;  %v5021_v52 = vld [vmem:[%s6589_s1 + $0x160] sm:$0xff]   ;;  %v5022_v53 = vld [vmem:[%s6589_s1 + $0x168] sm:$0xff]   ;;  %v5023_v54 = vld [vmem:[%s6589_s1 + $0x170] sm:$0xff]  }
 0x168   : > { %v641_v60 = vpack.c.bf16 %v631_v58, %v628_v57  ;;  %v5024_v55 = vld [vmem:[%s6589_s1 + $0x178] sm:$0xff]   ;;  %v4150_v56 = vld [vmem:[%s6590_s2 + $0x2] ss:$0 sm:$0xff] }
 0x16a   : > { %4125 = vmatprep.mubr.msk.bf16.mxu1 %vm466_vm2, %v641_v60 }
 0x1d9   : > { %v4914_v61 = vpop.permute.xlu0 %4913 }
 0x1da   : > { %v4916_v62 = vunpack.i.h.bf16 %v4914_v61  ;;  %v4915_v63 = vunpack.i.l.bf16 %v4914_v61 }
 0x1dc   : > { %v638_v2 = vsel %vm466_vm2, %v625_v0, %v4915_v63  ;;  %v639_v3 = vsel %vm466_vm2, %v622_v59, %v4916_v62 }
 0x1dd   : > { %v640_v4 = vpack.c.bf16 %v639_v3, %v638_v2 }
 0x1df   : > { %780 = vmatmul.mubr.bf16.vlgmr.msra.gmra.mrb[0].mxu1 %v640_v4 }
 0x1e0   : > { %1092 = vmatpush1.bf16.msra.mxu1 %v5013_v44 }
 0x1e1   : > { %1093 = vmatprep.subr.bf16.mxu1 %v5221_v1 }
 0x1e4   : > { %1094 = vmatpush1.bf16.msra.mxu1 %v5014_v45 }
 0x1e5   : > { %1095 = vmatprep.subr.bf16.mxu1 %v5221_v1 }
 0x1e8   : > { %1096 = vmatpush1.bf16.msra.mxu1 %v5015_v46 }
 0x1e9   : > { %1097 = vmatprep.subr.bf16.mxu1 %v5221_v1 }
 0x1ec   : > { %1098 = vmatpush1.bf16.msra.mxu1 %v5016_v47 }
 0x1ed   : > { %1099 = vmatprep.subr.bf16.mxu1 %v5221_v1 }
 0x1f0   : > { %1100 = vmatpush1.bf16.msra.mxu1 %v5017_v48 }
 0x1f1   : > { %1101 = vmatprep.subr.bf16.mxu1 %v5221_v1 }
 0x1f4   : > { %1102 = vmatpush1.bf16.msra.mxu1 %v5018_v49 }
 0x1f5   : > { %1103 = vmatprep.subr.bf16.mxu1 %v5221_v1 }
 0x1f8   : > { %1104 = vmatpush1.bf16.msra.mxu1 %v5019_v50 }
 0x1f9   : > { %1105 = vmatprep.subr.bf16.mxu1 %v5221_v1 }
 0x1fc   : > { %1106 = vmatpush1.bf16.msra.mxu1 %v5020_v51 }
 0x1fd   : > { %1107 = vmatprep.subr.bf16.mxu1 %v5221_v1 }
 0x200   : > { %1108 = vmatpush1.bf16.msra.mxu1 %v5021_v52 }
 0x201   : > { %1109 = vmatprep.subr.bf16.mxu1 %v5221_v1 }
 0x204   : > { %1110 = vmatpush1.bf16.msra.mxu1 %v5022_v53 }
 0x205   : > { %1111 = vmatprep.subr.bf16.mxu1 %v5221_v1 }
 0x208   : > { %1112 = vmatpush1.bf16.msra.mxu1 %v5023_v54 }
 0x209   : > { %1113 = vmatprep.subr.bf16.mxu1 %v5221_v1 }
 0x20c   : > { %1114 = vmatpush1.bf16.msra.mxu1 %v5024_v55 }
 0x20d   : > { %1435 = vmatprep.subr.bf16.mxu1 %v5221_v1 }
 0x2b2   : > { %v781_v18 = vpop.f32.mrb[0].mxu1 }
 0x2b3   : > { %v782_v19 = vadd.f32 %v4112_v17, %v781_v18  ;;  %v783_v20 = vpop.f32.mrb[1].mxu1  ;;  %v5025_v18 = vld [vmem:[%s6589_s1 + $0x180] sm:$0xff]  }
 0x2b4   : > { %v784_v21 = vpop.f32.mrb[2].mxu1  ;;  %v5027_v20 = vld [vmem:[%s6589_s1 + $0x190] sm:$0xff]  }
 0x2b5   : > { %v5486_v23 = vadd.f32 %v5211_v22, %v782_v19  ;;  %v785_v24 = vadd.f32 %v4112_v17, %v784_v21  ;;  %v786_v25 = vpop.f32.mrb[3].mxu1  ;;  %v5026_v19 = vld [vmem:[%s6589_s1 + $0x188] sm:$0xff]   ;;  %v5028_v21 = vld [vmem:[%s6589_s1 + $0x198] sm:$0xff]   ;;  %v5029_v22 = vld [vmem:[%s6589_s1 + $0x1a0] sm:$0xff]  }
 0x2b6   : > { %v5031_v25 = vld [vmem:[%s6589_s1 + $0x1b0] sm:$0xff]  }
 0x2b7   : > { %v5489_v27 = vadd.f32 %v5212_v26, %v785_v24  ;;  %v798_v29 = vrot.slane %v5486_v23, 1  ;;  %v792_v35 = vrot.slane %v5486_v23, 7  ;;  %v5030_v24 = vld [vmem:[%s6589_s1 + $0x1a8] sm:$0xff]   ;;  %v5032_v26 = vld [vmem:[%s6589_s1 + $0x1b8] sm:$0xff]  }
 0x2b9   : > { %v4917_v28 = vpack.i.bf16 %v5489_v27, %v5486_v23  ;;  %v799_v30 = vrot.slane %v5489_v27, 1  ;;  %v793_v34 = vrot.slane %v5489_v27, 7  ;;  %v797_v40 = vsel %vm446_vm1, 0.0, %v792_v35 }
 0x2bb   : > { %4918 = vrot.lane.b32.xlu1 %v4917_v28, %s5222_s20  ;;  %v800_v31 = vsel %vm453_vm0, %v798_v29, %v799_v30  ;;  %v803_v32 = vsel %vm453_vm0, %v799_v30, 0.0  ;;  %v794_v39 = vsel %vm446_vm1, %v792_v35, %v793_v34  ;;  %v5033_v28 = vld [vmem:[%s6589_s1 + $0x1c0] sm:$0xff]   ;;  %v5034_v29 = vld [vmem:[%s6589_s1 + $0x1c8] sm:$0xff]   ;;  %v5035_v30 = vld [vmem:[%s6589_s1 + $0x1d0] sm:$0xff]  }
 0x2bc   : > { %v5498_v33 = vpack.c.bf16 %v803_v32, %v800_v31  ;;  %v5036_v31 = vld [vmem:[%s6589_s1 + $0x1d8] sm:$0xff]   ;;  %v4188_v32 = vld [vmem:[%s6590_s2 + $0x3] ss:$0 sm:$0xff] }
 0x2be   : > { %4163 = vmatprep.mubr.msk.bf16.mxu0 %vm466_vm2, %v5498_v33 }
 0x32d   : > { %v4919_v36 = vpop.permute.xlu1 %4918 }
 0x32e   : > { %v4921_v37 = vunpack.i.h.bf16 %v4919_v36  ;;  %v4920_v38 = vunpack.i.l.bf16 %v4919_v36 }
 0x330   : > { %v810_v41 = vsel %vm466_vm2, %v797_v40, %v4920_v38  ;;  %v811_v42 = vsel %vm466_vm2, %v794_v39, %v4921_v37 }
 0x331   : > { %v5508_v43 = vpack.c.bf16 %v811_v42, %v810_v41 }
 0x333   : > { %952 = vmatmul.mubr.bf16.vlgmr.msra.gmra.mrb[4].mxu0 %v5508_v43 }
 0x334   : > { %1264 = vmatpush1.bf16.msra.mxu0 %v5025_v18  ;;  %v4226_v18 = vld [vmem:[%s6590_s2 + $0x4] ss:$0 sm:$0xff] }
 0x335   : > { %1265 = vmatprep.subr.bf16.mxu0 %v5221_v1 }
 0x338   : > { %1266 = vmatpush1.bf16.msra.mxu0 %v5026_v19 }
 0x339   : > { %1267 = vmatprep.subr.bf16.mxu0 %v5221_v1 }
 0x33c   : > { %1268 = vmatpush1.bf16.msra.mxu0 %v5027_v20 }
 0x33d   : > { %1269 = vmatprep.subr.bf16.mxu0 %v5221_v1 }
 0x340   : > { %1270 = vmatpush1.bf16.msra.mxu0 %v5028_v21 }
 0x341   : > { %1271 = vmatprep.subr.bf16.mxu0 %v5221_v1 }
 0x344   : > { %1272 = vmatpush1.bf16.msra.mxu0 %v5029_v22 }
 0x345   : > { %1273 = vmatprep.subr.bf16.mxu0 %v5221_v1 }
 0x348   : > { %1274 = vmatpush1.bf16.msra.mxu0 %v5030_v24 }
 0x349   : > { %1275 = vmatprep.subr.bf16.mxu0 %v5221_v1 }
 0x34c   : > { %1276 = vmatpush1.bf16.msra.mxu0 %v5031_v25 }
 0x34d   : > { %1277 = vmatprep.subr.bf16.mxu0 %v5221_v1 }
 0x350   : > { %1278 = vmatpush1.bf16.msra.mxu0 %v5032_v26 }
 0x351   : > { %1279 = vmatprep.subr.bf16.mxu0 %v5221_v1 }
 0x354   : > { %1280 = vmatpush1.bf16.msra.mxu0 %v5033_v28 }
 0x355   : > { %1281 = vmatprep.subr.bf16.mxu0 %v5221_v1 }
 0x358   : > { %1282 = vmatpush1.bf16.msra.mxu0 %v5034_v29 }
 0x359   : > { %1283 = vmatprep.subr.bf16.mxu0 %v5221_v1 }
 0x35c   : > { %1284 = vmatpush1.bf16.msra.mxu0 %v5035_v30 }
 0x35d   : > { %1285 = vmatprep.subr.bf16.mxu0 %v5221_v1 }
 0x360   : > { %1286 = vmatpush1.bf16.msra.mxu0 %v5036_v31 }
 0x361   : > { %1580 = vmatprep.subr.bf16.mxu0 %v5221_v1 }
 0x406   : > { %v953_v57 = vpop.f32.mrb[4].mxu0 }
 0x407   : > { %v954_v58 = vadd.f32 %v4150_v56, %v953_v57  ;;  %v955_v59 = vpop.f32.mrb[5].mxu0 }
 0x408   : > { %v956_v60 = vpop.f32.mrb[6].mxu0 }
 0x409   : > { %v960_v61 = vmax.f32 %v954_v58, 0.0  ;;  %v957_v62 = vadd.f32 %v4150_v56, %v956_v60  ;;  %v958_v63 = vpop.f32.mrb[7].mxu0  ;;  %v5037_v58 = vld [vmem:[%s6589_s1 + $0x240] sm:$0xff]   ;;  %v5038_v60 = vld [vmem:[%s6589_s1 + $0x248] sm:$0xff]  }
 0x40a   : > { %v5042_v63 = vld [vmem:[%s6589_s1 + $0x268] sm:$0xff]  }
 0x40b   : > { %v961_v0 = vmax.f32 %v957_v62, 0.0  ;;  %v964_v2 = vrot.slane %v960_v61, 7  ;;  %v970_v3 = vrot.slane %v960_v61, 1  ;;  %v5040_v62 = vld [vmem:[%s6589_s1 + $0x258] sm:$0xff]  }
 0x40d   : > { %v965_v4 = vrot.slane %v961_v0, 7  ;;  %v971_v5 = vrot.slane %v961_v0, 1  ;;  %v4922_v6 = vpack.i.bf16 %v961_v0, %v960_v61  ;;  %v969_v14 = vsel %vm446_vm1, 0.0, %v964_v2  ;;  %v5039_v61 = vld [vmem:[%s6589_s1 + $0x250] sm:$0xff]  }
 0x40e   : > { %v5043_v0 = vld [vmem:[%s6589_s1 + $0x270] sm:$0xff]  }
 0x40f   : > { %v975_v7 = vsel %vm453_vm0, %v971_v5, 0.0  ;;  %4923 = vrot.lane.b32.xlu1 %v4922_v6, %s5222_s20  ;;  %v972_v8 = vsel %vm453_vm0, %v970_v3, %v971_v5  ;;  %v966_v9 = vsel %vm446_vm1, %v964_v2, %v965_v4  ;;  %v5044_v2 = vld [vmem:[%s6589_s1 + $0x278] sm:$0xff]   ;;  %v5045_v3 = vld [vmem:[%s6589_s1 + $0x280] sm:$0xff]   ;;  %v5046_v4 = vld [vmem:[%s6589_s1 + $0x288] sm:$0xff]  }
 0x410   : > { %v985_v10 = vpack.c.bf16 %v975_v7, %v972_v8  ;;  %v5047_v5 = vld [vmem:[%s6589_s1 + $0x290] sm:$0xff]   ;;  %v5048_v6 = vld [vmem:[%s6589_s1 + $0x298] sm:$0xff]   ;;  %v5049_v7 = vld [vmem:[%s6589_s1 + $0x1e0] sm:$0xff]  }
 0x411   : > { %v5050_v8 = vld [vmem:[%s6589_s1 + $0x1e8] sm:$0xff]  }
 0x412   : > { %4201 = vmatprep.mubr.msk.bf16.mxu1 %vm466_vm2, %v985_v10  ;;  %v5053_v10 = vld [vmem:[%s6589_s1 + $0x200] sm:$0xff]  }
 0x481   : > { %v4924_v11 = vpop.permute.xlu1 %4923 }
 0x482   : > { %v4926_v12 = vunpack.i.h.bf16 %v4924_v11  ;;  %v4925_v13 = vunpack.i.l.bf16 %v4924_v11  ;;  %v5054_v11 = vld [vmem:[%s6589_s1 + $0x208] sm:$0xff]  }
 0x484   : > { %v982_v15 = vsel %vm466_vm2, %v969_v14, %v4925_v13  ;;  %v983_v16 = vsel %vm466_vm2, %v966_v9, %v4926_v12  ;;  %v5051_v9 = vld [vmem:[%s6589_s1 + $0x1f0] sm:$0xff]   ;;  %v5056_v13 = vld [vmem:[%s6589_s1 + $0x218] sm:$0xff]   ;;  %v5057_v14 = vld [vmem:[%s6589_s1 + $0x220] sm:$0xff]  }
 0x485   : > { %v984_v17 = vpack.c.bf16 %v983_v16, %v982_v15  ;;  %v5055_v12 = vld [vmem:[%s6589_s1 + $0x210] sm:$0xff]   ;;  %v5058_v15 = vld [vmem:[%s6589_s1 + $0x228] sm:$0xff]  }
 0x486   : > { %v5059_v16 = vld [vmem:[%s6589_s1 + $0x230] sm:$0xff]  }
 0x487   : > { %1124 = vmatmul.mubr.bf16.vlgmr.msra.gmra.mrb[4].mxu1 %v984_v17  ;;  %v5060_v17 = vld [vmem:[%s6589_s1 + $0x238] sm:$0xff]  }
 0x488   : > { %1436 = vmatpush1.bf16.msra.mxu1 %v5049_v7  ;;  %v5065_v7 = vld [vmem:[%s6589_s1 + $0x2c0] sm:$0xff]  }
 0x489   : > { %1437 = vmatprep.subr.bf16.mxu1 %v5221_v1 }
 0x48c   : > { %1438 = vmatpush1.bf16.msra.mxu1 %v5050_v8  ;;  %v5066_v8 = vld [vmem:[%s6589_s1 + $0x2c8] sm:$0xff]  }
 0x48d   : > { %1439 = vmatprep.subr.bf16.mxu1 %v5221_v1 }
 0x490   : > { %1440 = vmatpush1.bf16.msra.mxu1 %v5051_v9  ;;  %v5067_v9 = vld [vmem:[%s6589_s1 + $0x2d0] sm:$0xff]  }
 0x491   : > { %1441 = vmatprep.subr.bf16.mxu1 %v5221_v1 }
 0x55a   : > { %v1125_v34 = vpop.f32.mrb[4].mxu1 }
 0x55b   : > { %v1126_v35 = vadd.f32 %v4188_v32, %v1125_v34  ;;  %v1127_v36 = vpop.f32.mrb[5].mxu1 }
 0x55c   : > { %v1128_v37 = vpop.f32.mrb[6].mxu1 }
 0x55d   : > { %v5622_v38 = vadd.f32 %v1126_v35, %v5486_v23  ;;  %v1129_v39 = vadd.f32 %v4188_v32, %v1128_v37  ;;  %v1130_v40 = vpop.f32.mrb[7].mxu1 }
 0x55e   : > { %v4302_v40 = vld [vmem:[%s6590_s2 + $0x6] ss:$0 sm:$0xff] }
 0x55f   : > { %v5625_v41 = vadd.f32 %v1129_v39, %v5489_v27  ;;  %v1142_v42 = vrot.slane %v5622_v38, 1  ;;  %v1136_v50 = vrot.slane %v5622_v38, 7 }
 0x561   : > { %v4927_v44 = vpack.i.bf16 %v5625_v41, %v5622_v38  ;;  %v1143_v45 = vrot.slane %v5625_v41, 1  ;;  %v1137_v49 = vrot.slane %v5625_v41, 7  ;;  %v1141_v55 = vsel %vm446_vm1, 0.0, %v1136_v50 }
 0x563   : > { %4928 = vrot.lane.b32.xlu0 %v4927_v44, %s5222_s20  ;;  %v1144_v46 = vsel %vm453_vm0, %v1142_v42, %v1143_v45  ;;  %v1147_v47 = vsel %vm453_vm0, %v1143_v45, 0.0  ;;  %v1138_v54 = vsel %vm446_vm1, %v1136_v50, %v1137_v49 }
 0x564   : > { %v1157_v48 = vpack.c.bf16 %v1147_v47, %v1144_v46 }
 0x566   : > { %4239 = vmatprep.mubr.msk.bf16.mxu0 %vm466_vm2, %v1157_v48 }
 0x5d5   : > { %v4929_v51 = vpop.permute.xlu0 %4928 }
 0x5d6   : > { %v4931_v52 = vunpack.i.h.bf16 %v4929_v51  ;;  %v4930_v53 = vunpack.i.l.bf16 %v4929_v51 }
 0x5d8   : > { %v1154_v56 = vsel %vm466_vm2, %v1141_v55, %v4930_v53  ;;  %v1155_v57 = vsel %vm466_vm2, %v1138_v54, %v4931_v52 }
 0x5d9   : > { %v1156_v59 = vpack.c.bf16 %v1155_v57, %v1154_v56 }
 0x5db   : > { %1296 = vmatmul.mubr.bf16.vlgmr.msra.gmra.mrb[8].mxu0 %v1156_v59 }
 0x5dc   : > { %1581 = vmatpush1.bf16.msra.mxu0 %v5037_v58  ;;  %4315 = vmatprep.mubr.msk.bf16.mxu0 %vm466_vm2, %v5498_v33  ;;  %v5041_v33 = vld [vmem:[%s6589_s1 + $0x260] sm:$0xff]  }
 0x5dd   : > { %1582 = vmatprep.subr.bf16.mxu0 %v5221_v1 }
 0x5e0   : > { %1583 = vmatpush1.bf16.msra.mxu0 %v5038_v60 }
 0x5e1   : > { %1584 = vmatprep.subr.bf16.mxu0 %v5221_v1 }
 0x5e4   : > { %1585 = vmatpush1.bf16.msra.mxu0 %v5039_v61 }
 0x5e5   : > { %1586 = vmatprep.subr.bf16.mxu0 %v5221_v1 }
 0x5e8   : > { %1587 = vmatpush1.bf16.msra.mxu0 %v5040_v62 }
 0x5e9   : > { %1588 = vmatprep.subr.bf16.mxu0 %v5221_v1 }
 0x5ec   : > { %1589 = vmatpush1.bf16.msra.mxu0 %v5041_v33 }
 0x5ed   : > { %1590 = vmatprep.subr.bf16.mxu0 %v5221_v1 }
 0x5f0   : > { %1591 = vmatpush1.bf16.msra.mxu0 %v5042_v63 }
 0x5f1   : > { %1592 = vmatprep.subr.bf16.mxu0 %v5221_v1 }
 0x5f4   : > { %1593 = vmatpush1.bf16.msra.mxu0 %v5043_v0 }
 0x5f5   : > { %1594 = vmatprep.subr.bf16.mxu0 %v5221_v1 }
 0x5f8   : > { %1595 = vmatpush1.bf16.msra.mxu0 %v5044_v2  ;;  %v5061_v2 = vld [vmem:[%s6589_s1 + $0x2a0] sm:$0xff]  }
 0x5f9   : > { %1596 = vmatprep.subr.bf16.mxu0 %v5221_v1 }
 0x5fc   : > { %1597 = vmatpush1.bf16.msra.mxu0 %v5045_v3 }
 0x5fd   : > { %1598 = vmatprep.subr.bf16.mxu0 %v5221_v1 }
 0x600   : > { %1599 = vmatpush1.bf16.msra.mxu0 %v5046_v4  ;;  %v5062_v4 = vld [vmem:[%s6589_s1 + $0x2a8] sm:$0xff]  }
 0x601   : > { %1600 = vmatprep.subr.bf16.mxu0 %v5221_v1 }
 0x604   : > { %1601 = vmatpush1.bf16.msra.mxu0 %v5047_v5  ;;  %v5063_v5 = vld [vmem:[%s6589_s1 + $0x2b0] sm:$0xff]  }
 0x605   : > { %1602 = vmatprep.subr.bf16.mxu0 %v5221_v1 }
 0x608   : > { %1603 = vmatpush1.bf16.msra.mxu0 %v5048_v6  ;;  %v5064_v6 = vld [vmem:[%s6589_s1 + $0x2b8] sm:$0xff]  }
 0x60b   : > { %1613 = vmatmul.mubr.bf16.vlgmr.msra.gmra.mrb[12].mxu0 %v5508_v43  ;;  %v5052_v43 = vld [vmem:[%s6589_s1 + $0x1f8] sm:$0xff]  }
 0x60c   : > { %1442 = vmatpush1.bf16.msra.mxu1 %v5052_v43  ;;  %v5068_v43 = vld [vmem:[%s6589_s1 + $0x2d8] sm:$0xff]  }
 0x60d   : > { %1443 = vmatprep.subr.bf16.mxu1 %v5221_v1 }
 0x610   : > { %1444 = vmatpush1.bf16.msra.mxu1 %v5053_v10  ;;  %v5069_v10 = vld [vmem:[%s6589_s1 + $0x2e0] sm:$0xff]  }
 0x611   : > { %1445 = vmatprep.subr.bf16.mxu1 %v5221_v1 }
 0x614   : > { %1446 = vmatpush1.bf16.msra.mxu1 %v5054_v11  ;;  %v5070_v11 = vld [vmem:[%s6589_s1 + $0x2e8] sm:$0xff]  }
 0x615   : > { %1447 = vmatprep.subr.bf16.mxu1 %v5221_v1 }
 0x618   : > { %1448 = vmatpush1.bf16.msra.mxu1 %v5055_v12  ;;  %v5071_v12 = vld [vmem:[%s6589_s1 + $0x2f0] sm:$0xff]  }
 0x619   : > { %1449 = vmatprep.subr.bf16.mxu1 %v5221_v1 }
 0x61c   : > { %1450 = vmatpush1.bf16.msra.mxu1 %v5056_v13  ;;  %v5072_v13 = vld [vmem:[%s6589_s1 + $0x2f8] sm:$0xff]  }
 0x61d   : > { %1451 = vmatprep.subr.bf16.mxu1 %v5221_v1 }
 0x620   : > { %1452 = vmatpush1.bf16.msra.mxu1 %v5057_v14 }
 0x621   : > { %1453 = vmatprep.subr.bf16.mxu1 %v5221_v1 }
 0x624   : > { %1454 = vmatpush1.bf16.msra.mxu1 %v5058_v15 }
 0x625   : > { %1455 = vmatprep.subr.bf16.mxu1 %v5221_v1 }
 0x628   : > { %1456 = vmatpush1.bf16.msra.mxu1 %v5059_v16 }
 0x629   : > { %1457 = vmatprep.subr.bf16.mxu1 %v5221_v1 }
 0x62c   : > { %1458 = vmatpush1.bf16.msra.mxu1 %v5060_v17 }
 0x62d   : > { %1752 = vmatprep.subr.bf16.mxu1 %v5221_v1 }
 0x6ae   : > { %v1297_v19 = vpop.f32.mrb[8].mxu0 }
 0x6af   : > { %v1298_v20 = vadd.f32 %v4226_v18, %v1297_v19  ;;  %v1299_v21 = vpop.f32.mrb[9].mxu0 }
 0x6b0   : > { %v1300_v22 = vpop.f32.mrb[10].mxu0  ;;  %v5223_v21 = vmov 0.0|0.0  }
 0x6b1   : > { %v1304_v24 = vmax.f32 %v1298_v20, 0.0  ;;  %v1301_v25 = vadd.f32 %v4226_v18, %v1300_v22  ;;  %v1302_v26 = vpop.f32.mrb[11].mxu0  ;;  %4886 = vmatprep.subr.bf16.mxu0 %v5223_v21  ;;  %v5225_v22 = vmov 0.0  }
 0x6b2   : > { %4778 = vmatprep.mubr.msk.f32.mxu0 %vm5224_vm3, %v5225_v22 }
 0x6b3   : > { %v1305_v28 = vmax.f32 %v1301_v25, 0.0  ;;  %v1308_v29 = vrot.slane %v1304_v24, 7  ;;  %v1314_v30 = vrot.slane %v1304_v24, 1 }
 0x6b5   : > { %v1309_v31 = vrot.slane %v1305_v28, 7  ;;  %v1315_v32 = vrot.slane %v1305_v28, 1  ;;  %v4932_v34 = vpack.i.bf16 %v1305_v28, %v1304_v24  ;;  %v1313_v33 = vsel %vm446_vm1, 0.0, %v1308_v29 }
 0x6b7   : > { %v1319_v35 = vsel %vm453_vm0, %v1315_v32, 0.0  ;;  %4933 = vrot.lane.b32.xlu1 %v4932_v34, %s5222_s20  ;;  %v1316_v36 = vsel %vm453_vm0, %v1314_v30, %v1315_v32  ;;  %v1310_v37 = vsel %vm446_vm1, %v1308_v29, %v1309_v31  ;;  %v4340_v29 = vld [vmem:[%s6590_s2 + $0x7] ss:$0 sm:$0xff] }
 0x6b8   : > { %v1329_v39 = vpack.c.bf16 %v1319_v35, %v1316_v36 }
 0x6ba   : > { %4277 = vmatprep.mubr.msk.bf16.mxu1 %vm466_vm2, %v1329_v39 }
 0x6de   : > { %v1614_v42 = vpop.f32.mrb[12].mxu0 }
 0x6df   : > { %v1615_v44 = vadd.f32 %v4302_v40, %v1614_v42  ;;  %v1616_v45 = vpop.f32.mrb[13].mxu0  ;;  %v1795_v42 = vld [vmem:[%s6593_s5] sm:$0xff] }
 0x6e0   : > { %v1617_v46 = vpop.f32.mrb[14].mxu0  ;;  %v1797_v45 = vld [vmem:[%s6593_s5 + $0x10] sm:$0xff] }
 0x6e1   : > { %v1621_v47 = vmax.f32 %v1615_v44, 0.0  ;;  %v1618_v48 = vadd.f32 %v4302_v40, %v1617_v46  ;;  %v1619_v49 = vpop.f32.mrb[15].mxu0  ;;  %v1796_v44 = vld [vmem:[%s6593_s5 + $0x8] sm:$0xff]  ;;  %v5073_v46 = vld [vmem:[%s6594_s6] sm:$0xff]  }
 0x6e2   : > { %v5076_v49 = vld [vmem:[%s6594_s6 + $0x18] sm:$0xff]  }
 0x6e3   : > { %v1622_v50 = vmax.f32 %v1618_v48, 0.0  ;;  %v1625_v51 = vrot.slane %v1621_v47, 7  ;;  %v1631_v52 = vrot.slane %v1621_v47, 1  ;;  %v5075_v48 = vld [vmem:[%s6594_s6 + $0x10] sm:$0xff]  }
 0x6e5   : > { %v1626_v53 = vrot.slane %v1622_v50, 7  ;;  %v1632_v54 = vrot.slane %v1622_v50, 1  ;;  %v4937_v55 = vpack.i.bf16 %v1622_v50, %v1621_v47  ;;  %v1630_v17 = vsel %vm446_vm1, 0.0, %v1625_v51  ;;  %v5074_v47 = vld [vmem:[%s6594_s6 + $0x8] sm:$0xff]   ;;  %v5077_v50 = vld [vmem:[%s6594_s6 + $0x20] sm:$0xff]  }
 0x6e7   : > { %v1636_v56 = vsel %vm453_vm0, %v1632_v54, 0.0  ;;  %4938 = vrot.lane.b32.xlu0 %v4937_v55, %s5222_s20  ;;  %v1633_v57 = vsel %vm453_vm0, %v1631_v52, %v1632_v54  ;;  %v1627_v58 = vsel %vm446_vm1, %v1625_v51, %v1626_v53  ;;  %v5078_v51 = vld [vmem:[%s6594_s6 + $0x28] sm:$0xff]   ;;  %v5079_v52 = vld [vmem:[%s6594_s6 + $0x30] sm:$0xff]   ;;  %v5080_v53 = vld [vmem:[%s6594_s6 + $0x38] sm:$0xff]  }
 0x6e8   : > { %v1646_v59 = vpack.c.bf16 %v1636_v56, %v1633_v57  ;;  %v5081_v54 = vld [vmem:[%s6594_s6 + $0x40] sm:$0xff]   ;;  %v5082_v55 = vld [vmem:[%s6594_s6 + $0x48] sm:$0xff]   ;;  %v5083_v56 = vld [vmem:[%s6594_s6 + $0x50] sm:$0xff]  }
 0x6e9   : > { %v5084_v57 = vld [vmem:[%s6594_s6 + $0x58] sm:$0xff]  }
 0x729   : > { %v4934_v60 = vpop.permute.xlu1 %4933 }
 0x72a   : > { %v4936_v61 = vunpack.i.h.bf16 %v4934_v60  ;;  %v4935_v62 = vunpack.i.l.bf16 %v4934_v60 }
 0x72c   : > { %v1326_v63 = vsel %vm466_vm2, %v1313_v33, %v4935_v62  ;;  %v1327_v0 = vsel %vm466_vm2, %v1310_v37, %v4936_v61 }
 0x72d   : > { %v1328_v3 = vpack.c.bf16 %v1327_v0, %v1326_v63 }
 0x72f   : > { %1468 = vmatmul.mubr.bf16.vlgmr.msra.gmra.mrb[8].mxu1 %v1328_v3 }
 0x730   : > { %1753 = vmatpush1.bf16.msra.mxu1 %v5061_v2  ;;  %4353 = vmatprep.mubr.msk.bf16.mxu1 %vm466_vm2, %v1646_v59 }
 0x731   : > { %1754 = vmatprep.subr.bf16.mxu1 %v5221_v1 }
 0x734   : > { %1755 = vmatpush1.bf16.msra.mxu1 %v5062_v4  ;;  %v5085_v4 = vld [vmem:[%s6591_s3] sm:$0xff]  }
 0x735   : > { %1756 = vmatprep.subr.bf16.mxu1 %v5221_v1 }
 0x738   : > { %1757 = vmatpush1.bf16.msra.mxu1 %v5063_v5  ;;  %v5086_v5 = vld [vmem:[%s6591_s3 + $0x8] sm:$0xff]  }
 0x739   : > { %1758 = vmatprep.subr.bf16.mxu1 %v5221_v1 }
 0x73c   : > { %1759 = vmatpush1.bf16.msra.mxu1 %v5064_v6  ;;  %v5087_v6 = vld [vmem:[%s6591_s3 + $0x10] sm:$0xff]  }
 0x73d   : > { %1760 = vmatprep.subr.bf16.mxu1 %v5221_v1 }
 0x740   : > { %1761 = vmatpush1.bf16.msra.mxu1 %v5065_v7  ;;  %v5088_v7 = vld [vmem:[%s6591_s3 + $0x18] sm:$0xff]  }
 0x741   : > { %1762 = vmatprep.subr.bf16.mxu1 %v5221_v1 }
 0x744   : > { %1763 = vmatpush1.bf16.msra.mxu1 %v5066_v8  ;;  %v5089_v8 = vld [vmem:[%s6591_s3 + $0x20] sm:$0xff]  }
 0x745   : > { %1764 = vmatprep.subr.bf16.mxu1 %v5221_v1 }
 0x748   : > { %1765 = vmatpush1.bf16.msra.mxu1 %v5067_v9  ;;  %v5090_v9 = vld [vmem:[%s6591_s3 + $0x28] sm:$0xff]  }
 0x749   : > { %1766 = vmatprep.subr.bf16.mxu1 %v5221_v1 }
 0x74c   : > { %1767 = vmatpush1.bf16.msra.mxu1 %v5068_v43  ;;  %v4357_v43 = vld [vmem:[%s6595_s7] ss:$0 sm:$0xff] }
 0x74d   : > { %1768 = vmatprep.subr.bf16.mxu1 %v5221_v1 }
 0x750   : > { %1769 = vmatpush1.bf16.msra.mxu1 %v5069_v10 }
 0x751   : > { %1770 = vmatprep.subr.bf16.mxu1 %v5221_v1 }
 0x754   : > { %1771 = vmatpush1.bf16.msra.mxu1 %v5070_v11 }
 0x755   : > { %1772 = vmatprep.subr.bf16.mxu1 %v5221_v1 }
 0x758   : > { %1773 = vmatpush1.bf16.msra.mxu1 %v5071_v12 }
 0x759   : > { %v4939_v14 = vpop.permute.xlu0 %4938  ;;  %1774 = vmatprep.subr.bf16.mxu1 %v5221_v1 }
 0x75a   : > { %v4941_v15 = vunpack.i.h.bf16 %v4939_v14  ;;  %v4940_v16 = vunpack.i.l.bf16 %v4939_v14 }
 0x75c   : > { %v1643_v18 = vsel %vm466_vm2, %v1630_v17, %v4940_v16  ;;  %v1644_v19 = vsel %vm466_vm2, %v1627_v58, %v4941_v15  ;;  %1775 = vmatpush1.bf16.msra.mxu1 %v5072_v13 }
 0x75d   : > { %v1645_v20 = vpack.c.bf16 %v1644_v19, %v1643_v18  ;;  %2001 = vmatprep.subr.bf16.mxu1 %v5221_v1 }
 0x75f   : > { %1785 = vmatmul.mubr.bf16.vlgmr.msra.gmra.mrb[12].mxu1 %v1645_v20 }
 0x760   : > { %2002 = vmatpush1.bf16.msra.mxu1 %v5073_v46 }
 0x761   : > { %2003 = vmatprep.subr.bf16.mxu1 %v5221_v1 }
 0x764   : > { %2004 = vmatpush1.bf16.msra.mxu1 %v5074_v47 }
 0x765   : > { %2005 = vmatprep.subr.bf16.mxu1 %v5221_v1 }
 0x768   : > { %2006 = vmatpush1.bf16.msra.mxu1 %v5075_v48 }
 0x769   : > { %2007 = vmatprep.subr.bf16.mxu1 %v5221_v1 }
 0x76c   : > { %2008 = vmatpush1.bf16.msra.mxu1 %v5076_v49 }
 0x76d   : > { %2009 = vmatprep.subr.bf16.mxu1 %v5221_v1 }
 0x770   : > { %2010 = vmatpush1.bf16.msra.mxu1 %v5077_v50 }
 0x771   : > { %2011 = vmatprep.subr.bf16.mxu1 %v5221_v1 }
 0x774   : > { %2012 = vmatpush1.bf16.msra.mxu1 %v5078_v51 }
 0x775   : > { %2013 = vmatprep.subr.bf16.mxu1 %v5221_v1 }
 0x778   : > { %2014 = vmatpush1.bf16.msra.mxu1 %v5079_v52 }
 0x779   : > { %2015 = vmatprep.subr.bf16.mxu1 %v5221_v1 }
 0x77c   : > { %2016 = vmatpush1.bf16.msra.mxu1 %v5080_v53 }
 0x77d   : > { %2017 = vmatprep.subr.bf16.mxu1 %v5221_v1 }
 0x780   : > { %2018 = vmatpush1.bf16.msra.mxu1 %v5081_v54 }
 0x781   : > { %2019 = vmatprep.subr.bf16.mxu1 %v5221_v1 }
 0x784   : > { %2020 = vmatpush1.bf16.msra.mxu1 %v5082_v55 }
 0x785   : > { %2021 = vmatprep.subr.bf16.mxu1 %v5221_v1 }
 0x788   : > { %2022 = vmatpush1.bf16.msra.mxu1 %v5083_v56 }
 0x789   : > { %2023 = vmatprep.subr.bf16.mxu1 %v5221_v1 }
 0x78c   : > { %2024 = vmatpush1.bf16.msra.mxu1 %v5084_v57  ;;  %v5097_v57 = vld [vmem:[%s6591_s3 + $0x60] sm:$0xff]  }
 0x78d   : > { %4851 = vmatprep.subr.bf16.mxu1 %v5225_v22 }
 0x802   : > { %v5811_v24 = vpop.f32.mrb[8].mxu1 }
 0x803   : > { %v1471_v25 = vpop.f32.mrb[9].mxu1 }
 0x804   : > { %v5813_v26 = vpop.f32.mrb[10].mxu1 }
 0x805   : > { %v1474_v28 = vpop.f32.mrb[11].mxu1 }
 0x832   : > { %v1786_v30 = vpop.f32.mrb[12].mxu1 }
 0x833   : > { %v1787_v31 = vadd.f32 %v4340_v29, %v1786_v30  ;;  %v1788_v32 = vpop.f32.mrb[13].mxu1  ;;  %v5092_v30 = vld [vmem:[%s6591_s3 + $0x38] sm:$0xff]  }
 0x834   : > { %v1789_v34 = vpop.f32.mrb[14].mxu1  ;;  %v5094_v32 = vld [vmem:[%s6591_s3 + $0x48] sm:$0xff]  }
 0x835   : > { %v1790_v35 = vadd.f32 %v4340_v29, %v1789_v34  ;;  %v1791_v36 = vpop.f32.mrb[15].mxu1  ;;  %v5819_v37 = vadd.f32 %v1787_v31, %v5486_v23  ;;  %v5091_v29 = vld [vmem:[%s6591_s3 + $0x30] sm:$0xff]   ;;  %v5093_v31 = vld [vmem:[%s6591_s3 + $0x40] sm:$0xff]  }
 0x836   : > { %v5095_v34 = vld [vmem:[%s6591_s3 + $0x50] sm:$0xff]   ;;  %v4371_v36 = vld [vmem:[%s6592_s4] ss:$0 sm:$0xff] }
 0x837   : > { %v5822_v39 = vadd.f32 %v1790_v35, %v5489_v27  ;;  %v5096_v35 = vld [vmem:[%s6591_s3 + $0x58] sm:$0xff]  }
 0x839   : > { %v4887_v40 = vpack.c.bf16 %v5822_v39, %v5819_v37 }
 0x83b   : > { %4888 = vmatpush3.bf16.msra.mxu0 %v4887_v40 }
 0x83c   : > { %4787 = vmatprep.subr.bf16.mxu0 %v5225_v22 }
 0x83e   : > { %4779 = vmatmul.mubr.msk.f32.vlgmr.msra.gmra.mrb[16].mxu0 %vm1798_vm4, %v1795_v42 }
 0x83f   : > { %4781 = vmatprep.mubr.msk.f32.mxu0 %vm5224_vm3, %v5225_v22  ;;  %4788 = vmatpush3.bf16.msra.mxu0 %v5085_v4 }
 0x840   : > { %4789 = vmatprep.subr.bf16.mxu0 %v5225_v22 }
 0x842   : > { %4782 = vmatmul.mubr.msk.f32.gmra.mrb[18].mxu0 %vm1798_vm4, %v1796_v44 }
 0x843   : > { %4784 = vmatprep.mubr.msk.f32.mxu0 %vm5224_vm3, %v5225_v22  ;;  %4790 = vmatpush3.bf16.msra.mxu0 %v5086_v5 }
 0x844   : > { %4791 = vmatprep.subr.bf16.mxu0 %v5225_v22 }
 0x846   : > { %4785 = vmatmul.mubr.msk.f32.gmra.mrb[20].mxu0 %vm1798_vm4, %v1797_v45 }
 0x847   : > { %4799 = vmatprep.mubr.msk.bf16.mxu0 %vm5224_vm3, %v5225_v22  ;;  %4792 = vmatpush3.bf16.msra.mxu0 %v5087_v6 }
 0x848   : > { %4793 = vmatprep.subr.bf16.mxu0 %v5225_v22 }
 0x84b   : > { %4794 = vmatpush3.bf16.msra.mxu0 %v5088_v7 }
 0x84c   : > { %4795 = vmatprep.subr.bf16.mxu0 %v5225_v22 }
 0x84f   : > { %4796 = vmatpush3.bf16.msra.mxu0 %v5089_v8 }
 0x850   : > { %4797 = vmatprep.subr.bf16.mxu0 %v5225_v22 }
 0x853   : > { %4798 = vmatpush3.bf16.msra.mxu0 %v5090_v9 }
 0x854   : > { %4803 = vmatprep.subr.bf16.mxu0 %v5225_v22 }
 0x911   : > { %v1874_v58 = vpop.f32.mrb[16].mxu0 }
 0x912   : > { %v4780_v59 = vpop.f32.mrb[17].mxu0 }
 0x913   : > { %v5099_v59 = vld [vmem:[%s6591_s3 + $0x70] sm:$0xff]  }
 0x915   : > { %v1879_v60 = vpop.f32.mrb[18].mxu0 }
 0x916   : > { %1889 = vrot.lane.b32.xlu1 %v1879_v60, %s5222_s20  ;;  %v4783_v61 = vpop.f32.mrb[19].mxu0  ;;  %v5100_v60 = vld [vmem:[%s6591_s3 + $0x78] sm:$0xff]  }
 0x917   : > { %v5101_v61 = vld [vmem:[%s6591_s3 + $0x80] sm:$0xff]  }
 0x919   : > { %v1884_v62 = vpop.f32.mrb[20].mxu0 }
 0x91a   : > { %v1894_v33 = vpack.c.bf16 %v1884_v62, %v1884_v62  ;;  %v4786_v63 = vpop.f32.mrb[21].mxu0  ;;  %v5102_v62 = vld [vmem:[%s6591_s3 + $0x88] sm:$0xff]  }
 0x91c   : > { %4370 = vmatprep.mubr.msk.bf16.mxu1 %vm466_vm2, %v1894_v33  ;;  %v4391_v33 = vld [vmem:[%s6592_s4 + $0x1] ss:$0 sm:$0xff] }
 0x988   : > { %v1890_v0 = vpop.permute.xlu1 %1889 }
 0x989   : > { %v1892_v2 = vsel %vm466_vm2, %v1874_v58, %v1890_v0  ;;  %v5098_v58 = vld [vmem:[%s6591_s3 + $0x68] sm:$0xff]  }
 0x98a   : > { %v1893_v3 = vpack.c.bf16 %v1892_v2, %v1892_v2 }
 0x98c   : > { %2034 = vmatmul.mubr.bf16.vlgmr.msra.gmra.mrb[16].mxu1 %v1893_v3 }
 0x98d   : > { %4863 = vmatprep.mubr.msk.bf16.mxu1 %vm5224_vm3, %v5225_v22 }
 0xa5f   : > { %v2035_v10 = vpop.f32.mrb[16].mxu1 }
 0xa60   : > { %v5925_v11 = vadd.f32 %v4357_v43, %v2035_v10  ;;  %v2037_v12 = vpop.f32.mrb[17].mxu1 }
 0xa61   : > { %v2038_v13 = vpop.f32.mrb[18].mxu1 }
 0xa62   : > { %v2039_v14 = vpop.f32.mrb[19].mxu1  ;;  %2048 = vrot.lane.b32.xlu0 %v5925_v11, %s5226_s23  ;;  %v2045_v15 = vrot.slane %v5925_v11, 1  ;;  %v2042_v17 = vrot.slane %v5925_v11, 7 }
 0xa63   : > { %v5103_v14 = vld [vmem:[%s6591_s3 + $0x90] sm:$0xff]  }
 0xa64   : > { %v2047_v16 = vsel %vm453_vm0, %v2045_v15, 0.0  ;;  %v2044_v19 = vsel %vm446_vm1, 0.0, %v2042_v17  ;;  %v5104_v15 = vld [vmem:[%s6591_s3 + $0x98] sm:$0xff]   ;;  %v5106_v17 = vld [vmem:[%s6591_s3 + $0xa8] sm:$0xff]  }
 0xa65   : > { %2052 = vrot.lane.b32.xlu1 %v2047_v16, %s5222_s20  ;;  %v5105_v16 = vld [vmem:[%s6591_s3 + $0xa0] sm:$0xff]  }
 0xad4   : > { %v2049_v18 = vpop.permute.xlu0 %2048 }
 0xad5   : > { %v2056_v20 = vsel %vm2055_vm5, %v2044_v19, %v2049_v18  ;;  %v5107_v18 = vld [vmem:[%s6591_s3 + $0xb0] sm:$0xff]   ;;  %v5108_v19 = vld [vmem:[%s6591_s3 + $0xb8] sm:$0xff]  }
 0xad7   : > { %v2053_v21 = vpop.permute.xlu1 %2052 }
 0xad8   : > { %v2057_v25 = vsel %vm466_vm2, %v2056_v20, %v2053_v21  ;;  %v4411_v20 = vld [vmem:[%s6592_s4 + $0x2] ss:$0 sm:$0xff] }
 0xad9   : > { %v2058_v28 = vpack.c.bf16 %v2057_v25, %v2057_v25 }
 0xadb   : > { %4800 = vmatmul.mubr.msk.bf16.vlgmr.msra.gmra.mrb[24].mxu0 %vm2112_vm6, %v2058_v28 }
 0xadc   : > { %4815 = vmatprep.mubr.msk.bf16.mxu0 %vm5224_vm3, %v5225_v22  ;;  %4804 = vmatpush3.bf16.msra.mxu0 %v5091_v29 }
 0xadd   : > { %4805 = vmatprep.subr.bf16.mxu0 %v5225_v22 }
 0xae0   : > { %4806 = vmatpush3.bf16.msra.mxu0 %v5092_v30 }
 0xae1   : > { %4807 = vmatprep.subr.bf16.mxu0 %v5225_v22 }
 0xae4   : > { %4808 = vmatpush3.bf16.msra.mxu0 %v5093_v31 }
 0xae5   : > { %4809 = vmatprep.subr.bf16.mxu0 %v5225_v22 }
 0xae8   : > { %4810 = vmatpush3.bf16.msra.mxu0 %v5094_v32 }
 0xae9   : > { %4811 = vmatprep.subr.bf16.mxu0 %v5225_v22 }
 0xaec   : > { %4812 = vmatpush3.bf16.msra.mxu0 %v5095_v34 }
 0xaed   : > { %4813 = vmatprep.subr.bf16.mxu0 %v5225_v22 }
 0xaf0   : > { %4814 = vmatpush3.bf16.msra.mxu0 %v5096_v35 }
 0xaf1   : > { %4819 = vmatprep.subr.bf16.mxu0 %v5225_v22 }
 0xbae   : > { %v2150_v40 = vpop.f32.mrb[24].mxu0 }
 0xbaf   : > { %v2151_v42 = vadd.f32 %v4371_v36, %v2150_v40  ;;  %v4801_v44 = vpop.f32.mrb[25].mxu0 }
 0xbb0   : > { %v2153_v45 = vpop.f32.mrb[26].mxu0 }
 0xbb1   : > { %v2156_v46 = vmax.f32 %v2151_v42, 0.0  ;;  %v4802_v47 = vpop.f32.mrb[27].mxu0 }
 0xbb2   : > { %v5109_v47 = vld [vmem:[%s6596_s8] sm:$0xff]  }
 0xbb3   : > { %2164 = vrot.lane.b32.xlu0 %v2156_v46, %s5226_s23  ;;  %v2161_v48 = vrot.slane %v2156_v46, 1  ;;  %v2158_v50 = vrot.slane %v2156_v46, 7  ;;  %4852 = vmatpush3.bf16.msra.mxu1 %v5109_v47 }
 0xbb4   : > { %4853 = vmatprep.subr.bf16.mxu1 %v5225_v22 }
 0xbb5   : > { %v2163_v49 = vsel %vm453_vm0, %v2161_v48, 0.0  ;;  %v2160_v52 = vsel %vm446_vm1, 0.0, %v2158_v50  ;;  %v5110_v48 = vld [vmem:[%s6596_s8 + $0x8] sm:$0xff]   ;;  %v5112_v50 = vld [vmem:[%s6596_s8 + $0x18] sm:$0xff]  }
 0xbb6   : > { %2168 = vrot.lane.b32.xlu1 %v2163_v49, %s5222_s20  ;;  %v5111_v49 = vld [vmem:[%s6596_s8 + $0x10] sm:$0xff]  }
 0xbb7   : > { %4854 = vmatpush3.bf16.msra.mxu1 %v5110_v48 }
 0xbb8   : > { %4855 = vmatprep.subr.bf16.mxu1 %v5225_v22 }
 0xbbb   : > { %4856 = vmatpush3.bf16.msra.mxu1 %v5111_v49 }
 0xbbc   : > { %4857 = vmatprep.subr.bf16.mxu1 %v5225_v22 }
 0xbbf   : > { %4858 = vmatpush3.bf16.msra.mxu1 %v5112_v50 }
 0xbc0   : > { %4859 = vmatprep.subr.bf16.mxu1 %v5225_v22 }
 0xc25   : > { %v2165_v51 = vpop.permute.xlu0 %2164 }
 0xc26   : > { %v2171_v53 = vsel %vm2055_vm5, %v2160_v52, %v2165_v51  ;;  %v5113_v51 = vld [vmem:[%s6596_s8 + $0x20] sm:$0xff]   ;;  %v5114_v52 = vld [vmem:[%s6596_s8 + $0x28] sm:$0xff]  }
 0xc27   : > { %4860 = vmatpush3.bf16.msra.mxu1 %v5113_v51 }
 0xc28   : > { %v2169_v54 = vpop.permute.xlu1 %2168  ;;  %4861 = vmatprep.subr.bf16.mxu1 %v5225_v22 }
 0xc29   : > { %v2172_v55 = vsel %vm466_vm2, %v2171_v53, %v2169_v54  ;;  %v4431_v53 = vld [vmem:[%s6592_s4 + $0x3] ss:$0 sm:$0xff] }
 0xc2a   : > { %v2173_v56 = vpack.c.bf16 %v2172_v55, %v2172_v55 }
 0xc2b   : > { %4862 = vmatpush3.bf16.msra.mxu1 %v5114_v52 }
 0xc2c   : > { %4816 = vmatmul.mubr.msk.bf16.vlgmr.msra.gmra.mrb[28].mxu0 %vm2112_vm6, %v2173_v56  ;;  %3007 = vmatprep.subr.bf16.mxu1 %v5221_v1 }
 0xc2d   : > { %4831 = vmatprep.mubr.msk.bf16.mxu0 %vm5224_vm3, %v5225_v22  ;;  %4820 = vmatpush3.bf16.msra.mxu0 %v5097_v57 }
 0xc2e   : > { %4821 = vmatprep.subr.bf16.mxu0 %v5225_v22 }
 0xc31   : > { %4822 = vmatpush3.bf16.msra.mxu0 %v5098_v58 }
 0xc32   : > { %4823 = vmatprep.subr.bf16.mxu0 %v5225_v22 }
 0xc35   : > { %4824 = vmatpush3.bf16.msra.mxu0 %v5099_v59 }
 0xc36   : > { %4825 = vmatprep.subr.bf16.mxu0 %v5225_v22 }
 0xc39   : > { %4826 = vmatpush3.bf16.msra.mxu0 %v5100_v60 }
 0xc3a   : > { %4827 = vmatprep.subr.bf16.mxu0 %v5225_v22 }
 0xc3d   : > { %4828 = vmatpush3.bf16.msra.mxu0 %v5101_v61 }
 0xc3e   : > { %4829 = vmatprep.subr.bf16.mxu0 %v5225_v22 }
 0xc41   : > { %4830 = vmatpush3.bf16.msra.mxu0 %v5102_v62 }
 0xc42   : > { %4835 = vmatprep.subr.bf16.mxu0 %v5225_v22 }
 0xcff   : > { %v2265_v63 = vpop.f32.mrb[28].mxu0 }
 0xd00   : > { %v2266_v0 = vadd.f32 %v4391_v33, %v2265_v63  ;;  %v4817_v2 = vpop.f32.mrb[29].mxu0 }
 0xd01   : > { %v2268_v3 = vpop.f32.mrb[30].mxu0 }
 0xd02   : > { %v6003_v4 = vadd.f32 %v2266_v0, %v5925_v11  ;;  %v4818_v5 = vpop.f32.mrb[31].mxu0 }
 0xd04   : > { %2279 = vrot.lane.b32.xlu0 %v6003_v4, %s5226_s23  ;;  %v2276_v6 = vrot.slane %v6003_v4, 1  ;;  %v2273_v8 = vrot.slane %v6003_v4, 7 }
 0xd06   : > { %v2278_v7 = vsel %vm453_vm0, %v2276_v6, 0.0  ;;  %v2275_v43 = vsel %vm446_vm1, 0.0, %v2273_v8 }
 0xd07   : > { %2283 = vrot.lane.b32.xlu1 %v2278_v7, %s5222_s20 }
 0xd76   : > { %v2280_v9 = vpop.permute.xlu0 %2279 }
 0xd77   : > { %v2286_v10 = vsel %vm2055_vm5, %v2275_v43, %v2280_v9 }
 0xd79   : > { %v2284_v12 = vpop.permute.xlu1 %2283 }
 0xd7a   : > { %v2287_v11 = vsel %vm466_vm2, %v2286_v10, %v2284_v12  ;;  %v2615_v12 = vld [vmem:[%s6598_s10 + $0x8] sm:$0xff] }
 0xd7b   : > { %v2288_v13 = vpack.c.bf16 %v2287_v11, %v2287_v11  ;;  %v5115_v11 = vld [vmem:[%s6589_s1 + $0x300] sm:$0xff]  }
 0xd7d   : > { %4832 = vmatmul.mubr.msk.bf16.vlgmr.msra.gmra.mrb[32].mxu0 %vm2112_vm6, %v2288_v13  ;;  %v5116_v13 = vld [vmem:[%s6589_s1 + $0x308] sm:$0xff]  }
 0xd7e   : > { %4847 = vmatprep.mubr.msk.bf16.mxu0 %vm5224_vm3, %v5225_v22  ;;  %4836 = vmatpush3.bf16.msra.mxu0 %v5103_v14  ;;  %v5117_v14 = vld [vmem:[%s6589_s1 + $0x310] sm:$0xff]  }
 0xd7f   : > { %4837 = vmatprep.subr.bf16.mxu0 %v5225_v22 }
 0xd82   : > { %4838 = vmatpush3.bf16.msra.mxu0 %v5104_v15  ;;  %v5118_v15 = vld [vmem:[%s6589_s1 + $0x318] sm:$0xff]  }
 0xd83   : > { %4839 = vmatprep.subr.bf16.mxu0 %v5225_v22 }
 0xd86   : > { %4840 = vmatpush3.bf16.msra.mxu0 %v5105_v16  ;;  %v5119_v16 = vld [vmem:[%s6589_s1 + $0x320] sm:$0xff]  }
 0xd87   : > { %4841 = vmatprep.subr.bf16.mxu0 %v5225_v22 }
 0xd8a   : > { %4842 = vmatpush3.bf16.msra.mxu0 %v5106_v17  ;;  %v5120_v17 = vld [vmem:[%s6589_s1 + $0x328] sm:$0xff]  }
 0xd8b   : > { %4843 = vmatprep.subr.bf16.mxu0 %v5225_v22 }
 0xd8e   : > { %4844 = vmatpush3.bf16.msra.mxu0 %v5107_v18  ;;  %v5121_v18 = vld [vmem:[%s6589_s1 + $0x330] sm:$0xff]  }
 0xd8f   : > { %4845 = vmatprep.subr.bf16.mxu0 %v5225_v22 }
 0xd92   : > { %4846 = vmatpush3.bf16.msra.mxu0 %v5108_v19  ;;  %v5122_v19 = vld [vmem:[%s6589_s1 + $0x338] sm:$0xff]  }
 0xe50   : > { %v2380_v21 = vpop.f32.mrb[32].mxu0 }
 0xe51   : > { %v2381_v25 = vadd.f32 %v4411_v20, %v2380_v21  ;;  %v4833_v28 = vpop.f32.mrb[33].mxu0  ;;  %v5123_v20 = vld [vmem:[%s6589_s1 + $0x340] sm:$0xff]   ;;  %v5124_v21 = vld [vmem:[%s6589_s1 + $0x348] sm:$0xff]  }
 0xe52   : > { %v2383_v29 = vpop.f32.mrb[34].mxu0  ;;  %v5126_v28 = vld [vmem:[%s6589_s1 + $0x358] sm:$0xff]  }
 0xe53   : > { %v2386_v30 = vmax.f32 %v2381_v25, 0.0  ;;  %v4834_v31 = vpop.f32.mrb[35].mxu0  ;;  %v5125_v25 = vld [vmem:[%s6589_s1 + $0x350] sm:$0xff]   ;;  %v4446_v29 = vld [vmem:[%s6597_s9] ss:$0 sm:$0xff] }
 0xe55   : > { %2394 = vrot.lane.b32.xlu0 %v2386_v30, %s5226_s23  ;;  %v2391_v32 = vrot.slane %v2386_v30, 1  ;;  %v2388_v35 = vrot.slane %v2386_v30, 7 }
 0xe57   : > { %v2393_v34 = vsel %vm453_vm0, %v2391_v32, 0.0  ;;  %v2390_v40 = vsel %vm446_vm1, 0.0, %v2388_v35 }
 0xe58   : > { %2398 = vrot.lane.b32.xlu1 %v2393_v34, %s5222_s20 }
 0xec7   : > { %v2395_v36 = vpop.permute.xlu0 %2394 }
 0xec8   : > { %v2401_v42 = vsel %vm2055_vm5, %v2390_v40, %v2395_v36 }
 0xeca   : > { %v2399_v44 = vpop.permute.xlu1 %2398 }
 0xecb   : > { %v2402_v45 = vsel %vm466_vm2, %v2401_v42, %v2399_v44 }
 0xecc   : > { %v2403_v46 = vpack.c.bf16 %v2402_v45, %v2402_v45 }
 0xece   : > { %4848 = vmatmul.mubr.msk.bf16.vlgmr.msra.gmra.mrb[36].mxu0 %vm2112_vm6, %v2403_v46 }
 0xfa1   : > { %v2495_v54 = vpop.f32.mrb[36].mxu0 }
 0xfa2   : > { %v2496_v55 = vadd.f32 %v4431_v53, %v2495_v54  ;;  %v4849_v56 = vpop.f32.mrb[37].mxu0 }
 0xfa3   : > { %v2498_v57 = vpop.f32.mrb[38].mxu0  ;;  %v5127_v56 = vld [vmem:[%s6589_s1 + $0x360] sm:$0xff]  }
 0xfa4   : > { %v2501_v58 = vadd.f32 %v2496_v55, %v6003_v4  ;;  %v4850_v59 = vpop.f32.mrb[39].mxu0  ;;  %v2614_v4 = vld [vmem:[%s6598_s10] sm:$0xff]  ;;  %v5128_v57 = vld [vmem:[%s6589_s1 + $0x368] sm:$0xff]  }
 0xfa5   : > { %4871 = vmatprep.mubr.msk.f32.mxu0 %vm1798_vm4, %v2614_v4  ;;  %v5130_v59 = vld [vmem:[%s6589_s1 + $0x378] sm:$0xff]  }
 0xfa6   : > { %2509 = vrot.lane.b32.xlu0 %v2501_v58, %s5226_s23  ;;  %v2506_v60 = vrot.slane %v2501_v58, 1  ;;  %v2503_v62 = vrot.slane %v2501_v58, 7  ;;  %v5129_v58 = vld [vmem:[%s6589_s1 + $0x370] sm:$0xff]  }
 0xfa8   : > { %v2508_v61 = vsel %vm453_vm0, %v2506_v60, 0.0  ;;  %v2505_v63 = vsel %vm446_vm1, 0.0, %v2503_v62  ;;  %v5131_v60 = vld [vmem:[%s6589_s1 + $0x380] sm:$0xff]   ;;  %v5133_v62 = vld [vmem:[%s6589_s1 + $0x390] sm:$0xff]  }
 0xfa9   : > { %2513 = vrot.lane.b32.xlu1 %v2508_v61, %s5222_s20  ;;  %v5132_v61 = vld [vmem:[%s6589_s1 + $0x388] sm:$0xff]  }
0x1018   : > { %v2510_v33 = vpop.permute.xlu0 %2509 }
0x1019   : > { %v2516_v0 = vsel %vm2055_vm5, %v2505_v63, %v2510_v33  ;;  %v5134_v33 = vld [vmem:[%s6589_s1 + $0x398] sm:$0xff]   ;;  %v5135_v63 = vld [vmem:[%s6589_s1 + $0x3a0] sm:$0xff]  }
0x101b   : > { %v2514_v2 = vpop.permute.xlu1 %2513 }
0x101c   : > { %v2517_v3 = vsel %vm466_vm2, %v2516_v0, %v2514_v2  ;;  %v5136_v0 = vld [vmem:[%s6589_s1 + $0x3a8] sm:$0xff]   ;;  %v5137_v2 = vld [vmem:[%s6589_s1 + $0x3b0] sm:$0xff]  }
0x101d   : > { %v2518_v5 = vpack.c.bf16 %v2517_v3, %v2517_v3  ;;  %v5138_v3 = vld [vmem:[%s6589_s1 + $0x3b8] sm:$0xff]  }
0x101f   : > { %4864 = vmatmul.mubr.msk.bf16.vlgmr.msra.gmra.mrb[20].mxu1 %vm2112_vm6, %v2518_v5  ;;  %v4473_v5 = vld [vmem:[%s6590_s2 + $0x8] ss:$0 sm:$0xff] }
0x1020   : > { %3008 = vmatpush1.bf16.msra.mxu1 %v5127_v56  ;;  %v5149_v56 = vld [vmem:[%s6589_s1 + $0x3f0] sm:$0xff]  }
0x1021   : > { %3009 = vmatprep.subr.bf16.mxu1 %v5221_v1 }
0x1024   : > { %3010 = vmatpush1.bf16.msra.mxu1 %v5128_v57  ;;  %v5150_v57 = vld [vmem:[%s6589_s1 + $0x3f8] sm:$0xff]  }
0x1025   : > { %3011 = vmatprep.subr.bf16.mxu1 %v5221_v1 }
0x1028   : > { %3012 = vmatpush1.bf16.msra.mxu1 %v5129_v58  ;;  %v5151_v58 = vld [vmem:[%s6589_s1 + $0x400] sm:$0xff]  }
0x1029   : > { %3013 = vmatprep.subr.bf16.mxu1 %v5221_v1 }
0x102c   : > { %3014 = vmatpush1.bf16.msra.mxu1 %v5130_v59  ;;  %v5152_v59 = vld [vmem:[%s6589_s1 + $0x408] sm:$0xff]  }
0x102d   : > { %3015 = vmatprep.subr.bf16.mxu1 %v5221_v1 }
0x1030   : > { %3016 = vmatpush1.bf16.msra.mxu1 %v5131_v60  ;;  %v5153_v60 = vld [vmem:[%s6589_s1 + $0x410] sm:$0xff]  }
0x1031   : > { %3017 = vmatprep.subr.bf16.mxu1 %v5221_v1 }
0x1034   : > { %3018 = vmatpush1.bf16.msra.mxu1 %v5132_v61  ;;  %v4525_v61 = vld [vmem:[%s6600_s12] ss:$0 sm:$0xff] }
0x1035   : > { %3019 = vmatprep.subr.bf16.mxu1 %v5221_v1 }
0x1038   : > { %3020 = vmatpush1.bf16.msra.mxu1 %v5133_v62 }
0x1039   : > { %3021 = vmatprep.subr.bf16.mxu1 %v5221_v1 }
0x103c   : > { %3022 = vmatpush1.bf16.msra.mxu1 %v5134_v33 }
0x103d   : > { %3023 = vmatprep.subr.bf16.mxu1 %v5221_v1 }
0x1040   : > { %3024 = vmatpush1.bf16.msra.mxu1 %v5135_v63 }
0x1041   : > { %3025 = vmatprep.subr.bf16.mxu1 %v5221_v1 }
0x1044   : > { %3026 = vmatpush1.bf16.msra.mxu1 %v5136_v0 }
0x1045   : > { %3027 = vmatprep.subr.bf16.mxu1 %v5221_v1 }
0x1048   : > { %3028 = vmatpush1.bf16.msra.mxu1 %v5137_v2 }
0x1049   : > { %3029 = vmatprep.subr.bf16.mxu1 %v5221_v1 }
0x104c   : > { %3030 = vmatpush1.bf16.msra.mxu1 %v5138_v3 }
0x104d   : > { %3279 = vmatprep.subr.bf16.mxu1 %v5221_v1 }
0x10f2   : > { %v2604_v6 = vpop.f32.mrb[20].mxu1 }
0x10f3   : > { %2611 = vrot.lane.b32.xlu0 %v2604_v6, %s5222_s20  ;;  %v4865_v7 = vpop.f32.mrb[21].mxu1 }
0x10f4   : > { %v2607_v8 = vpop.f32.mrb[22].mxu1 }
0x10f5   : > { %v4866_v9 = vpop.f32.mrb[23].mxu1  ;;  %v5139_v8 = vld [vmem:[%s6599_s11] sm:$0xff]  }
0x1165   : > { %v2612_v43 = vpop.permute.xlu0 %2611 }
0x1166   : > { %v4889_v10 = vpack.c.bf16 %v2612_v43, %v2604_v6 }
0x1168   : > { %4890 = vmatprep.subr.bf16.mxu0 %v4889_v10 }
0x1169   : > { %4892 = vmatpush3.bf16.msra.mxu0 %v4889_v10 }
0x116a   : > { %2835 = vmatprep.subr.bf16.mxu0 %v5221_v1 }
0x116c   : > { %4872 = vmatmul.mubr.msk.f32.vlgmr.msra.gmra.mrb[22].mxu0 %vm1798_vm4, %v2615_v12 }
0x116d   : > { %2836 = vmatpush1.bf16.msra.mxu0 %v5115_v11  ;;  %v5140_v11 = vld [vmem:[%s6599_s11 + $0x8] sm:$0xff]  }
0x116e   : > { %2837 = vmatprep.subr.bf16.mxu0 %v5221_v1 }
0x1171   : > { %2838 = vmatpush1.bf16.msra.mxu0 %v5116_v13 }
0x1172   : > { %2839 = vmatprep.subr.bf16.mxu0 %v5221_v1 }
0x1175   : > { %2840 = vmatpush1.bf16.msra.mxu0 %v5117_v14 }
0x1176   : > { %2841 = vmatprep.subr.bf16.mxu0 %v5221_v1 }
0x1179   : > { %2842 = vmatpush1.bf16.msra.mxu0 %v5118_v15 }
0x117a   : > { %2843 = vmatprep.subr.bf16.mxu0 %v5221_v1 }
0x117d   : > { %2844 = vmatpush1.bf16.msra.mxu0 %v5119_v16 }
0x117e   : > { %2845 = vmatprep.subr.bf16.mxu0 %v5221_v1 }
0x1181   : > { %2846 = vmatpush1.bf16.msra.mxu0 %v5120_v17 }
0x1182   : > { %2847 = vmatprep.subr.bf16.mxu0 %v5221_v1 }
0x1185   : > { %2848 = vmatpush1.bf16.msra.mxu0 %v5121_v18 }
0x1186   : > { %2849 = vmatprep.subr.bf16.mxu0 %v5221_v1 }
0x1189   : > { %2850 = vmatpush1.bf16.msra.mxu0 %v5122_v19 }
0x118a   : > { %2851 = vmatprep.subr.bf16.mxu0 %v5221_v1 }
0x118d   : > { %2852 = vmatpush1.bf16.msra.mxu0 %v5123_v20 }
0x118e   : > { %2853 = vmatprep.subr.bf16.mxu0 %v5221_v1 }
0x1191   : > { %2854 = vmatpush1.bf16.msra.mxu0 %v5124_v21 }
0x1192   : > { %2855 = vmatprep.subr.bf16.mxu0 %v5221_v1 }
0x1195   : > { %2856 = vmatpush1.bf16.msra.mxu0 %v5125_v25 }
0x1196   : > { %2857 = vmatprep.subr.bf16.mxu0 %v5221_v1 }
0x1199   : > { %2858 = vmatpush1.bf16.msra.mxu0 %v5126_v28 }
0x119a   : > { %4874 = vmatprep.subr.bf16.mxu0 %v5225_v22 }
0x123f   : > { %v4873_v30 = vpop.f32.mrb[22].mxu0 }
0x1240   : > { %v2701_v31 = vadd.f32 %v4873_v30, %v4446_v29  ;;  %v2695_v32 = vpop.f32.mrb[23].mxu0 }
0x1241   : > { %v2696_v34 = vadd.f32 %v4446_v29, %v2695_v32 }
0x1242   : > { %v6147_v35 = vadd.f32 %v2701_v31, %v5822_v39 }
0x1243   : > { %v6150_v36 = vadd.f32 %v2696_v34, %v5819_v37 }
0x1244   : > { %v2715_v40 = vrot.slane %v6147_v35, 1  ;;  %v2709_v39 = vrot.slane %v6147_v35, 7 }
0x1245   : > { %v2714_v42 = vrot.slane %v6150_v36, 1  ;;  %v4942_v44 = vpack.i.bf16 %v6147_v35, %v6150_v36  ;;  %v2708_v37 = vrot.slane %v6150_v36, 7 }
0x1246   : > { %v2719_v45 = vsel %vm453_vm0, %v2715_v40, 0.0 }
0x1247   : > { %4943 = vrot.lane.b32.xlu1 %v4942_v44, %s5222_s20  ;;  %v2716_v46 = vsel %vm453_vm0, %v2714_v42, %v2715_v40  ;;  %v2710_v51 = vsel %vm446_vm1, %v2708_v37, %v2709_v39  ;;  %v2713_v52 = vsel %vm446_vm1, 0.0, %v2708_v37  ;;  %v5141_v42 = vld [vmem:[%s6599_s11 + $0x10] sm:$0xff]   ;;  %v5142_v44 = vld [vmem:[%s6599_s11 + $0x18] sm:$0xff]  }
0x1248   : > { %v2729_v47 = vpack.c.bf16 %v2719_v45, %v2716_v46  ;;  %v4511_v45 = vld [vmem:[%s6590_s2 + $0x9] ss:$0 sm:$0xff] }
0x124a   : > { %4486 = vmatprep.mubr.msk.bf16.mxu0 %vm466_vm2, %v2729_v47 }
0x12b9   : > { %v4944_v48 = vpop.permute.xlu1 %4943 }
0x12ba   : > { %v4946_v49 = vunpack.i.h.bf16 %v4944_v48  ;;  %v4945_v50 = vunpack.i.l.bf16 %v4944_v48 }
0x12bc   : > { %v2726_v53 = vsel %vm466_vm2, %v2713_v52, %v4945_v50  ;;  %v2727_v54 = vsel %vm466_vm2, %v2710_v51, %v4946_v49  ;;  %v5143_v52 = vld [vmem:[%s6589_s1 + $0x3c0] sm:$0xff]  }
0x12bd   : > { %v2728_v55 = vpack.c.bf16 %v2727_v54, %v2726_v53  ;;  %v5144_v53 = vld [vmem:[%s6589_s1 + $0x3c8] sm:$0xff]   ;;  %v5147_v54 = vld [vmem:[%s6589_s1 + $0x3e0] sm:$0xff]  }
0x12bf   : > { %2868 = vmatmul.mubr.bf16.vlgmr.msra.gmra.mrb[40].mxu0 %v2728_v55  ;;  %v5148_v55 = vld [vmem:[%s6589_s1 + $0x3e8] sm:$0xff]  }
0x12c0   : > { %4882 = vmatprep.mubr.msk.bf16.mxu0 %vm5224_vm3, %v5225_v22  ;;  %4875 = vmatpush3.bf16.msra.mxu0 %v5139_v8 }
0x12c1   : > { %4876 = vmatprep.subr.bf16.mxu0 %v5225_v22 }
0x12c4   : > { %4877 = vmatpush3.bf16.msra.mxu0 %v5140_v11 }
0x12c5   : > { %4878 = vmatprep.subr.bf16.mxu0 %v5225_v22 }
0x12c8   : > { %4879 = vmatpush3.bf16.msra.mxu0 %v5141_v42 }
0x12c9   : > { %4880 = vmatprep.subr.bf16.mxu0 %v5225_v22 }
0x12cc   : > { %4881 = vmatpush3.bf16.msra.mxu0 %v5142_v44 }
0x12cd   : > { %3451 = vmatprep.subr.bf16.mxu0 %v5221_v1 }
0x1392   : > { %v2869_v4 = vpop.f32.mrb[40].mxu0 }
0x1393   : > { %v2870_v6 = vadd.f32 %v4473_v5, %v2869_v4  ;;  %v2871_v7 = vpop.f32.mrb[41].mxu0 }
0x1394   : > { %v2872_v9 = vpop.f32.mrb[42].mxu0 }
0x1395   : > { %v2876_v43 = vmax.f32 %v2870_v6, 0.0  ;;  %v2873_v10 = vadd.f32 %v4473_v5, %v2872_v9  ;;  %v2874_v12 = vpop.f32.mrb[43].mxu0 }
0x1396   : > { %v4264_v12 = vld [vmem:[%s6590_s2 + $0x5] ss:$0 sm:$0xff] }
0x1397   : > { %v2877_v13 = vmax.f32 %v2873_v10, 0.0  ;;  %v2880_v14 = vrot.slane %v2876_v43, 7  ;;  %v2886_v15 = vrot.slane %v2876_v43, 1  ;;  %v1470_v11 = vadd.f32 %v4264_v12, %v5811_v24 }
0x1399   : > { %v2881_v16 = vrot.slane %v2877_v13, 7  ;;  %v2887_v17 = vrot.slane %v2877_v13, 1  ;;  %v4947_v18 = vpack.i.bf16 %v2877_v13, %v2876_v43  ;;  %v2885_v31 = vsel %vm446_vm1, 0.0, %v2880_v14  ;;  %v5154_v13 = vld [vmem:[%s6589_s1 + $0x418] sm:$0xff]  }
0x139b   : > { %v2891_v19 = vsel %vm453_vm0, %v2887_v17, 0.0  ;;  %4948 = vrot.lane.b32.xlu0 %v4947_v18, %s5222_s20  ;;  %v2888_v20 = vsel %vm453_vm0, %v2886_v15, %v2887_v17  ;;  %v2882_v21 = vsel %vm446_vm1, %v2880_v14, %v2881_v16  ;;  %v1473_v14 = vadd.f32 %v4264_v12, %v5813_v26 }
0x139c   : > { %v2901_v25 = vpack.c.bf16 %v2891_v19, %v2888_v20  ;;  %v1476_v15 = vadd.f32 %v1470_v11, %v5622_v38 }
0x139d   : > { %v1477_v17 = vadd.f32 %v1473_v14, %v5625_v41  ;;  %v5168_v14 = vld [vmem:[%s6589_s1 + $0x488] sm:$0xff]  }
0x139e   : > { %4524 = vmatprep.mubr.msk.bf16.mxu1 %vm466_vm2, %v2901_v25 }
0x140d   : > { %v4949_v28 = vpop.permute.xlu0 %4948 }
0x140e   : > { %v4951_v29 = vunpack.i.h.bf16 %v4949_v28  ;;  %v4950_v30 = vunpack.i.l.bf16 %v4949_v28 }
0x1410   : > { %v2898_v32 = vsel %vm466_vm2, %v2885_v31, %v4950_v30  ;;  %v2899_v34 = vsel %vm466_vm2, %v2882_v21, %v4951_v29 }
0x1411   : > { %v2900_v40 = vpack.c.bf16 %v2899_v34, %v2898_v32 }
0x1413   : > { %3040 = vmatmul.mubr.bf16.vlgmr.msra.gmra.mrb[24].mxu1 %v2900_v40 }
0x1414   : > { %3280 = vmatpush1.bf16.msra.mxu1 %v5143_v52  ;;  %v5164_v52 = vld [vmem:[%s6589_s1 + $0x468] sm:$0xff]  }
0x1415   : > { %3281 = vmatprep.subr.bf16.mxu1 %v5221_v1 }
0x1418   : > { %3282 = vmatpush1.bf16.msra.mxu1 %v5144_v53  ;;  %v5165_v53 = vld [vmem:[%s6589_s1 + $0x470] sm:$0xff]  }
0x1419   : > { %3283 = vmatprep.subr.bf16.mxu1 %v5221_v1 }
0x14e6   : > { %v3041_v46 = vpop.f32.mrb[24].mxu1 }
0x14e7   : > { %v3042_v47 = vadd.f32 %v4511_v45, %v3041_v46  ;;  %v3043_v39 = vpop.f32.mrb[25].mxu1  ;;  %v5155_v46 = vld [vmem:[%s6589_s1 + $0x420] sm:$0xff]  }
0x14e8   : > { %v3044_v37 = vpop.f32.mrb[26].mxu1  ;;  %v5157_v39 = vld [vmem:[%s6589_s1 + $0x430] sm:$0xff]  }
0x14e9   : > { %v3045_v48 = vadd.f32 %v4511_v45, %v3044_v37  ;;  %v3046_v49 = vpop.f32.mrb[27].mxu1  ;;  %v3048_v50 = vadd.f32 %v3042_v47, %v6150_v36  ;;  %v5145_v36 = vld [vmem:[%s6589_s1 + $0x3d0] sm:$0xff]   ;;  %v5156_v47 = vld [vmem:[%s6589_s1 + $0x428] sm:$0xff]   ;;  %v5158_v37 = vld [vmem:[%s6589_s1 + $0x438] sm:$0xff]  }
0x14ea   : > { %3284 = vmatpush1.bf16.msra.mxu1 %v5145_v36  ;;  %v5160_v49 = vld [vmem:[%s6589_s1 + $0x448] sm:$0xff]   ;;  %v5166_v36 = vld [vmem:[%s6589_s1 + $0x478] sm:$0xff]  }
0x14eb   : > { %v3049_v22 = vadd.f32 %v3045_v48, %v6147_v35  ;;  %v5146_v35 = vld [vmem:[%s6589_s1 + $0x3d8] sm:$0xff]   ;;  %3285 = vmatprep.subr.bf16.mxu1 %v5221_v1  ;;  %v5159_v48 = vld [vmem:[%s6589_s1 + $0x440] sm:$0xff]  }
0x14ed   : > { %v3050_v51 = vpack.c.bf16 %v3049_v22, %v3048_v50  ;;  %v5161_v50 = vld [vmem:[%s6589_s1 + $0x450] sm:$0xff]   ;;  %v5162_v22 = vld [vmem:[%s6589_s1 + $0x458] sm:$0xff]  }
0x14ee   : > { %3286 = vmatpush1.bf16.msra.mxu1 %v5146_v35  ;;  %v4555_v35 = vld [vmem:[%s6590_s2 + $0xa] ss:$0 sm:$0xff] }
0x14ef   : > { %4883 = vmatmul.mubr.msk.bf16.vlgmr.msra.gmra.mrb[44].mxu0 %vm466_vm2, %v3050_v51  ;;  %3287 = vmatprep.subr.bf16.mxu1 %v5221_v1  ;;  %v5163_v51 = vld [vmem:[%s6589_s1 + $0x460] sm:$0xff]  }
0x14f0   : > { %3452 = vmatpush1.bf16.msra.mxu0 %v5155_v46 }
0x14f1   : > { %3453 = vmatprep.subr.bf16.mxu0 %v5221_v1 }
0x14f2   : > { %3288 = vmatpush1.bf16.msra.mxu1 %v5147_v54 }
0x14f3   : > { %3289 = vmatprep.subr.bf16.mxu1 %v5221_v1 }
0x14f4   : > { %3454 = vmatpush1.bf16.msra.mxu0 %v5156_v47 }
0x14f5   : > { %3455 = vmatprep.subr.bf16.mxu0 %v5221_v1 }
0x14f6   : > { %3290 = vmatpush1.bf16.msra.mxu1 %v5148_v55 }
0x14f7   : > { %3291 = vmatprep.subr.bf16.mxu1 %v5221_v1 }
0x14f8   : > { %3456 = vmatpush1.bf16.msra.mxu0 %v5157_v39 }
0x14f9   : > { %3457 = vmatprep.subr.bf16.mxu0 %v5221_v1 }
0x14fa   : > { %3292 = vmatpush1.bf16.msra.mxu1 %v5149_v56 }
0x14fb   : > { %3293 = vmatprep.subr.bf16.mxu1 %v5221_v1 }
0x14fc   : > { %3458 = vmatpush1.bf16.msra.mxu0 %v5158_v37 }
0x14fd   : > { %3459 = vmatprep.subr.bf16.mxu0 %v5221_v1 }
0x14fe   : > { %3294 = vmatpush1.bf16.msra.mxu1 %v5150_v57 }
0x14ff   : > { %3295 = vmatprep.subr.bf16.mxu1 %v5221_v1 }
0x1500   : > { %3460 = vmatpush1.bf16.msra.mxu0 %v5159_v48 }
0x1501   : > { %3461 = vmatprep.subr.bf16.mxu0 %v5221_v1 }
0x1502   : > { %3296 = vmatpush1.bf16.msra.mxu1 %v5151_v58 }
0x1503   : > { %3297 = vmatprep.subr.bf16.mxu1 %v5221_v1 }
0x1504   : > { %3462 = vmatpush1.bf16.msra.mxu0 %v5160_v49 }
0x1505   : > { %3463 = vmatprep.subr.bf16.mxu0 %v5221_v1 }
0x1506   : > { %3298 = vmatpush1.bf16.msra.mxu1 %v5152_v59 }
0x1507   : > { %3299 = vmatprep.subr.bf16.mxu1 %v5221_v1 }
0x1508   : > { %3464 = vmatpush1.bf16.msra.mxu0 %v5161_v50 }
0x1509   : > { %3465 = vmatprep.subr.bf16.mxu0 %v5221_v1 }
0x150a   : > { %3300 = vmatpush1.bf16.msra.mxu1 %v5153_v60 }
0x150b   : > { %3301 = vmatprep.subr.bf16.mxu1 %v5221_v1 }
0x150c   : > { %3466 = vmatpush1.bf16.msra.mxu0 %v5162_v22 }
0x150d   : > { %3467 = vmatprep.subr.bf16.mxu0 %v5221_v1 }
0x150e   : > { %3302 = vmatpush1.bf16.msra.mxu1 %v5154_v13  ;;  %v5167_v13 = vld [vmem:[%s6589_s1 + $0x480] sm:$0xff]  }
0x150f   : > { %3623 = vmatprep.subr.bf16.mxu1 %v5221_v1 }
0x1510   : > { %3468 = vmatpush1.bf16.msra.mxu0 %v5163_v51 }
0x1511   : > { %3469 = vmatprep.subr.bf16.mxu0 %v5221_v1 }
0x1514   : > { %3470 = vmatpush1.bf16.msra.mxu0 %v5164_v52 }
0x1515   : > { %3471 = vmatprep.subr.bf16.mxu0 %v5221_v1 }
0x1518   : > { %3472 = vmatpush1.bf16.msra.mxu0 %v5165_v53 }
0x1519   : > { %3473 = vmatprep.subr.bf16.mxu0 %v5221_v1 }
0x151c   : > { %3474 = vmatpush1.bf16.msra.mxu0 %v5166_v36  ;;  %v5179_v36 = vld [vmem:[%s6589_s1 + $0x4e0] sm:$0xff]  }
0x151d   : > { %3795 = vmatprep.subr.bf16.mxu0 %v5221_v1 }
0x15c2   : > { %v3127_v62 = vpop.f32.mrb[44].mxu0 }
0x15c3   : > { %v3128_v33 = vadd.f32 %v4525_v61, %v3127_v62  ;;  %v4884_v63 = vpop.f32.mrb[45].mxu0 }
0x15c4   : > { %v3130_v0 = vpop.f32.mrb[46].mxu0 }
0x15c5   : > { %v3134_v2 = vsub.f32 0.0, %v3128_v33  ;;  %v3131_v3 = vadd.f32 %v4525_v61, %v3130_v0  ;;  %v4885_v5 = vpop.f32.mrb[47].mxu0 }
0x15c7   : > { %v3136_v4 = vmul.f32 1.442695, %v3134_v2  ;;  %v3135_v6 = vsub.f32 0.0, %v3131_v3 }
0x15c9   : > { %5203 = vpow2.f32 %v3136_v4  ;;  %v3138_v7 = vmul.f32 1.442695, %v3135_v6 }
0x15cb   : > { %5205 = vpow2.f32 %v3138_v7 }
0x15d3   : > { %v5204_v8 = vpop.eup %5203 }
0x15d4   : > { %v3140_v9 = vadd.f32 1.0, %v5204_v8 }
0x15d5   : > { %v5206_v43 = vpop.eup %5205 }
0x15d6   : > { %5207 = vrcp.f32 %v3140_v9  ;;  %v3141_v10 = vadd.f32 1.0, %v5206_v43 }
0x15d8   : > { %5209 = vrcp.f32 %v3141_v10 }
0x15e0   : > { %v5208_v16 = vpop.eup %5207 }
0x15e1   : > { %v3146_v18 = vmul.f32 %v5208_v16, %v1476_v15  ;;  %v5169_v15 = vld [vmem:[%s6589_s1 + $0x490] sm:$0xff]   ;;  %v5170_v16 = vld [vmem:[%s6589_s1 + $0x498] sm:$0xff]  }
0x15e2   : > { %v5210_v19 = vpop.eup %5209 }
0x15e3   : > { %v3147_v20 = vmul.f32 %v5210_v19, %v1477_v17  ;;  %v6308_v21 = vadd.f32 %v3146_v18, %v5486_v23  ;;  %v5171_v17 = vld [vmem:[%s6589_s1 + $0x4a0] sm:$0xff]   ;;  %v5172_v18 = vld [vmem:[%s6589_s1 + $0x4a8] sm:$0xff]   ;;  %v5173_v19 = vld [vmem:[%s6589_s1 + $0x4b0] sm:$0xff]  }
0x15e5   : > { %v6311_v24 = vadd.f32 %v3147_v20, %v5489_v27  ;;  %v3158_v25 = vrot.slane %v6308_v21, 1  ;;  %v3152_v27 = vrot.slane %v6308_v21, 7  ;;  %v5174_v20 = vld [vmem:[%s6589_s1 + $0x4b8] sm:$0xff]  }
0x15e7   : > { %v4952_v26 = vpack.i.bf16 %v6311_v24, %v6308_v21  ;;  %v3159_v38 = vrot.slane %v6311_v24, 1  ;;  %v3153_v23 = vrot.slane %v6311_v24, 7  ;;  %v3157_v40 = vsel %vm446_vm1, 0.0, %v3152_v27 }
0x15e9   : > { %4953 = vrot.lane.b32.xlu1 %v4952_v26, %s5222_s20  ;;  %v3160_v41 = vsel %vm453_vm0, %v3158_v25, %v3159_v38  ;;  %v3163_v28 = vsel %vm453_vm0, %v3159_v38, 0.0  ;;  %v3154_v34 = vsel %vm446_vm1, %v3152_v27, %v3153_v23  ;;  %v5175_v26 = vld [vmem:[%s6589_s1 + $0x4c0] sm:$0xff]   ;;  %v5176_v25 = vld [vmem:[%s6589_s1 + $0x4c8] sm:$0xff]   ;;  %v5177_v38 = vld [vmem:[%s6589_s1 + $0x4d0] sm:$0xff]  }
0x15ea   : > { %v3173_v29 = vpack.c.bf16 %v3163_v28, %v3160_v41  ;;  %v5178_v41 = vld [vmem:[%s6589_s1 + $0x4d8] sm:$0xff]   ;;  %v4593_v28 = vld [vmem:[%s6590_s2 + $0xb] ss:$0 sm:$0xff] }
0x15ec   : > { %4568 = vmatprep.mubr.msk.bf16.mxu1 %vm466_vm2, %v3173_v29 }
0x165b   : > { %v4954_v30 = vpop.permute.xlu1 %4953 }
0x165c   : > { %v4956_v31 = vunpack.i.h.bf16 %v4954_v30  ;;  %v4955_v32 = vunpack.i.l.bf16 %v4954_v30 }
0x165e   : > { %v3170_v42 = vsel %vm466_vm2, %v3157_v40, %v4955_v32  ;;  %v3171_v44 = vsel %vm466_vm2, %v3154_v34, %v4956_v31 }
0x165f   : > { %v3172_v45 = vpack.c.bf16 %v3171_v44, %v3170_v42 }
0x1661   : > { %3312 = vmatmul.mubr.bf16.vlgmr.msra.gmra.mrb[28].mxu1 %v3172_v45 }
0x1662   : > { %3624 = vmatpush1.bf16.msra.mxu1 %v5167_v13 }
0x1663   : > { %3625 = vmatprep.subr.bf16.mxu1 %v5221_v1 }
0x1666   : > { %3626 = vmatpush1.bf16.msra.mxu1 %v5168_v14 }
0x1667   : > { %3627 = vmatprep.subr.bf16.mxu1 %v5221_v1 }
0x166a   : > { %3628 = vmatpush1.bf16.msra.mxu1 %v5169_v15 }
0x166b   : > { %3629 = vmatprep.subr.bf16.mxu1 %v5221_v1 }
0x166e   : > { %3630 = vmatpush1.bf16.msra.mxu1 %v5170_v16 }
0x166f   : > { %3631 = vmatprep.subr.bf16.mxu1 %v5221_v1 }
0x1672   : > { %3632 = vmatpush1.bf16.msra.mxu1 %v5171_v17 }
0x1673   : > { %3633 = vmatprep.subr.bf16.mxu1 %v5221_v1 }
0x1676   : > { %3634 = vmatpush1.bf16.msra.mxu1 %v5172_v18 }
0x1677   : > { %3635 = vmatprep.subr.bf16.mxu1 %v5221_v1 }
0x167a   : > { %3636 = vmatpush1.bf16.msra.mxu1 %v5173_v19 }
0x167b   : > { %3637 = vmatprep.subr.bf16.mxu1 %v5221_v1 }
0x167e   : > { %3638 = vmatpush1.bf16.msra.mxu1 %v5174_v20 }
0x167f   : > { %3639 = vmatprep.subr.bf16.mxu1 %v5221_v1 }
0x1682   : > { %3640 = vmatpush1.bf16.msra.mxu1 %v5175_v26 }
0x1683   : > { %3641 = vmatprep.subr.bf16.mxu1 %v5221_v1 }
0x1686   : > { %3642 = vmatpush1.bf16.msra.mxu1 %v5176_v25 }
0x1687   : > { %3643 = vmatprep.subr.bf16.mxu1 %v5221_v1 }
0x168a   : > { %3644 = vmatpush1.bf16.msra.mxu1 %v5177_v38 }
0x168b   : > { %3645 = vmatprep.subr.bf16.mxu1 %v5221_v1 }
0x168e   : > { %3646 = vmatpush1.bf16.msra.mxu1 %v5178_v41  ;;  %v5191_v41 = vld [vmem:[%s6589_s1 + $0x540] sm:$0xff]  }
0x168f   : > { %3967 = vmatprep.subr.bf16.mxu1 %v5221_v1 }
0x1734   : > { %v3313_v54 = vpop.f32.mrb[28].mxu1 }
0x1735   : > { %v3314_v55 = vadd.f32 %v4555_v35, %v3313_v54  ;;  %v3315_v56 = vpop.f32.mrb[29].mxu1  ;;  %v5181_v54 = vld [vmem:[%s6589_s1 + $0x4f0] sm:$0xff]  }
0x1736   : > { %v3316_v57 = vpop.f32.mrb[30].mxu1  ;;  %v5183_v56 = vld [vmem:[%s6589_s1 + $0x500] sm:$0xff]  }
0x1737   : > { %v3320_v58 = vmax.f32 %v3314_v55, 0.0  ;;  %v3317_v59 = vadd.f32 %v4555_v35, %v3316_v57  ;;  %v3318_v60 = vpop.f32.mrb[31].mxu1  ;;  %v5180_v35 = vld [vmem:[%s6589_s1 + $0x4e8] sm:$0xff]   ;;  %v5182_v55 = vld [vmem:[%s6589_s1 + $0x4f8] sm:$0xff]  }
0x1738   : > { %v5184_v57 = vld [vmem:[%s6589_s1 + $0x508] sm:$0xff]   ;;  %v5187_v60 = vld [vmem:[%s6589_s1 + $0x520] sm:$0xff]  }
0x1739   : > { %v3321_v61 = vmax.f32 %v3317_v59, 0.0  ;;  %v3324_v62 = vrot.slane %v3320_v58, 7  ;;  %v3330_v33 = vrot.slane %v3320_v58, 1  ;;  %v5186_v59 = vld [vmem:[%s6589_s1 + $0x518] sm:$0xff]  }
0x173b   : > { %v3325_v63 = vrot.slane %v3321_v61, 7  ;;  %v3331_v0 = vrot.slane %v3321_v61, 1  ;;  %v4957_v2 = vpack.i.bf16 %v3321_v61, %v3320_v58  ;;  %v3329_v43 = vsel %vm446_vm1, 0.0, %v3324_v62  ;;  %v5185_v58 = vld [vmem:[%s6589_s1 + $0x510] sm:$0xff]   ;;  %v5188_v61 = vld [vmem:[%s6589_s1 + $0x528] sm:$0xff]  }
0x173d   : > { %v3335_v3 = vsel %vm453_vm0, %v3331_v0, 0.0  ;;  %4958 = vrot.lane.b32.xlu0 %v4957_v2, %s5222_s20  ;;  %v3332_v5 = vsel %vm453_vm0, %v3330_v33, %v3331_v0  ;;  %v3326_v4 = vsel %vm446_vm1, %v3324_v62, %v3325_v63  ;;  %v5189_v62 = vld [vmem:[%s6589_s1 + $0x530] sm:$0xff]   ;;  %v5190_v33 = vld [vmem:[%s6589_s1 + $0x538] sm:$0xff]   ;;  %v4631_v63 = vld [vmem:[%s6590_s2 + $0xc] ss:$0 sm:$0xff] }
0x173e   : > { %v3345_v6 = vpack.c.bf16 %v3335_v3, %v3332_v5 }
0x1740   : > { %4606 = vmatprep.mubr.msk.bf16.mxu0 %vm466_vm2, %v3345_v6 }
0x17af   : > { %v4959_v7 = vpop.permute.xlu0 %4958 }
0x17b0   : > { %v4961_v8 = vunpack.i.h.bf16 %v4959_v7  ;;  %v4960_v9 = vunpack.i.l.bf16 %v4959_v7 }
0x17b2   : > { %v3342_v10 = vsel %vm466_vm2, %v3329_v43, %v4960_v9  ;;  %v3343_v12 = vsel %vm466_vm2, %v3326_v4, %v4961_v8 }
0x17b3   : > { %v3344_v11 = vpack.c.bf16 %v3343_v12, %v3342_v10 }
0x17b5   : > { %3484 = vmatmul.mubr.bf16.vlgmr.msra.gmra.mrb[48].mxu0 %v3344_v11 }
0x17b6   : > { %3796 = vmatpush1.bf16.msra.mxu0 %v5179_v36 }
0x17b7   : > { %3797 = vmatprep.subr.bf16.mxu0 %v5221_v1 }
0x17ba   : > { %3798 = vmatpush1.bf16.msra.mxu0 %v5180_v35 }
0x17bb   : > { %3799 = vmatprep.subr.bf16.mxu0 %v5221_v1 }
0x17be   : > { %3800 = vmatpush1.bf16.msra.mxu0 %v5181_v54 }
0x17bf   : > { %3801 = vmatprep.subr.bf16.mxu0 %v5221_v1 }
0x17c2   : > { %3802 = vmatpush1.bf16.msra.mxu0 %v5182_v55 }
0x17c3   : > { %3803 = vmatprep.subr.bf16.mxu0 %v5221_v1 }
0x17c6   : > { %3804 = vmatpush1.bf16.msra.mxu0 %v5183_v56 }
0x17c7   : > { %3805 = vmatprep.subr.bf16.mxu0 %v5221_v1 }
0x17ca   : > { %3806 = vmatpush1.bf16.msra.mxu0 %v5184_v57 }
0x17cb   : > { %3807 = vmatprep.subr.bf16.mxu0 %v5221_v1 }
0x17ce   : > { %3808 = vmatpush1.bf16.msra.mxu0 %v5185_v58 }
0x17cf   : > { %3809 = vmatprep.subr.bf16.mxu0 %v5221_v1 }
0x17d2   : > { %3810 = vmatpush1.bf16.msra.mxu0 %v5186_v59 }
0x17d3   : > { %3811 = vmatprep.subr.bf16.mxu0 %v5221_v1 }
0x17d6   : > { %3812 = vmatpush1.bf16.msra.mxu0 %v5187_v60 }
0x17d7   : > { %3813 = vmatprep.subr.bf16.mxu0 %v5221_v1 }
0x17da   : > { %3814 = vmatpush1.bf16.msra.mxu0 %v5188_v61 }
0x17db   : > { %3815 = vmatprep.subr.bf16.mxu0 %v5221_v1 }
0x17de   : > { %3816 = vmatpush1.bf16.msra.mxu0 %v5189_v62  ;;  %v4707_v62 = vld [vmem:[%s6590_s2 + $0xe] ss:$0 sm:$0xff] }
0x17df   : > { %3817 = vmatprep.subr.bf16.mxu0 %v5221_v1 }
0x17e2   : > { %3818 = vmatpush1.bf16.msra.mxu0 %v5190_v33 }
0x1888   : > { %v3485_v29 = vpop.f32.mrb[48].mxu0 }
0x1889   : > { %v3486_v23 = vadd.f32 %v4593_v28, %v3485_v29  ;;  %v3487_v27 = vpop.f32.mrb[49].mxu0  ;;  %v5193_v29 = vld [vmem:[%s6589_s1 + $0x550] sm:$0xff]  }
0x188a   : > { %v3488_v30 = vpop.f32.mrb[50].mxu0  ;;  %v5195_v27 = vld [vmem:[%s6589_s1 + $0x560] sm:$0xff]  }
0x188b   : > { %v6438_v31 = vadd.f32 %v3486_v23, %v6308_v21  ;;  %v3489_v32 = vadd.f32 %v4593_v28, %v3488_v30  ;;  %v3490_v34 = vpop.f32.mrb[51].mxu0  ;;  %v5192_v28 = vld [vmem:[%s6589_s1 + $0x548] sm:$0xff]   ;;  %v5194_v23 = vld [vmem:[%s6589_s1 + $0x558] sm:$0xff]  }
0x188c   : > { %v5196_v30 = vld [vmem:[%s6589_s1 + $0x568] sm:$0xff]   ;;  %v5198_v34 = vld [vmem:[%s6589_s1 + $0x578] sm:$0xff]  }
0x188d   : > { %v6441_v40 = vadd.f32 %v3489_v32, %v6311_v24  ;;  %v3502_v42 = vrot.slane %v6438_v31, 1  ;;  %v3496_v24 = vrot.slane %v6438_v31, 7  ;;  %v5197_v32 = vld [vmem:[%s6589_s1 + $0x570] sm:$0xff]  }
0x188f   : > { %v4962_v44 = vpack.i.bf16 %v6441_v40, %v6438_v31  ;;  %v3503_v45 = vrot.slane %v6441_v40, 1  ;;  %v3497_v39 = vrot.slane %v6441_v40, 7  ;;  %v3501_v22 = vsel %vm446_vm1, 0.0, %v3496_v24 }
0x1891   : > { %4963 = vrot.lane.b32.xlu1 %v4962_v44, %s5222_s20  ;;  %v3504_v46 = vsel %vm453_vm0, %v3502_v42, %v3503_v45  ;;  %v3507_v47 = vsel %vm453_vm0, %v3503_v45, 0.0  ;;  %v3498_v50 = vsel %vm446_vm1, %v3496_v24, %v3497_v39  ;;  %v5199_v42 = vld [vmem:[%s6589_s1 + $0x580] sm:$0xff]   ;;  %v5200_v44 = vld [vmem:[%s6589_s1 + $0x588] sm:$0xff]   ;;  %v5201_v45 = vld [vmem:[%s6589_s1 + $0x590] sm:$0xff]  }
0x1892   : > { %v3517_v21 = vpack.c.bf16 %v3507_v47, %v3504_v46  ;;  %v5202_v46 = vld [vmem:[%s6589_s1 + $0x598] sm:$0xff]   ;;  %v4669_v47 = vld [vmem:[%s6590_s2 + $0xd] ss:$0 sm:$0xff] }
0x1894   : > { %4644 = vmatprep.mubr.msk.bf16.mxu1 %vm466_vm2, %v3517_v21 }
0x1903   : > { %v4964_v37 = vpop.permute.xlu1 %4963 }
0x1904   : > { %v4966_v48 = vunpack.i.h.bf16 %v4964_v37  ;;  %v4965_v49 = vunpack.i.l.bf16 %v4964_v37 }
0x1906   : > { %v3514_v51 = vsel %vm466_vm2, %v3501_v22, %v4965_v49  ;;  %v3515_v52 = vsel %vm466_vm2, %v3498_v50, %v4966_v48 }
0x1907   : > { %v3516_v53 = vpack.c.bf16 %v3515_v52, %v3514_v51 }
0x1909   : > { %3656 = vmatmul.mubr.bf16.vlgmr.msra.gmra.mrb[32].mxu1 %v3516_v53 }
0x190a   : > { %3968 = vmatpush1.bf16.msra.mxu1 %v5191_v41 }
0x190b   : > { %3969 = vmatprep.subr.bf16.mxu1 %v5221_v1 }
0x190e   : > { %3970 = vmatpush1.bf16.msra.mxu1 %v5192_v28 }
0x190f   : > { %3971 = vmatprep.subr.bf16.mxu1 %v5221_v1 }
0x1912   : > { %3972 = vmatpush1.bf16.msra.mxu1 %v5193_v29 }
0x1913   : > { %3973 = vmatprep.subr.bf16.mxu1 %v5221_v1 }
0x1916   : > { %3974 = vmatpush1.bf16.msra.mxu1 %v5194_v23 }
0x1917   : > { %3975 = vmatprep.subr.bf16.mxu1 %v5221_v1 }
0x191a   : > { %3976 = vmatpush1.bf16.msra.mxu1 %v5195_v27 }
0x191b   : > { %3977 = vmatprep.subr.bf16.mxu1 %v5221_v1 }
0x191e   : > { %3978 = vmatpush1.bf16.msra.mxu1 %v5196_v30 }
0x191f   : > { %3979 = vmatprep.subr.bf16.mxu1 %v5221_v1 }
0x1922   : > { %3980 = vmatpush1.bf16.msra.mxu1 %v5197_v32 }
0x1923   : > { %3981 = vmatprep.subr.bf16.mxu1 %v5221_v1 }
0x1926   : > { %3982 = vmatpush1.bf16.msra.mxu1 %v5198_v34 }
0x1927   : > { %3983 = vmatprep.subr.bf16.mxu1 %v5221_v1 }
0x192a   : > { %3984 = vmatpush1.bf16.msra.mxu1 %v5199_v42 }
0x192b   : > { %3985 = vmatprep.subr.bf16.mxu1 %v5221_v1 }
0x192e   : > { %3986 = vmatpush1.bf16.msra.mxu1 %v5200_v44 }
0x192f   : > { %3987 = vmatprep.subr.bf16.mxu1 %v5221_v1 }
0x1932   : > { %3988 = vmatpush1.bf16.msra.mxu1 %v5201_v45 }
0x1933   : > { %3989 = vmatprep.subr.bf16.mxu1 %v5221_v1 }
0x1936   : > { %3990 = vmatpush1.bf16.msra.mxu1 %v5202_v46 }
0x19dc   : > { %v3657_v0 = vpop.f32.mrb[32].mxu1 }
0x19dd   : > { %v3658_v2 = vadd.f32 %v4631_v63, %v3657_v0  ;;  %v3659_v3 = vpop.f32.mrb[33].mxu1 }
0x19de   : > { %v3660_v5 = vpop.f32.mrb[34].mxu1 }
0x19df   : > { %v3664_v4 = vmax.f32 %v3658_v2, 0.0  ;;  %v3661_v6 = vadd.f32 %v4631_v63, %v3660_v5  ;;  %v3662_v7 = vpop.f32.mrb[35].mxu1 }
0x19e1   : > { %v3665_v8 = vmax.f32 %v3661_v6, 0.0  ;;  %v3668_v9 = vrot.slane %v3664_v4, 7  ;;  %v3674_v43 = vrot.slane %v3664_v4, 1 }
0x19e3   : > { %v3669_v10 = vrot.slane %v3665_v8, 7  ;;  %v3675_v12 = vrot.slane %v3665_v8, 1  ;;  %v4967_v11 = vpack.i.bf16 %v3665_v8, %v3664_v4  ;;  %v3673_v20 = vsel %vm446_vm1, 0.0, %v3668_v9 }
0x19e5   : > { %v3679_v13 = vsel %vm453_vm0, %v3675_v12, 0.0  ;;  %4968 = vrot.lane.b32.xlu0 %v4967_v11, %s5222_s20  ;;  %v3676_v14 = vsel %vm453_vm0, %v3674_v43, %v3675_v12  ;;  %v3670_v15 = vsel %vm446_vm1, %v3668_v9, %v3669_v10 }
0x19e6   : > { %v3689_v16 = vpack.c.bf16 %v3679_v13, %v3676_v14 }
0x19e8   : > { %4682 = vmatprep.mubr.msk.bf16.mxu0 %vm466_vm2, %v3689_v16 }
0x1a57   : > { %v4969_v17 = vpop.permute.xlu0 %4968 }
0x1a58   : > { %v4971_v18 = vunpack.i.h.bf16 %v4969_v17  ;;  %v4970_v19 = vunpack.i.l.bf16 %v4969_v17 }
0x1a5a   : > { %v3686_v26 = vsel %vm466_vm2, %v3673_v20, %v4970_v19  ;;  %v3687_v25 = vsel %vm466_vm2, %v3670_v15, %v4971_v18 }
0x1a5b   : > { %v3688_v38 = vpack.c.bf16 %v3687_v25, %v3686_v26 }
0x1a5d   : > { %3828 = vmatmul.mubr.bf16.vlgmr.msra.gmra.mrb[52].mxu0 %v3688_v38 }
0x1b30   : > { %v3829_v21 = vpop.f32.mrb[52].mxu0 }
0x1b31   : > { %v3830_v39 = vadd.f32 %v4669_v47, %v3829_v21  ;;  %v3831_v24 = vpop.f32.mrb[53].mxu0 }
0x1b32   : > { %v3832_v37 = vpop.f32.mrb[54].mxu0 }
0x1b33   : > { %v3836_v48 = vadd.f32 %v3830_v39, %v6438_v31  ;;  %v3833_v49 = vadd.f32 %v4669_v47, %v3832_v37  ;;  %v3834_v50 = vpop.f32.mrb[55].mxu0 }
0x1b35   : > { %v3837_v22 = vadd.f32 %v3833_v49, %v6441_v40  ;;  %v3840_v1 = vrot.slane %v3836_v48, 7  ;;  %v3846_v51 = vrot.slane %v3836_v48, 1 }
0x1b37   : > { %v3841_v52 = vrot.slane %v3837_v22, 7  ;;  %v3847_v53 = vrot.slane %v3837_v22, 1  ;;  %v4972_v36 = vpack.i.bf16 %v3837_v22, %v3836_v48  ;;  %v3845_v58 = vsel %vm446_vm1, 0.0, %v3840_v1 }
0x1b39   : > { %4973 = vrot.lane.b32.xlu1 %v4972_v36, %s5222_s20  ;;  %v3848_v35 = vsel %vm453_vm0, %v3846_v51, %v3847_v53  ;;  %v3851_v54 = vsel %vm453_vm0, %v3847_v53, 0.0  ;;  %v3842_v55 = vsel %vm446_vm1, %v3840_v1, %v3841_v52 }
0x1b3a   : > { %v3861_v56 = vpack.c.bf16 %v3851_v54, %v3848_v35 }
0x1b3c   : > { %4720 = vmatprep.mubr.msk.bf16.mxu1 %vm466_vm2, %v3861_v56 }
0x1bab   : > { %v4974_v31 = vpop.permute.xlu1 %4973 }
0x1bac   : > { %v4976_v57 = vunpack.i.h.bf16 %v4974_v31  ;;  %v4975_v40 = vunpack.i.l.bf16 %v4974_v31 }
0x1bae   : > { %v3858_v59 = vsel %vm466_vm2, %v3845_v58, %v4975_v40  ;;  %v3859_v60 = vsel %vm466_vm2, %v3842_v55, %v4976_v57 }
0x1baf   : > { %v3860_v61 = vpack.c.bf16 %v3859_v60, %v3858_v59 }
0x1bb1   : > { %4000 = vmatmul.mubr.bf16.vlgmr.msra.gmra.mrb[36].mxu1 %v3860_v61 }
0x1c84   : > { %v4001_v33 = vpop.f32.mrb[36].mxu1 }
0x1c85   : > { %v4002_v63 = vadd.f32 %v4707_v62, %v4001_v33  ;;  %v4003_v0 = vpop.f32.mrb[37].mxu1 }
0x1c86   : > { %v4004_v2 = vpop.f32.mrb[38].mxu1 }
0x1c87   : > { %4008 = vst.msk [vmem:[%s440_s27] sm:$0xff] %vm466_vm2, %v4002_v63  ;;  %v4005_v3 = vadd.f32 %v4707_v62, %v4004_v2  ;;  %v4006_v5 = vpop.f32.mrb[39].mxu1 }
0x1c89   : > { %4009 = vst.msk [vmem:[%s440_s27 + $0x8] sm:$0xff] %vm466_vm2, %v4005_v3 }
0x1c8a PF: > { %s23_s25 = sadd.s32 1, %s5219_s25  }
0x1c8b   : > { %p20_p4 = scmp.ge.s32.totalorder %s23_s25, 4  }
0x1c8d   :  { %22 = sbr.rel (!%p20_p4) target bundleno = 1 (0x1), region = 119 }

</bundles_post_ra>
